<compile_context>
chip_gen: v5e
topology: v5e:2x2
jax: 0.10.0
libtpu: 0.0.40
codegen_flags: <defaults>
</compile_context>

<pallas_src>
import functools
import math

import jax
import jax.numpy as jnp
from jax import lax
from jax.experimental import pallas as pl
from jax.experimental.pallas import tpu as pltpu


def _round_up(x, m):
    return ((x + m - 1) // m) * m


def _gru_encoder_kernel(x_ref, w0_ref, b0_ref, wih_ref, bih_ref, whh_ref,
                        bhhn_ref, wo_ref, bo_ref, out_ref, *scratch,
                        T, TB, Hp, L, Tc):
    """One batch tile: fused embed+layer-0 gates -> L-layer GRU -> output linear.

    x_ref    (T, TB, Ap)        time-major input tile
    w0_ref   (Ap, 3Hp)          fused We @ Wih[0]
    b0_ref   (1, 3Hp)           fused be @ Wih[0] + bih[0] + bhh[0][r,z]
    wih_ref  (max(L-1,1), Hp, 3Hp)  input-gate weights, layers 1..L-1
    bih_ref  (max(L-1,1), 1, 3Hp)   input-gate bias + bhh[r,z], layers 1..L-1
    whh_ref  (L, Hp, 3Hp)       hidden-gate weights
    bhhn_ref (L, 1, Hp)         n-gate hidden bias (cannot be folded: scaled by r)
    scratch: [seq (T*TB, Hp) iff L>1], gx (Tc*TB, 3Hp)
    """
    if L > 1:
        seq_ref, gx_ref = scratch
    else:
        (gx_ref,) = scratch
        seq_ref = None

    Ap = x_ref.shape[-1]
    wdt = w0_ref.dtype
    unroll = True if T <= 16 else 4

    for l in range(L):                                   # static over layers
        write_seq = (l + 1 < L)                          # next layer needs seq
        h = jnp.zeros((TB, Hp), jnp.float32)

        for c0 in range(0, T, Tc):                       # static time chunks
            clen = min(Tc, T - c0)
            rows = clen * TB

            # ---- input-gate projections for this chunk: one 2-D MXU matmul --
            if l == 0:
                x_chunk = x_ref[...] if clen == T else x_ref[c0:c0 + clen]
                xin = jnp.reshape(x_chunk, (rows, Ap))
                gx_ref[pl.ds(0, rows), :] = (
                    jnp.dot(xin.astype(wdt), w0_ref[...],
                            preferred_element_type=jnp.float32)
                    + b0_ref[...])
            else:
                xin = seq_ref[pl.ds(c0 * TB, rows), :]
                gx_ref[pl.ds(0, rows), :] = (
                    jnp.dot(xin.astype(wdt), wih_ref[l - 1],
                            preferred_element_type=jnp.float32)
                    + bih_ref[l - 1])

            # ---- serial recurrence over this chunk (PyTorch gate order r,z,n)
            def step(tt, h, _l=l, _c0=c0, _write=write_seq):
                row = pl.multiple_of(tt * TB, TB)
                hw = h.astype(wdt)
                # per-gate hidden projections; RHS streamed from VMEM each step
                gh_r = jnp.dot(hw, whh_ref[_l, :, 0:Hp],
                               preferred_element_type=jnp.float32)
                gh_z = jnp.dot(hw, whh_ref[_l, :, Hp:2 * Hp],
                               preferred_element_type=jnp.float32)
                gh_n = (jnp.dot(hw, whh_ref[_l, :, 2 * Hp:3 * Hp],
                                preferred_element_type=jnp.float32)
                        + bhhn_ref[_l])
                r = jax.nn.sigmoid(gx_ref[pl.ds(row, TB), 0:Hp] + gh_r)
                z = jax.nn.sigmoid(gx_ref[pl.ds(row, TB), Hp:2 * Hp] + gh_z)
                n = jnp.tanh(gx_ref[pl.ds(row, TB), 2 * Hp:3 * Hp] + r * gh_n)
                h_new = (1.0 - z) * n + z * h
                if _write:
                    srow = pl.multiple_of(_c0 * TB + row, TB)
                    seq_ref[pl.ds(srow, TB), :] = h_new  # next layer's input
                return h_new

            h = lax.fori_loop(0, clen, step, h, unroll=unroll)

    # ---- output layer: last hidden state -> (TB, Op), lane-dense store -------
    out_ref[...] = (
        jnp.dot(h.astype(wdt), wo_ref[...], preferred_element_type=jnp.float32)
        + bo_ref[...])


def rnn_encoder(x, params, *, num_layers, param_dtype=jnp.float32):
    """x: (B, T, A) float32. Returns (B, dim_output) float32."""
    B, T, A = x.shape
    H = params["we"].shape[1]
    O = params["wo"].shape[1]
    L = num_layers
    f32 = jnp.float32

    # lane/sublane-aligned padded sizes
    Hp = _round_up(max(H, 128), 128)          # hidden -> 128-lane multiple
    Op = _round_up(max(O, 128), 128)          # output -> lane-dense store
    Ap = _round_up(max(A, 8), 8)              # input feature -> sublane multiple

    # batch tile: largest tile on single-TC chips (v5e/v6e); on v7x aim for
    # >=2 grid steps so dimension_semantics=("parallel",) spans both cores.
    try:
        kind = jax.devices()[0].device_kind.lower()
    except Exception:  # pragma: no cover
        kind = ""
    n_tc = 2 if "v7" in kind else 1
    TB = min(_round_up(max(-(-B // n_tc), 8), 8), 128)
    Bp = _round_up(B, TB)

    # time-chunk the input-gate projections so the gx scratch stays <= ~4 MiB
    Tc = max(1, min(T, (4 << 20) // (TB * 3 * Hp * 4)))
    # TODO(synk): for very long T with L>1, also store the seq scratch in bf16.

    # ---- parameter fusion + folding (wrapper-side, exact linear algebra) ------
    we, be = params["we"], params["be"]
    wih, whh = params["wih"], params["whh"]
    bih, bhh = params["bih"], params["bhh"]

    w0 = we @ wih[0]                                   # (A, 3H): embed fused into layer-0
    bhh_rz = bhh.at[:, :, 2 * H:].set(0.0)             # r/z hidden biases (foldable)
    b0 = be @ wih[0] + bih[0] + bhh_rz[0]              # (1, 3H)
    if L > 1:
        wih_rest = wih[1:]                             # (L-1, H, 3H)
        bih_rest = bih[1:] + bhh_rz[1:]                # fold r/z hidden biases
    else:
        wih_rest = jnp.zeros((1, H, 3 * H), f32)       # unused placeholder
        bih_rest = jnp.zeros((1, 1, 3 * H), f32)
    bhh_n = bhh[:, :, 2 * H:]                          # (L, 1, H): kept (scaled by r)

    # ---- padding to lane-aligned gate layout (offsets 0 / Hp / 2Hp) -----------
    def pad2(w, r, c, dtype=f32):
        return jnp.zeros((r, c), dtype).at[:w.shape[0], :w.shape[1]].set(w)

    def pad_gates(w, rows_p, dtype=f32):               # (..., rows, 3H) -> (..., rows_p, 3Hp)
        lead, rows = w.shape[:-2], w.shape[-2]
        out = jnp.zeros(lead + (rows_p, 3 * Hp), dtype)
        for g in range(3):
            out = out.at[..., :rows, g * Hp:g * Hp + H].set(
                w[..., g * H:(g + 1) * H])
        return out

    def pad_last(w, cols_p, dtype=f32):                # pad only the last dim
        return jnp.zeros(w.shape[:-1] + (cols_p,), dtype).at[..., :w.shape[-1]].set(w)

    w0p = pad_gates(w0, Ap, param_dtype)
    b0p = pad_gates(b0, 1)
    wihp = pad_gates(wih_rest, Hp, param_dtype)
    bihp = pad_gates(bih_rest, 1)
    whhp = pad_gates(whh, Hp, param_dtype)
    bhhnp = pad_last(bhh_n, Hp)
    wop = pad2(params["wo"], Hp, Op, param_dtype)
    bop = pad2(params["bo"], 1, Op)

    # ---- pad + time-major transpose of the input (layout plumbing in wrapper) -
    xp = jnp.zeros((Bp, T, Ap), f32).at[:B, :, :A].set(x)
    xp = jnp.transpose(xp, (1, 0, 2))                  # (T, Bp, Ap)

    # ---- VMEM budget from actual shapes (weights are double-buffered by Pallas)
    w_bytes = sum(int(a.size) * jnp.dtype(a.dtype).itemsize
                  for a in (w0p, b0p, wihp, bihp, whhp, bhhnp, wop, bop))
    io_bytes = 2 * (T * TB * Ap * 4 + TB * Op * 4)
    scratch_bytes = (T * TB * Hp * 4 if L > 1 else 0) + Tc * TB * 3 * Hp * 4
    need = 2 * w_bytes + io_bytes + scratch_bytes
    vmem_limit = int(min(max(int(need * 1.25), 16 << 20), 100 << 20))

    Lm1 = max(L - 1, 1)
    scratch_shapes = []
    if L > 1:
        scratch_shapes.append(pltpu.VMEM((T * TB, Hp), jnp.float32))   # seq
    scratch_shapes.append(pltpu.VMEM((Tc * TB, 3 * Hp), jnp.float32))  # gx

    kernel = functools.partial(_gru_encoder_kernel, T=T, TB=TB, Hp=Hp, L=L, Tc=Tc)

    grid_spec = pltpu.PrefetchScalarGridSpec(
        num_scalar_prefetch=0,
        grid=(Bp // TB,),
        in_specs=[
            pl.BlockSpec((T, TB, Ap), lambda b: (0, b, 0)),           # x tile
            pl.BlockSpec((Ap, 3 * Hp), lambda b: (0, 0)),             # w0 (fused)
            pl.BlockSpec((1, 3 * Hp), lambda b: (0, 0)),              # b0 (fused)
            pl.BlockSpec((Lm1, Hp, 3 * Hp), lambda b: (0, 0, 0)),     # wih (layers 1..)
            pl.BlockSpec((Lm1, 1, 3 * Hp), lambda b: (0, 0, 0)),      # bih (folded)
            pl.BlockSpec((L, Hp, 3 * Hp), lambda b: (0, 0, 0)),       # whh
            pl.BlockSpec((L, 1, Hp), lambda b: (0, 0, 0)),            # bhh_n
            pl.BlockSpec((Hp, Op), lambda b: (0, 0)),                 # wo
            pl.BlockSpec((1, Op), lambda b: (0, 0)),                  # bo
        ],
        out_specs=pl.BlockSpec((TB, Op), lambda b: (b, 0)),
        scratch_shapes=scratch_shapes,
    )

    out = pl.pallas_call(
        kernel,
        out_shape=jax.ShapeDtypeStruct((Bp, Op), f32),
        grid_spec=grid_spec,
        compiler_params=pltpu.CompilerParams(
            dimension_semantics=("parallel",),
            vmem_limit_bytes=vmem_limit),
    )(xp, w0p, b0p, wihp, bihp, whhp, bhhnp, wop, bop)

    return out[:B, :O]


def make_params(key, *, num_actions, dim_hidden, num_layers, dim_output):
    """Deterministic parameter init mimicking PyTorch default uniform ranges."""
    ks = jax.random.split(key, 8)
    H, A, O, L = dim_hidden, num_actions, dim_output, num_layers

    def u(k, shape, fan_in):
        bound = 1.0 / math.sqrt(fan_in)
        return jax.random.uniform(k, shape, jnp.float32, -bound, bound)

    return {
        # embedding Linear(A -> H), stored transposed
        "we": u(ks[0], (A, H), A),
        "be": u(ks[1], (1, H), A),
        # GRU per-layer weights, stored transposed, gate order (r, z, n)
        "wih": u(ks[2], (L, H, 3 * H), H),
        "whh": u(ks[3], (L, H, 3 * H), H),
        "bih": u(ks[4], (L, 1, 3 * H), H),
        "bhh": u(ks[5], (L, 1, 3 * H), H),
        # output Linear(H -> O), stored transposed
        "wo": u(ks[6], (H, O), H),
        "bo": u(ks[7], (1, O), H),
    }


def rnn_encoder_ref(x, params, *, num_layers):
    """Pure-JAX reference implementing the same PyTorch GRU semantics."""
    H = params["we"].shape[1]
    seq = jnp.einsum("bta,ah->bth", x, params["we"]) + params["be"]
    B, T, _ = seq.shape
    h = jnp.zeros((B, H), jnp.float32)
    for l in range(num_layers):
        gx_all = jnp.einsum("bth,hg->btg", seq, params["wih"][l]) + params["bih"][l]
        h = jnp.zeros((B, H), jnp.float32)
        outs = []
        for t in range(T):
            gx = gx_all[:, t, :]
            gh = h @ params["whh"][l] + params["bhh"][l]
            r = jax.nn.sigmoid(gx[:, :H] + gh[:, :H])
            z = jax.nn.sigmoid(gx[:, H:2 * H] + gh[:, H:2 * H])
            n = jnp.tanh(gx[:, 2 * H:] + r * gh[:, 2 * H:])
            h = (1.0 - z) * n + z * h
            outs.append(h)
        seq = jnp.stack(outs, axis=1)
    return h @ params["wo"] + params["bo"]


if __name__ == "__main__":
    # small config consistent with the module's forward
    cfg = dict(num_actions=4, dim_hidden=32, num_layers=2, dim_output=16)
    B, T = 2, 8

    key = jax.random.PRNGKey(0)
    kx, kp = jax.random.split(key)
    x = jax.random.normal(kx, (B, T, cfg["num_actions"]), jnp.float32)
    params = make_params(kp, **cfg)

    out = rnn_encoder(x, params, num_layers=cfg["num_layers"])
    out = jax.block_until_ready(out)

    ref = rnn_encoder_ref(x, params, num_layers=cfg["num_layers"])
    assert out.shape == (B, cfg["dim_output"])
    assert jnp.allclose(out, ref, rtol=1e-4, atol=1e-4), "mismatch vs reference"

    print("KERNEL_OK")
</pallas_src>

<mosaic_0001>
module attributes {stable_mosaic.version = 11 : i64} {
  func.func @_gru_encoder_kernel(%arg0: i32, %arg1: memref<8x8x8xf32, #tpu.memory_space<vmem>>, %arg2: memref<8x384xf32, #tpu.memory_space<vmem>>, %arg3: memref<1x384xf32, #tpu.memory_space<vmem>>, %arg4: memref<1x128x384xf32, #tpu.memory_space<vmem>>, %arg5: memref<1x1x384xf32, #tpu.memory_space<vmem>>, %arg6: memref<2x128x384xf32, #tpu.memory_space<vmem>>, %arg7: memref<2x1x128xf32, #tpu.memory_space<vmem>>, %arg8: memref<128x128xf32, #tpu.memory_space<vmem>>, %arg9: memref<1x128xf32, #tpu.memory_space<vmem>>, %arg10: memref<8x128xf32, #tpu.memory_space<vmem>>, %arg11: memref<64x128xf32, #tpu.memory_space<vmem>>, %arg12: memref<64x384xf32, #tpu.memory_space<vmem>>) attributes {dimension_semantics = [#tpu.dimension_semantics<parallel>], iteration_bounds = array<i64: 1>, scalar_prefetch = 0 : i64, scratch_operands = 2 : i64, tpu.core_type = #tpu.core_type<tc>, window_params = [{transform_indices = @transform_0, window_bounds = array<i64: 8, 8, 8>}, {pipeline_mode = #tpu.pipeline_mode<synchronous>, transform_indices = @transform_1, window_bounds = array<i64: 8, 384>}, {pipeline_mode = #tpu.pipeline_mode<synchronous>, transform_indices = @transform_2, window_bounds = array<i64: 1, 384>}, {pipeline_mode = #tpu.pipeline_mode<synchronous>, transform_indices = @transform_3, window_bounds = array<i64: 1, 128, 384>}, {pipeline_mode = #tpu.pipeline_mode<synchronous>, transform_indices = @transform_4, window_bounds = array<i64: 1, 1, 384>}, {pipeline_mode = #tpu.pipeline_mode<synchronous>, transform_indices = @transform_5, window_bounds = array<i64: 2, 128, 384>}, {pipeline_mode = #tpu.pipeline_mode<synchronous>, transform_indices = @transform_6, window_bounds = array<i64: 2, 1, 128>}, {pipeline_mode = #tpu.pipeline_mode<synchronous>, transform_indices = @transform_7, window_bounds = array<i64: 128, 128>}, {pipeline_mode = #tpu.pipeline_mode<synchronous>, transform_indices = @transform_8, window_bounds = array<i64: 1, 128>}, {transform_indices = @transform_9, window_bounds = array<i64: 8, 128>}]} {
    %cst = arith.constant 0.000000e+00 : f32
    %0 = vector.broadcast %cst : f32 to vector<8x128xf32>
    %c0 = arith.constant 0 : index
    %c0_0 = arith.constant 0 : index
    %c0_1 = arith.constant 0 : index
    %1 = vector.load %arg1[%c0, %c0_0, %c0_1] : memref<8x8x8xf32, #tpu.memory_space<vmem>>, vector<8x8x8xf32>
    %2 = vector.shape_cast %1 : vector<8x8x8xf32> to vector<64x8xf32>
    %c0_2 = arith.constant 0 : index
    %c0_3 = arith.constant 0 : index
    %3 = vector.load %arg2[%c0_2, %c0_3] : memref<8x384xf32, #tpu.memory_space<vmem>>, vector<8x384xf32>
    %cst_4 = arith.constant dense<0.000000e+00> : vector<64x384xf32>
    %4 = tpu.matmul %2, %3, %cst_4 {dimension_numbers = #tpu.dot_dimension_numbers<[1], [0], [0], [1], [0, 0, 1, 1], [], []>} : vector<64x8xf32>, vector<8x384xf32>, vector<64x384xf32> -> vector<64x384xf32>
    %c0_5 = arith.constant 0 : index
    %c0_6 = arith.constant 0 : index
    %5 = vector.load %arg3[%c0_5, %c0_6] : memref<1x384xf32, #tpu.memory_space<vmem>>, vector<1x384xf32>
    %6 = vector.broadcast %5 : vector<1x384xf32> to vector<64x384xf32>
    %7 = arith.addf %4, %6 : vector<64x384xf32>
    %c0_7 = arith.constant 0 : index
    %c0_8 = arith.constant 0 : index
    %8 = vector.load %arg12[%c0_7, %c0_8] : memref<64x384xf32, #tpu.memory_space<vmem>>, vector<64x384xf32>
    tpu.vector_store %arg12[%c0_7, %c0_8], %7 {strides = array<i32>} : memref<64x384xf32, #tpu.memory_space<vmem>>, vector<64x384xf32>,
    %c0_i32 = arith.constant 0 : i32
    %c8_i32 = arith.constant 8 : i32
    %9 = arith.muli %c0_i32, %c8_i32 : i32
    %10 = tpu.assume_multiple %9, 8 : i32
    %c0_9 = arith.constant 0 : index
    %c0_10 = arith.constant 0 : index
    %c0_11 = arith.constant 0 : index
    %11 = vector.load %arg6[%c0_9, %c0_10, %c0_11] : memref<2x128x384xf32, #tpu.memory_space<vmem>>, vector<1x128x128xf32>
    %12 = vector.shape_cast %11 : vector<1x128x128xf32> to vector<128x128xf32>
    %cst_12 = arith.constant dense<0.000000e+00> : vector<8x128xf32>
    %13 = tpu.matmul %0, %12, %cst_12 {dimension_numbers = #tpu.dot_dimension_numbers<[1], [0], [0], [1], [0, 0, 1, 1], [], []>} : vector<8x128xf32>, vector<128x128xf32>, vector<8x128xf32> -> vector<8x128xf32>
    %c0_13 = arith.constant 0 : index
    %c0_14 = arith.constant 0 : index
    %c128 = arith.constant 128 : index
    %14 = vector.load %arg6[%c0_13, %c0_14, %c128] : memref<2x128x384xf32, #tpu.memory_space<vmem>>, vector<1x128x128xf32>
    %15 = vector.shape_cast %14 : vector<1x128x128xf32> to vector<128x128xf32>
    %cst_15 = arith.constant dense<0.000000e+00> : vector<8x128xf32>
    %16 = tpu.matmul %0, %15, %cst_15 {dimension_numbers = #tpu.dot_dimension_numbers<[1], [0], [0], [1], [0, 0, 1, 1], [], []>} : vector<8x128xf32>, vector<128x128xf32>, vector<8x128xf32> -> vector<8x128xf32>
    %c0_16 = arith.constant 0 : index
    %c0_17 = arith.constant 0 : index
    %c256 = arith.constant 256 : index
    %17 = vector.load %arg6[%c0_16, %c0_17, %c256] : memref<2x128x384xf32, #tpu.memory_space<vmem>>, vector<1x128x128xf32>
    %18 = vector.shape_cast %17 : vector<1x128x128xf32> to vector<128x128xf32>
    %cst_18 = arith.constant dense<0.000000e+00> : vector<8x128xf32>
    %19 = tpu.matmul %0, %18, %cst_18 {dimension_numbers = #tpu.dot_dimension_numbers<[1], [0], [0], [1], [0, 0, 1, 1], [], []>} : vector<8x128xf32>, vector<128x128xf32>, vector<8x128xf32> -> vector<8x128xf32>
    %c0_19 = arith.constant 0 : index
    %c0_20 = arith.constant 0 : index
    %c0_21 = arith.constant 0 : index
    %20 = vector.load %arg7[%c0_19, %c0_20, %c0_21] : memref<2x1x128xf32, #tpu.memory_space<vmem>>, vector<1x1x128xf32>
    %21 = vector.shape_cast %20 : vector<1x1x128xf32> to vector<1x128xf32>
    %22 = vector.broadcast %21 : vector<1x128xf32> to vector<8x128xf32>
    %23 = arith.addf %19, %22 : vector<8x128xf32>
    %24 = arith.index_cast %10 : i32 to index
    %c0_22 = arith.constant 0 : index
    %25 = vector.load %arg12[%24, %c0_22] : memref<64x384xf32, #tpu.memory_space<vmem>>, vector<8x128xf32>
    %26 = arith.addf %25, %13 : vector<8x128xf32>
    %27 = arith.negf %26 : vector<8x128xf32>
    %28 = math.exp %27 : vector<8x128xf32>
    %cst_23 = arith.constant 1.000000e+00 : f32
    %29 = vector.broadcast %cst_23 : f32 to vector<8x128xf32>
    %30 = arith.addf %29, %28 : vector<8x128xf32>
    %31 = arith.divf %29, %30 : vector<8x128xf32>
    %32 = arith.index_cast %10 : i32 to index
    %c128_24 = arith.constant 128 : index
    %33 = vector.load %arg12[%32, %c128_24] : memref<64x384xf32, #tpu.memory_space<vmem>>, vector<8x128xf32>
    %34 = arith.addf %33, %16 : vector<8x128xf32>
    %35 = arith.negf %34 : vector<8x128xf32>
    %36 = math.exp %35 : vector<8x128xf32>
    %cst_25 = arith.constant 1.000000e+00 : f32
    %37 = vector.broadcast %cst_25 : f32 to vector<8x128xf32>
    %38 = arith.addf %37, %36 : vector<8x128xf32>
    %39 = arith.divf %37, %38 : vector<8x128xf32>
    %40 = arith.index_cast %10 : i32 to index
    %c256_26 = arith.constant 256 : index
    %41 = vector.load %arg12[%40, %c256_26] : memref<64x384xf32, #tpu.memory_space<vmem>>, vector<8x128xf32>
    %42 = arith.mulf %31, %23 : vector<8x128xf32>
    %43 = arith.addf %41, %42 : vector<8x128xf32>
    %44 = math.tanh %43 : vector<8x128xf32>
    %cst_27 = arith.constant 1.000000e+00 : f32
    %45 = vector.broadcast %cst_27 : f32 to vector<8x128xf32>
    %46 = arith.subf %45, %39 : vector<8x128xf32>
    %47 = arith.mulf %46, %44 : vector<8x128xf32>
    %48 = arith.mulf %39, %0 : vector<8x128xf32>
    %49 = arith.addf %47, %48 : vector<8x128xf32>
    %c0_i32_28 = arith.constant 0 : i32
    %50 = arith.addi %c0_i32_28, %10 : i32
    %51 = tpu.assume_multiple %50, 8 : i32
    %52 = arith.index_cast %51 : i32 to index
    %c0_29 = arith.constant 0 : index
    %53 = vector.load %arg11[%52, %c0_29] : memref<64x128xf32, #tpu.memory_space<vmem>>, vector<8x128xf32>
    tpu.vector_store %arg11[%52, %c0_29], %49 {strides = array<i32>} : memref<64x128xf32, #tpu.memory_space<vmem>>, vector<8x128xf32>,
    %c1_i32 = arith.constant 1 : i32
    %c8_i32_30 = arith.constant 8 : i32
    %54 = arith.muli %c1_i32, %c8_i32_30 : i32
    %55 = tpu.assume_multiple %54, 8 : i32
    %c0_31 = arith.constant 0 : index
    %c0_32 = arith.constant 0 : index
    %c0_33 = arith.constant 0 : index
    %56 = vector.load %arg6[%c0_31, %c0_32, %c0_33] : memref<2x128x384xf32, #tpu.memory_space<vmem>>, vector<1x128x128xf32>
    %57 = vector.shape_cast %56 : vector<1x128x128xf32> to vector<128x128xf32>
    %cst_34 = arith.constant dense<0.000000e+00> : vector<8x128xf32>
    %58 = tpu.matmul %49, %57, %cst_34 {dimension_numbers = #tpu.dot_dimension_numbers<[1], [0], [0], [1], [0, 0, 1, 1], [], []>} : vector<8x128xf32>, vector<128x128xf32>, vector<8x128xf32> -> vector<8x128xf32>
    %c0_35 = arith.constant 0 : index
    %c0_36 = arith.constant 0 : index
    %c128_37 = arith.constant 128 : index
    %59 = vector.load %arg6[%c0_35, %c0_36, %c128_37] : memref<2x128x384xf32, #tpu.memory_space<vmem>>, vector<1x128x128xf32>
    %60 = vector.shape_cast %59 : vector<1x128x128xf32> to vector<128x128xf32>
    %cst_38 = arith.constant dense<0.000000e+00> : vector<8x128xf32>
    %61 = tpu.matmul %49, %60, %cst_38 {dimension_numbers = #tpu.dot_dimension_numbers<[1], [0], [0], [1], [0, 0, 1, 1], [], []>} : vector<8x128xf32>, vector<128x128xf32>, vector<8x128xf32> -> vector<8x128xf32>
    %c0_39 = arith.constant 0 : index
    %c0_40 = arith.constant 0 : index
    %c256_41 = arith.constant 256 : index
    %62 = vector.load %arg6[%c0_39, %c0_40, %c256_41] : memref<2x128x384xf32, #tpu.memory_space<vmem>>, vector<1x128x128xf32>
    %63 = vector.shape_cast %62 : vector<1x128x128xf32> to vector<128x128xf32>
    %cst_42 = arith.constant dense<0.000000e+00> : vector<8x128xf32>
    %64 = tpu.matmul %49, %63, %cst_42 {dimension_numbers = #tpu.dot_dimension_numbers<[1], [0], [0], [1], [0, 0, 1, 1], [], []>} : vector<8x128xf32>, vector<128x128xf32>, vector<8x128xf32> -> vector<8x128xf32>
    %c0_43 = arith.constant 0 : index
    %c0_44 = arith.constant 0 : index
    %c0_45 = arith.constant 0 : index
    %65 = vector.load %arg7[%c0_43, %c0_44, %c0_45] : memref<2x1x128xf32, #tpu.memory_space<vmem>>, vector<1x1x128xf32>
    %66 = vector.shape_cast %65 : vector<1x1x128xf32> to vector<1x128xf32>
    %67 = vector.broadcast %66 : vector<1x128xf32> to vector<8x128xf32>
    %68 = arith.addf %64, %67 : vector<8x128xf32>
    %69 = arith.index_cast %55 : i32 to index
    %c0_46 = arith.constant 0 : index
    %70 = vector.load %arg12[%69, %c0_46] : memref<64x384xf32, #tpu.memory_space<vmem>>, vector<8x128xf32>
    %71 = arith.addf %70, %58 : vector<8x128xf32>
    %72 = arith.negf %71 : vector<8x128xf32>
    %73 = math.exp %72 : vector<8x128xf32>
    %cst_47 = arith.constant 1.000000e+00 : f32
    %74 = vector.broadcast %cst_47 : f32 to vector<8x128xf32>
    %75 = arith.addf %74, %73 : vector<8x128xf32>
    %76 = arith.divf %74, %75 : vector<8x128xf32>
    %77 = arith.index_cast %55 : i32 to index
    %c128_48 = arith.constant 128 : index
    %78 = vector.load %arg12[%77, %c128_48] : memref<64x384xf32, #tpu.memory_space<vmem>>, vector<8x128xf32>
    %79 = arith.addf %78, %61 : vector<8x128xf32>
    %80 = arith.negf %79 : vector<8x128xf32>
    %81 = math.exp %80 : vector<8x128xf32>
    %cst_49 = arith.constant 1.000000e+00 : f32
    %82 = vector.broadcast %cst_49 : f32 to vector<8x128xf32>
    %83 = arith.addf %82, %81 : vector<8x128xf32>
    %84 = arith.divf %82, %83 : vector<8x128xf32>
    %85 = arith.index_cast %55 : i32 to index
    %c256_50 = arith.constant 256 : index
    %86 = vector.load %arg12[%85, %c256_50] : memref<64x384xf32, #tpu.memory_space<vmem>>, vector<8x128xf32>
    %87 = arith.mulf %76, %68 : vector<8x128xf32>
    %88 = arith.addf %86, %87 : vector<8x128xf32>
    %89 = math.tanh %88 : vector<8x128xf32>
    %cst_51 = arith.constant 1.000000e+00 : f32
    %90 = vector.broadcast %cst_51 : f32 to vector<8x128xf32>
    %91 = arith.subf %90, %84 : vector<8x128xf32>
    %92 = arith.mulf %91, %89 : vector<8x128xf32>
    %93 = arith.mulf %84, %49 : vector<8x128xf32>
    %94 = arith.addf %92, %93 : vector<8x128xf32>
    %c0_i32_52 = arith.constant 0 : i32
    %95 = arith.addi %c0_i32_52, %55 : i32
    %96 = tpu.assume_multiple %95, 8 : i32
    %97 = arith.index_cast %96 : i32 to index
    %c0_53 = arith.constant 0 : index
    %98 = vector.load %arg11[%97, %c0_53] : memref<64x128xf32, #tpu.memory_space<vmem>>, vector<8x128xf32>
    tpu.vector_store %arg11[%97, %c0_53], %94 {strides = array<i32>} : memref<64x128xf32, #tpu.memory_space<vmem>>, vector<8x128xf32>,
    %c2_i32 = arith.constant 2 : i32
    %c8_i32_54 = arith.constant 8 : i32
    %99 = arith.muli %c2_i32, %c8_i32_54 : i32
    %100 = tpu.assume_multiple %99, 8 : i32
    %c0_55 = arith.constant 0 : index
    %c0_56 = arith.constant 0 : index
    %c0_57 = arith.constant 0 : index
    %101 = vector.load %arg6[%c0_55, %c0_56, %c0_57] : memref<2x128x384xf32, #tpu.memory_space<vmem>>, vector<1x128x128xf32>
    %102 = vector.shape_cast %101 : vector<1x128x128xf32> to vector<128x128xf32>
    %cst_58 = arith.constant dense<0.000000e+00> : vector<8x128xf32>
    %103 = tpu.matmul %94, %102, %cst_58 {dimension_numbers = #tpu.dot_dimension_numbers<[1], [0], [0], [1], [0, 0, 1, 1], [], []>} : vector<8x128xf32>, vector<128x128xf32>, vector<8x128xf32> -> vector<8x128xf32>
    %c0_59 = arith.constant 0 : index
    %c0_60 = arith.constant 0 : index
    %c128_61 = arith.constant 128 : index
    %104 = vector.load %arg6[%c0_59, %c0_60, %c128_61] : memref<2x128x384xf32, #tpu.memory_space<vmem>>, vector<1x128x128xf32>
    %105 = vector.shape_cast %104 : vector<1x128x128xf32> to vector<128x128xf32>
    %cst_62 = arith.constant dense<0.000000e+00> : vector<8x128xf32>
    %106 = tpu.matmul %94, %105, %cst_62 {dimension_numbers = #tpu.dot_dimension_numbers<[1], [0], [0], [1], [0, 0, 1, 1], [], []>} : vector<8x128xf32>, vector<128x128xf32>, vector<8x128xf32> -> vector<8x128xf32>
    %c0_63 = arith.constant 0 : index
    %c0_64 = arith.constant 0 : index
    %c256_65 = arith.constant 256 : index
    %107 = vector.load %arg6[%c0_63, %c0_64, %c256_65] : memref<2x128x384xf32, #tpu.memory_space<vmem>>, vector<1x128x128xf32>
    %108 = vector.shape_cast %107 : vector<1x128x128xf32> to vector<128x128xf32>
    %cst_66 = arith.constant dense<0.000000e+00> : vector<8x128xf32>
    %109 = tpu.matmul %94, %108, %cst_66 {dimension_numbers = #tpu.dot_dimension_numbers<[1], [0], [0], [1], [0, 0, 1, 1], [], []>} : vector<8x128xf32>, vector<128x128xf32>, vector<8x128xf32> -> vector<8x128xf32>
    %c0_67 = arith.constant 0 : index
    %c0_68 = arith.constant 0 : index
    %c0_69 = arith.constant 0 : index
    %110 = vector.load %arg7[%c0_67, %c0_68, %c0_69] : memref<2x1x128xf32, #tpu.memory_space<vmem>>, vector<1x1x128xf32>
    %111 = vector.shape_cast %110 : vector<1x1x128xf32> to vector<1x128xf32>
    %112 = vector.broadcast %111 : vector<1x128xf32> to vector<8x128xf32>
    %113 = arith.addf %109, %112 : vector<8x128xf32>
    %114 = arith.index_cast %100 : i32 to index
    %c0_70 = arith.constant 0 : index
    %115 = vector.load %arg12[%114, %c0_70] : memref<64x384xf32, #tpu.memory_space<vmem>>, vector<8x128xf32>
    %116 = arith.addf %115, %103 : vector<8x128xf32>
    %117 = arith.negf %116 : vector<8x128xf32>
    %118 = math.exp %117 : vector<8x128xf32>
    %cst_71 = arith.constant 1.000000e+00 : f32
    %119 = vector.broadcast %cst_71 : f32 to vector<8x128xf32>
    %120 = arith.addf %119, %118 : vector<8x128xf32>
    %121 = arith.divf %119, %120 : vector<8x128xf32>
    %122 = arith.index_cast %100 : i32 to index
    %c128_72 = arith.constant 128 : index
    %123 = vector.load %arg12[%122, %c128_72] : memref<64x384xf32, #tpu.memory_space<vmem>>, vector<8x128xf32>
    %124 = arith.addf %123, %106 : vector<8x128xf32>
    %125 = arith.negf %124 : vector<8x128xf32>
    %126 = math.exp %125 : vector<8x128xf32>
    %cst_73 = arith.constant 1.000000e+00 : f32
    %127 = vector.broadcast %cst_73 : f32 to vector<8x128xf32>
    %128 = arith.addf %127, %126 : vector<8x128xf32>
    %129 = arith.divf %127, %128 : vector<8x128xf32>
    %130 = arith.index_cast %100 : i32 to index
    %c256_74 = arith.constant 256 : index
    %131 = vector.load %arg12[%130, %c256_74] : memref<64x384xf32, #tpu.memory_space<vmem>>, vector<8x128xf32>
    %132 = arith.mulf %121, %113 : vector<8x128xf32>
    %133 = arith.addf %131, %132 : vector<8x128xf32>
    %134 = math.tanh %133 : vector<8x128xf32>
    %cst_75 = arith.constant 1.000000e+00 : f32
    %135 = vector.broadcast %cst_75 : f32 to vector<8x128xf32>
    %136 = arith.subf %135, %129 : vector<8x128xf32>
    %137 = arith.mulf %136, %134 : vector<8x128xf32>
    %138 = arith.mulf %129, %94 : vector<8x128xf32>
    %139 = arith.addf %137, %138 : vector<8x128xf32>
    %c0_i32_76 = arith.constant 0 : i32
    %140 = arith.addi %c0_i32_76, %100 : i32
    %141 = tpu.assume_multiple %140, 8 : i32
    %142 = arith.index_cast %141 : i32 to index
    %c0_77 = arith.constant 0 : index
    %143 = vector.load %arg11[%142, %c0_77] : memref<64x128xf32, #tpu.memory_space<vmem>>, vector<8x128xf32>
    tpu.vector_store %arg11[%142, %c0_77], %139 {strides = array<i32>} : memref<64x128xf32, #tpu.memory_space<vmem>>, vector<8x128xf32>,
    %c3_i32 = arith.constant 3 : i32
    %c8_i32_78 = arith.constant 8 : i32
    %144 = arith.muli %c3_i32, %c8_i32_78 : i32
    %145 = tpu.assume_multiple %144, 8 : i32
    %c0_79 = arith.constant 0 : index
    %c0_80 = arith.constant 0 : index
    %c0_81 = arith.constant 0 : index
    %146 = vector.load %arg6[%c0_79, %c0_80, %c0_81] : memref<2x128x384xf32, #tpu.memory_space<vmem>>, vector<1x128x128xf32>
    %147 = vector.shape_cast %146 : vector<1x128x128xf32> to vector<128x128xf32>
    %cst_82 = arith.constant dense<0.000000e+00> : vector<8x128xf32>
    %148 = tpu.matmul %139, %147, %cst_82 {dimension_numbers = #tpu.dot_dimension_numbers<[1], [0], [0], [1], [0, 0, 1, 1], [], []>} : vector<8x128xf32>, vector<128x128xf32>, vector<8x128xf32> -> vector<8x128xf32>
    %c0_83 = arith.constant 0 : index
    %c0_84 = arith.constant 0 : index
    %c128_85 = arith.constant 128 : index
    %149 = vector.load %arg6[%c0_83, %c0_84, %c128_85] : memref<2x128x384xf32, #tpu.memory_space<vmem>>, vector<1x128x128xf32>
    %150 = vector.shape_cast %149 : vector<1x128x128xf32> to vector<128x128xf32>
    %cst_86 = arith.constant dense<0.000000e+00> : vector<8x128xf32>
    %151 = tpu.matmul %139, %150, %cst_86 {dimension_numbers = #tpu.dot_dimension_numbers<[1], [0], [0], [1], [0, 0, 1, 1], [], []>} : vector<8x128xf32>, vector<128x128xf32>, vector<8x128xf32> -> vector<8x128xf32>
    %c0_87 = arith.constant 0 : index
    %c0_88 = arith.constant 0 : index
    %c256_89 = arith.constant 256 : index
    %152 = vector.load %arg6[%c0_87, %c0_88, %c256_89] : memref<2x128x384xf32, #tpu.memory_space<vmem>>, vector<1x128x128xf32>
    %153 = vector.shape_cast %152 : vector<1x128x128xf32> to vector<128x128xf32>
    %cst_90 = arith.constant dense<0.000000e+00> : vector<8x128xf32>
    %154 = tpu.matmul %139, %153, %cst_90 {dimension_numbers = #tpu.dot_dimension_numbers<[1], [0], [0], [1], [0, 0, 1, 1], [], []>} : vector<8x128xf32>, vector<128x128xf32>, vector<8x128xf32> -> vector<8x128xf32>
    %c0_91 = arith.constant 0 : index
    %c0_92 = arith.constant 0 : index
    %c0_93 = arith.constant 0 : index
    %155 = vector.load %arg7[%c0_91, %c0_92, %c0_93] : memref<2x1x128xf32, #tpu.memory_space<vmem>>, vector<1x1x128xf32>
    %156 = vector.shape_cast %155 : vector<1x1x128xf32> to vector<1x128xf32>
    %157 = vector.broadcast %156 : vector<1x128xf32> to vector<8x128xf32>
    %158 = arith.addf %154, %157 : vector<8x128xf32>
    %159 = arith.index_cast %145 : i32 to index
    %c0_94 = arith.constant 0 : index
    %160 = vector.load %arg12[%159, %c0_94] : memref<64x384xf32, #tpu.memory_space<vmem>>, vector<8x128xf32>
    %161 = arith.addf %160, %148 : vector<8x128xf32>
    %162 = arith.negf %161 : vector<8x128xf32>
    %163 = math.exp %162 : vector<8x128xf32>
    %cst_95 = arith.constant 1.000000e+00 : f32
    %164 = vector.broadcast %cst_95 : f32 to vector<8x128xf32>
    %165 = arith.addf %164, %163 : vector<8x128xf32>
    %166 = arith.divf %164, %165 : vector<8x128xf32>
    %167 = arith.index_cast %145 : i32 to index
    %c128_96 = arith.constant 128 : index
    %168 = vector.load %arg12[%167, %c128_96] : memref<64x384xf32, #tpu.memory_space<vmem>>, vector<8x128xf32>
    %169 = arith.addf %168, %151 : vector<8x128xf32>
    %170 = arith.negf %169 : vector<8x128xf32>
    %171 = math.exp %170 : vector<8x128xf32>
    %cst_97 = arith.constant 1.000000e+00 : f32
    %172 = vector.broadcast %cst_97 : f32 to vector<8x128xf32>
    %173 = arith.addf %172, %171 : vector<8x128xf32>
    %174 = arith.divf %172, %173 : vector<8x128xf32>
    %175 = arith.index_cast %145 : i32 to index
    %c256_98 = arith.constant 256 : index
    %176 = vector.load %arg12[%175, %c256_98] : memref<64x384xf32, #tpu.memory_space<vmem>>, vector<8x128xf32>
    %177 = arith.mulf %166, %158 : vector<8x128xf32>
    %178 = arith.addf %176, %177 : vector<8x128xf32>
    %179 = math.tanh %178 : vector<8x128xf32>
    %cst_99 = arith.constant 1.000000e+00 : f32
    %180 = vector.broadcast %cst_99 : f32 to vector<8x128xf32>
    %181 = arith.subf %180, %174 : vector<8x128xf32>
    %182 = arith.mulf %181, %179 : vector<8x128xf32>
    %183 = arith.mulf %174, %139 : vector<8x128xf32>
    %184 = arith.addf %182, %183 : vector<8x128xf32>
    %c0_i32_100 = arith.constant 0 : i32
    %185 = arith.addi %c0_i32_100, %145 : i32
    %186 = tpu.assume_multiple %185, 8 : i32
    %187 = arith.index_cast %186 : i32 to index
    %c0_101 = arith.constant 0 : index
    %188 = vector.load %arg11[%187, %c0_101] : memref<64x128xf32, #tpu.memory_space<vmem>>, vector<8x128xf32>
    tpu.vector_store %arg11[%187, %c0_101], %184 {strides = array<i32>} : memref<64x128xf32, #tpu.memory_space<vmem>>, vector<8x128xf32>,
    %c4_i32 = arith.constant 4 : i32
    %c8_i32_102 = arith.constant 8 : i32
    %189 = arith.muli %c4_i32, %c8_i32_102 : i32
    %190 = tpu.assume_multiple %189, 8 : i32
    %c0_103 = arith.constant 0 : index
    %c0_104 = arith.constant 0 : index
    %c0_105 = arith.constant 0 : index
    %191 = vector.load %arg6[%c0_103, %c0_104, %c0_105] : memref<2x128x384xf32, #tpu.memory_space<vmem>>, vector<1x128x128xf32>
    %192 = vector.shape_cast %191 : vector<1x128x128xf32> to vector<128x128xf32>
    %cst_106 = arith.constant dense<0.000000e+00> : vector<8x128xf32>
    %193 = tpu.matmul %184, %192, %cst_106 {dimension_numbers = #tpu.dot_dimension_numbers<[1], [0], [0], [1], [0, 0, 1, 1], [], []>} : vector<8x128xf32>, vector<128x128xf32>, vector<8x128xf32> -> vector<8x128xf32>
    %c0_107 = arith.constant 0 : index
    %c0_108 = arith.constant 0 : index
    %c128_109 = arith.constant 128 : index
    %194 = vector.load %arg6[%c0_107, %c0_108, %c128_109] : memref<2x128x384xf32, #tpu.memory_space<vmem>>, vector<1x128x128xf32>
    %195 = vector.shape_cast %194 : vector<1x128x128xf32> to vector<128x128xf32>
    %cst_110 = arith.constant dense<0.000000e+00> : vector<8x128xf32>
    %196 = tpu.matmul %184, %195, %cst_110 {dimension_numbers = #tpu.dot_dimension_numbers<[1], [0], [0], [1], [0, 0, 1, 1], [], []>} : vector<8x128xf32>, vector<128x128xf32>, vector<8x128xf32> -> vector<8x128xf32>
    %c0_111 = arith.constant 0 : index
    %c0_112 = arith.constant 0 : index
    %c256_113 = arith.constant 256 : index
    %197 = vector.load %arg6[%c0_111, %c0_112, %c256_113] : memref<2x128x384xf32, #tpu.memory_space<vmem>>, vector<1x128x128xf32>
    %198 = vector.shape_cast %197 : vector<1x128x128xf32> to vector<128x128xf32>
    %cst_114 = arith.constant dense<0.000000e+00> : vector<8x128xf32>
    %199 = tpu.matmul %184, %198, %cst_114 {dimension_numbers = #tpu.dot_dimension_numbers<[1], [0], [0], [1], [0, 0, 1, 1], [], []>} : vector<8x128xf32>, vector<128x128xf32>, vector<8x128xf32> -> vector<8x128xf32>
    %c0_115 = arith.constant 0 : index
    %c0_116 = arith.constant 0 : index
    %c0_117 = arith.constant 0 : index
    %200 = vector.load %arg7[%c0_115, %c0_116, %c0_117] : memref<2x1x128xf32, #tpu.memory_space<vmem>>, vector<1x1x128xf32>
    %201 = vector.shape_cast %200 : vector<1x1x128xf32> to vector<1x128xf32>
    %202 = vector.broadcast %201 : vector<1x128xf32> to vector<8x128xf32>
    %203 = arith.addf %199, %202 : vector<8x128xf32>
    %204 = arith.index_cast %190 : i32 to index
    %c0_118 = arith.constant 0 : index
    %205 = vector.load %arg12[%204, %c0_118] : memref<64x384xf32, #tpu.memory_space<vmem>>, vector<8x128xf32>
    %206 = arith.addf %205, %193 : vector<8x128xf32>
    %207 = arith.negf %206 : vector<8x128xf32>
    %208 = math.exp %207 : vector<8x128xf32>
    %cst_119 = arith.constant 1.000000e+00 : f32
    %209 = vector.broadcast %cst_119 : f32 to vector<8x128xf32>
    %210 = arith.addf %209, %208 : vector<8x128xf32>
    %211 = arith.divf %209, %210 : vector<8x128xf32>
    %212 = arith.index_cast %190 : i32 to index
    %c128_120 = arith.constant 128 : index
    %213 = vector.load %arg12[%212, %c128_120] : memref<64x384xf32, #tpu.memory_space<vmem>>, vector<8x128xf32>
    %214 = arith.addf %213, %196 : vector<8x128xf32>
    %215 = arith.negf %214 : vector<8x128xf32>
    %216 = math.exp %215 : vector<8x128xf32>
    %cst_121 = arith.constant 1.000000e+00 : f32
    %217 = vector.broadcast %cst_121 : f32 to vector<8x128xf32>
    %218 = arith.addf %217, %216 : vector<8x128xf32>
    %219 = arith.divf %217, %218 : vector<8x128xf32>
    %220 = arith.index_cast %190 : i32 to index
    %c256_122 = arith.constant 256 : index
    %221 = vector.load %arg12[%220, %c256_122] : memref<64x384xf32, #tpu.memory_space<vmem>>, vector<8x128xf32>
    %222 = arith.mulf %211, %203 : vector<8x128xf32>
    %223 = arith.addf %221, %222 : vector<8x128xf32>
    %224 = math.tanh %223 : vector<8x128xf32>
    %cst_123 = arith.constant 1.000000e+00 : f32
    %225 = vector.broadcast %cst_123 : f32 to vector<8x128xf32>
    %226 = arith.subf %225, %219 : vector<8x128xf32>
    %227 = arith.mulf %226, %224 : vector<8x128xf32>
    %228 = arith.mulf %219, %184 : vector<8x128xf32>
    %229 = arith.addf %227, %228 : vector<8x128xf32>
    %c0_i32_124 = arith.constant 0 : i32
    %230 = arith.addi %c0_i32_124, %190 : i32
    %231 = tpu.assume_multiple %230, 8 : i32
    %232 = arith.index_cast %231 : i32 to index
    %c0_125 = arith.constant 0 : index
    %233 = vector.load %arg11[%232, %c0_125] : memref<64x128xf32, #tpu.memory_space<vmem>>, vector<8x128xf32>
    tpu.vector_store %arg11[%232, %c0_125], %229 {strides = array<i32>} : memref<64x128xf32, #tpu.memory_space<vmem>>, vector<8x128xf32>,
    %c5_i32 = arith.constant 5 : i32
    %c8_i32_126 = arith.constant 8 : i32
    %234 = arith.muli %c5_i32, %c8_i32_126 : i32
    %235 = tpu.assume_multiple %234, 8 : i32
    %c0_127 = arith.constant 0 : index
    %c0_128 = arith.constant 0 : index
    %c0_129 = arith.constant 0 : index
    %236 = vector.load %arg6[%c0_127, %c0_128, %c0_129] : memref<2x128x384xf32, #tpu.memory_space<vmem>>, vector<1x128x128xf32>
    %237 = vector.shape_cast %236 : vector<1x128x128xf32> to vector<128x128xf32>
    %cst_130 = arith.constant dense<0.000000e+00> : vector<8x128xf32>
    %238 = tpu.matmul %229, %237, %cst_130 {dimension_numbers = #tpu.dot_dimension_numbers<[1], [0], [0], [1], [0, 0, 1, 1], [], []>} : vector<8x128xf32>, vector<128x128xf32>, vector<8x128xf32> -> vector<8x128xf32>
    %c0_131 = arith.constant 0 : index
    %c0_132 = arith.constant 0 : index
    %c128_133 = arith.constant 128 : index
    %239 = vector.load %arg6[%c0_131, %c0_132, %c128_133] : memref<2x128x384xf32, #tpu.memory_space<vmem>>, vector<1x128x128xf32>
    %240 = vector.shape_cast %239 : vector<1x128x128xf32> to vector<128x128xf32>
    %cst_134 = arith.constant dense<0.000000e+00> : vector<8x128xf32>
    %241 = tpu.matmul %229, %240, %cst_134 {dimension_numbers = #tpu.dot_dimension_numbers<[1], [0], [0], [1], [0, 0, 1, 1], [], []>} : vector<8x128xf32>, vector<128x128xf32>, vector<8x128xf32> -> vector<8x128xf32>
    %c0_135 = arith.constant 0 : index
    %c0_136 = arith.constant 0 : index
    %c256_137 = arith.constant 256 : index
    %242 = vector.load %arg6[%c0_135, %c0_136, %c256_137] : memref<2x128x384xf32, #tpu.memory_space<vmem>>, vector<1x128x128xf32>
    %243 = vector.shape_cast %242 : vector<1x128x128xf32> to vector<128x128xf32>
    %cst_138 = arith.constant dense<0.000000e+00> : vector<8x128xf32>
    %244 = tpu.matmul %229, %243, %cst_138 {dimension_numbers = #tpu.dot_dimension_numbers<[1], [0], [0], [1], [0, 0, 1, 1], [], []>} : vector<8x128xf32>, vector<128x128xf32>, vector<8x128xf32> -> vector<8x128xf32>
    %c0_139 = arith.constant 0 : index
    %c0_140 = arith.constant 0 : index
    %c0_141 = arith.constant 0 : index
    %245 = vector.load %arg7[%c0_139, %c0_140, %c0_141] : memref<2x1x128xf32, #tpu.memory_space<vmem>>, vector<1x1x128xf32>
    %246 = vector.shape_cast %245 : vector<1x1x128xf32> to vector<1x128xf32>
    %247 = vector.broadcast %246 : vector<1x128xf32> to vector<8x128xf32>
    %248 = arith.addf %244, %247 : vector<8x128xf32>
    %249 = arith.index_cast %235 : i32 to index
    %c0_142 = arith.constant 0 : index
    %250 = vector.load %arg12[%249, %c0_142] : memref<64x384xf32, #tpu.memory_space<vmem>>, vector<8x128xf32>
    %251 = arith.addf %250, %238 : vector<8x128xf32>
    %252 = arith.negf %251 : vector<8x128xf32>
    %253 = math.exp %252 : vector<8x128xf32>
    %cst_143 = arith.constant 1.000000e+00 : f32
    %254 = vector.broadcast %cst_143 : f32 to vector<8x128xf32>
    %255 = arith.addf %254, %253 : vector<8x128xf32>
    %256 = arith.divf %254, %255 : vector<8x128xf32>
    %257 = arith.index_cast %235 : i32 to index
    %c128_144 = arith.constant 128 : index
    %258 = vector.load %arg12[%257, %c128_144] : memref<64x384xf32, #tpu.memory_space<vmem>>, vector<8x128xf32>
    %259 = arith.addf %258, %241 : vector<8x128xf32>
    %260 = arith.negf %259 : vector<8x128xf32>
    %261 = math.exp %260 : vector<8x128xf32>
    %cst_145 = arith.constant 1.000000e+00 : f32
    %262 = vector.broadcast %cst_145 : f32 to vector<8x128xf32>
    %263 = arith.addf %262, %261 : vector<8x128xf32>
    %264 = arith.divf %262, %263 : vector<8x128xf32>
    %265 = arith.index_cast %235 : i32 to index
    %c256_146 = arith.constant 256 : index
    %266 = vector.load %arg12[%265, %c256_146] : memref<64x384xf32, #tpu.memory_space<vmem>>, vector<8x128xf32>
    %267 = arith.mulf %256, %248 : vector<8x128xf32>
    %268 = arith.addf %266, %267 : vector<8x128xf32>
    %269 = math.tanh %268 : vector<8x128xf32>
    %cst_147 = arith.constant 1.000000e+00 : f32
    %270 = vector.broadcast %cst_147 : f32 to vector<8x128xf32>
    %271 = arith.subf %270, %264 : vector<8x128xf32>
    %272 = arith.mulf %271, %269 : vector<8x128xf32>
    %273 = arith.mulf %264, %229 : vector<8x128xf32>
    %274 = arith.addf %272, %273 : vector<8x128xf32>
    %c0_i32_148 = arith.constant 0 : i32
    %275 = arith.addi %c0_i32_148, %235 : i32
    %276 = tpu.assume_multiple %275, 8 : i32
    %277 = arith.index_cast %276 : i32 to index
    %c0_149 = arith.constant 0 : index
    %278 = vector.load %arg11[%277, %c0_149] : memref<64x128xf32, #tpu.memory_space<vmem>>, vector<8x128xf32>
    tpu.vector_store %arg11[%277, %c0_149], %274 {strides = array<i32>} : memref<64x128xf32, #tpu.memory_space<vmem>>, vector<8x128xf32>,
    %c6_i32 = arith.constant 6 : i32
    %c8_i32_150 = arith.constant 8 : i32
    %279 = arith.muli %c6_i32, %c8_i32_150 : i32
    %280 = tpu.assume_multiple %279, 8 : i32
    %c0_151 = arith.constant 0 : index
    %c0_152 = arith.constant 0 : index
    %c0_153 = arith.constant 0 : index
    %281 = vector.load %arg6[%c0_151, %c0_152, %c0_153] : memref<2x128x384xf32, #tpu.memory_space<vmem>>, vector<1x128x128xf32>
    %282 = vector.shape_cast %281 : vector<1x128x128xf32> to vector<128x128xf32>
    %cst_154 = arith.constant dense<0.000000e+00> : vector<8x128xf32>
    %283 = tpu.matmul %274, %282, %cst_154 {dimension_numbers = #tpu.dot_dimension_numbers<[1], [0], [0], [1], [0, 0, 1, 1], [], []>} : vector<8x128xf32>, vector<128x128xf32>, vector<8x128xf32> -> vector<8x128xf32>
    %c0_155 = arith.constant 0 : index
    %c0_156 = arith.constant 0 : index
    %c128_157 = arith.constant 128 : index
    %284 = vector.load %arg6[%c0_155, %c0_156, %c128_157] : memref<2x128x384xf32, #tpu.memory_space<vmem>>, vector<1x128x128xf32>
    %285 = vector.shape_cast %284 : vector<1x128x128xf32> to vector<128x128xf32>
    %cst_158 = arith.constant dense<0.000000e+00> : vector<8x128xf32>
    %286 = tpu.matmul %274, %285, %cst_158 {dimension_numbers = #tpu.dot_dimension_numbers<[1], [0], [0], [1], [0, 0, 1, 1], [], []>} : vector<8x128xf32>, vector<128x128xf32>, vector<8x128xf32> -> vector<8x128xf32>
    %c0_159 = arith.constant 0 : index
    %c0_160 = arith.constant 0 : index
    %c256_161 = arith.constant 256 : index
    %287 = vector.load %arg6[%c0_159, %c0_160, %c256_161] : memref<2x128x384xf32, #tpu.memory_space<vmem>>, vector<1x128x128xf32>
    %288 = vector.shape_cast %287 : vector<1x128x128xf32> to vector<128x128xf32>
    %cst_162 = arith.constant dense<0.000000e+00> : vector<8x128xf32>
    %289 = tpu.matmul %274, %288, %cst_162 {dimension_numbers = #tpu.dot_dimension_numbers<[1], [0], [0], [1], [0, 0, 1, 1], [], []>} : vector<8x128xf32>, vector<128x128xf32>, vector<8x128xf32> -> vector<8x128xf32>
    %c0_163 = arith.constant 0 : index
    %c0_164 = arith.constant 0 : index
    %c0_165 = arith.constant 0 : index
    %290 = vector.load %arg7[%c0_163, %c0_164, %c0_165] : memref<2x1x128xf32, #tpu.memory_space<vmem>>, vector<1x1x128xf32>
    %291 = vector.shape_cast %290 : vector<1x1x128xf32> to vector<1x128xf32>
    %292 = vector.broadcast %291 : vector<1x128xf32> to vector<8x128xf32>
    %293 = arith.addf %289, %292 : vector<8x128xf32>
    %294 = arith.index_cast %280 : i32 to index
    %c0_166 = arith.constant 0 : index
    %295 = vector.load %arg12[%294, %c0_166] : memref<64x384xf32, #tpu.memory_space<vmem>>, vector<8x128xf32>
    %296 = arith.addf %295, %283 : vector<8x128xf32>
    %297 = arith.negf %296 : vector<8x128xf32>
    %298 = math.exp %297 : vector<8x128xf32>
    %cst_167 = arith.constant 1.000000e+00 : f32
    %299 = vector.broadcast %cst_167 : f32 to vector<8x128xf32>
    %300 = arith.addf %299, %298 : vector<8x128xf32>
    %301 = arith.divf %299, %300 : vector<8x128xf32>
    %302 = arith.index_cast %280 : i32 to index
    %c128_168 = arith.constant 128 : index
    %303 = vector.load %arg12[%302, %c128_168] : memref<64x384xf32, #tpu.memory_space<vmem>>, vector<8x128xf32>
    %304 = arith.addf %303, %286 : vector<8x128xf32>
    %305 = arith.negf %304 : vector<8x128xf32>
    %306 = math.exp %305 : vector<8x128xf32>
    %cst_169 = arith.constant 1.000000e+00 : f32
    %307 = vector.broadcast %cst_169 : f32 to vector<8x128xf32>
    %308 = arith.addf %307, %306 : vector<8x128xf32>
    %309 = arith.divf %307, %308 : vector<8x128xf32>
    %310 = arith.index_cast %280 : i32 to index
    %c256_170 = arith.constant 256 : index
    %311 = vector.load %arg12[%310, %c256_170] : memref<64x384xf32, #tpu.memory_space<vmem>>, vector<8x128xf32>
    %312 = arith.mulf %301, %293 : vector<8x128xf32>
    %313 = arith.addf %311, %312 : vector<8x128xf32>
    %314 = math.tanh %313 : vector<8x128xf32>
    %cst_171 = arith.constant 1.000000e+00 : f32
    %315 = vector.broadcast %cst_171 : f32 to vector<8x128xf32>
    %316 = arith.subf %315, %309 : vector<8x128xf32>
    %317 = arith.mulf %316, %314 : vector<8x128xf32>
    %318 = arith.mulf %309, %274 : vector<8x128xf32>
    %319 = arith.addf %317, %318 : vector<8x128xf32>
    %c0_i32_172 = arith.constant 0 : i32
    %320 = arith.addi %c0_i32_172, %280 : i32
    %321 = tpu.assume_multiple %320, 8 : i32
    %322 = arith.index_cast %321 : i32 to index
    %c0_173 = arith.constant 0 : index
    %323 = vector.load %arg11[%322, %c0_173] : memref<64x128xf32, #tpu.memory_space<vmem>>, vector<8x128xf32>
    tpu.vector_store %arg11[%322, %c0_173], %319 {strides = array<i32>} : memref<64x128xf32, #tpu.memory_space<vmem>>, vector<8x128xf32>,
    %c7_i32 = arith.constant 7 : i32
    %c8_i32_174 = arith.constant 8 : i32
    %324 = arith.muli %c7_i32, %c8_i32_174 : i32
    %325 = tpu.assume_multiple %324, 8 : i32
    %c0_175 = arith.constant 0 : index
    %c0_176 = arith.constant 0 : index
    %c0_177 = arith.constant 0 : index
    %326 = vector.load %arg6[%c0_175, %c0_176, %c0_177] : memref<2x128x384xf32, #tpu.memory_space<vmem>>, vector<1x128x128xf32>
    %327 = vector.shape_cast %326 : vector<1x128x128xf32> to vector<128x128xf32>
    %cst_178 = arith.constant dense<0.000000e+00> : vector<8x128xf32>
    %328 = tpu.matmul %319, %327, %cst_178 {dimension_numbers = #tpu.dot_dimension_numbers<[1], [0], [0], [1], [0, 0, 1, 1], [], []>} : vector<8x128xf32>, vector<128x128xf32>, vector<8x128xf32> -> vector<8x128xf32>
    %c0_179 = arith.constant 0 : index
    %c0_180 = arith.constant 0 : index
    %c128_181 = arith.constant 128 : index
    %329 = vector.load %arg6[%c0_179, %c0_180, %c128_181] : memref<2x128x384xf32, #tpu.memory_space<vmem>>, vector<1x128x128xf32>
    %330 = vector.shape_cast %329 : vector<1x128x128xf32> to vector<128x128xf32>
    %cst_182 = arith.constant dense<0.000000e+00> : vector<8x128xf32>
    %331 = tpu.matmul %319, %330, %cst_182 {dimension_numbers = #tpu.dot_dimension_numbers<[1], [0], [0], [1], [0, 0, 1, 1], [], []>} : vector<8x128xf32>, vector<128x128xf32>, vector<8x128xf32> -> vector<8x128xf32>
    %c0_183 = arith.constant 0 : index
    %c0_184 = arith.constant 0 : index
    %c256_185 = arith.constant 256 : index
    %332 = vector.load %arg6[%c0_183, %c0_184, %c256_185] : memref<2x128x384xf32, #tpu.memory_space<vmem>>, vector<1x128x128xf32>
    %333 = vector.shape_cast %332 : vector<1x128x128xf32> to vector<128x128xf32>
    %cst_186 = arith.constant dense<0.000000e+00> : vector<8x128xf32>
    %334 = tpu.matmul %319, %333, %cst_186 {dimension_numbers = #tpu.dot_dimension_numbers<[1], [0], [0], [1], [0, 0, 1, 1], [], []>} : vector<8x128xf32>, vector<128x128xf32>, vector<8x128xf32> -> vector<8x128xf32>
    %c0_187 = arith.constant 0 : index
    %c0_188 = arith.constant 0 : index
    %c0_189 = arith.constant 0 : index
    %335 = vector.load %arg7[%c0_187, %c0_188, %c0_189] : memref<2x1x128xf32, #tpu.memory_space<vmem>>, vector<1x1x128xf32>
    %336 = vector.shape_cast %335 : vector<1x1x128xf32> to vector<1x128xf32>
    %337 = vector.broadcast %336 : vector<1x128xf32> to vector<8x128xf32>
    %338 = arith.addf %334, %337 : vector<8x128xf32>
    %339 = arith.index_cast %325 : i32 to index
    %c0_190 = arith.constant 0 : index
    %340 = vector.load %arg12[%339, %c0_190] : memref<64x384xf32, #tpu.memory_space<vmem>>, vector<8x128xf32>
    %341 = arith.addf %340, %328 : vector<8x128xf32>
    %342 = arith.negf %341 : vector<8x128xf32>
    %343 = math.exp %342 : vector<8x128xf32>
    %cst_191 = arith.constant 1.000000e+00 : f32
    %344 = vector.broadcast %cst_191 : f32 to vector<8x128xf32>
    %345 = arith.addf %344, %343 : vector<8x128xf32>
    %346 = arith.divf %344, %345 : vector<8x128xf32>
    %347 = arith.index_cast %325 : i32 to index
    %c128_192 = arith.constant 128 : index
    %348 = vector.load %arg12[%347, %c128_192] : memref<64x384xf32, #tpu.memory_space<vmem>>, vector<8x128xf32>
    %349 = arith.addf %348, %331 : vector<8x128xf32>
    %350 = arith.negf %349 : vector<8x128xf32>
    %351 = math.exp %350 : vector<8x128xf32>
    %cst_193 = arith.constant 1.000000e+00 : f32
    %352 = vector.broadcast %cst_193 : f32 to vector<8x128xf32>
    %353 = arith.addf %352, %351 : vector<8x128xf32>
    %354 = arith.divf %352, %353 : vector<8x128xf32>
    %355 = arith.index_cast %325 : i32 to index
    %c256_194 = arith.constant 256 : index
    %356 = vector.load %arg12[%355, %c256_194] : memref<64x384xf32, #tpu.memory_space<vmem>>, vector<8x128xf32>
    %357 = arith.mulf %346, %338 : vector<8x128xf32>
    %358 = arith.addf %356, %357 : vector<8x128xf32>
    %359 = math.tanh %358 : vector<8x128xf32>
    %cst_195 = arith.constant 1.000000e+00 : f32
    %360 = vector.broadcast %cst_195 : f32 to vector<8x128xf32>
    %361 = arith.subf %360, %354 : vector<8x128xf32>
    %362 = arith.mulf %361, %359 : vector<8x128xf32>
    %363 = arith.mulf %354, %319 : vector<8x128xf32>
    %364 = arith.addf %362, %363 : vector<8x128xf32>
    %c0_i32_196 = arith.constant 0 : i32
    %365 = arith.addi %c0_i32_196, %325 : i32
    %366 = tpu.assume_multiple %365, 8 : i32
    %367 = arith.index_cast %366 : i32 to index
    %c0_197 = arith.constant 0 : index
    %368 = vector.load %arg11[%367, %c0_197] : memref<64x128xf32, #tpu.memory_space<vmem>>, vector<8x128xf32>
    tpu.vector_store %arg11[%367, %c0_197], %364 {strides = array<i32>} : memref<64x128xf32, #tpu.memory_space<vmem>>, vector<8x128xf32>,
    %c8_i32_198 = arith.constant 8 : i32
    %cst_199 = arith.constant 0.000000e+00 : f32
    %369 = vector.broadcast %cst_199 : f32 to vector<8x128xf32>
    %c0_200 = arith.constant 0 : index
    %c0_201 = arith.constant 0 : index
    %370 = vector.load %arg11[%c0_200, %c0_201] : memref<64x128xf32, #tpu.memory_space<vmem>>, vector<64x128xf32>
    %c0_202 = arith.constant 0 : index
    %c0_203 = arith.constant 0 : index
    %c0_204 = arith.constant 0 : index
    %371 = vector.load %arg4[%c0_202, %c0_203, %c0_204] : memref<1x128x384xf32, #tpu.memory_space<vmem>>, vector<1x128x384xf32>
    %372 = vector.shape_cast %371 : vector<1x128x384xf32> to vector<128x384xf32>
    %cst_205 = arith.constant dense<0.000000e+00> : vector<64x384xf32>
    %373 = tpu.matmul %370, %372, %cst_205 {dimension_numbers = #tpu.dot_dimension_numbers<[1], [0], [0], [1], [0, 0, 1, 1], [], []>} : vector<64x128xf32>, vector<128x384xf32>, vector<64x384xf32> -> vector<64x384xf32>
    %c0_206 = arith.constant 0 : index
    %c0_207 = arith.constant 0 : index
    %c0_208 = arith.constant 0 : index
    %374 = vector.load %arg5[%c0_206, %c0_207, %c0_208] : memref<1x1x384xf32, #tpu.memory_space<vmem>>, vector<1x1x384xf32>
    %375 = vector.shape_cast %374 : vector<1x1x384xf32> to vector<1x384xf32>
    %376 = vector.broadcast %375 : vector<1x384xf32> to vector<64x384xf32>
    %377 = arith.addf %373, %376 : vector<64x384xf32>
    %c0_209 = arith.constant 0 : index
    %c0_210 = arith.constant 0 : index
    %378 = vector.load %arg12[%c0_209, %c0_210] : memref<64x384xf32, #tpu.memory_space<vmem>>, vector<64x384xf32>
    tpu.vector_store %arg12[%c0_209, %c0_210], %377 {strides = array<i32>} : memref<64x384xf32, #tpu.memory_space<vmem>>, vector<64x384xf32>,
    %c0_i32_211 = arith.constant 0 : i32
    %c8_i32_212 = arith.constant 8 : i32
    %379 = arith.muli %c0_i32_211, %c8_i32_212 : i32
    %380 = tpu.assume_multiple %379, 8 : i32
    %c1 = arith.constant 1 : index
    %c0_213 = arith.constant 0 : index
    %c0_214 = arith.constant 0 : index
    %381 = vector.load %arg6[%c1, %c0_213, %c0_214] : memref<2x128x384xf32, #tpu.memory_space<vmem>>, vector<1x128x128xf32>
    %382 = vector.shape_cast %381 : vector<1x128x128xf32> to vector<128x128xf32>
    %cst_215 = arith.constant dense<0.000000e+00> : vector<8x128xf32>
    %383 = tpu.matmul %369, %382, %cst_215 {dimension_numbers = #tpu.dot_dimension_numbers<[1], [0], [0], [1], [0, 0, 1, 1], [], []>} : vector<8x128xf32>, vector<128x128xf32>, vector<8x128xf32> -> vector<8x128xf32>
    %c1_216 = arith.constant 1 : index
    %c0_217 = arith.constant 0 : index
    %c128_218 = arith.constant 128 : index
    %384 = vector.load %arg6[%c1_216, %c0_217, %c128_218] : memref<2x128x384xf32, #tpu.memory_space<vmem>>, vector<1x128x128xf32>
    %385 = vector.shape_cast %384 : vector<1x128x128xf32> to vector<128x128xf32>
    %cst_219 = arith.constant dense<0.000000e+00> : vector<8x128xf32>
    %386 = tpu.matmul %369, %385, %cst_219 {dimension_numbers = #tpu.dot_dimension_numbers<[1], [0], [0], [1], [0, 0, 1, 1], [], []>} : vector<8x128xf32>, vector<128x128xf32>, vector<8x128xf32> -> vector<8x128xf32>
    %c1_220 = arith.constant 1 : index
    %c0_221 = arith.constant 0 : index
    %c256_222 = arith.constant 256 : index
    %387 = vector.load %arg6[%c1_220, %c0_221, %c256_222] : memref<2x128x384xf32, #tpu.memory_space<vmem>>, vector<1x128x128xf32>
    %388 = vector.shape_cast %387 : vector<1x128x128xf32> to vector<128x128xf32>
    %cst_223 = arith.constant dense<0.000000e+00> : vector<8x128xf32>
    %389 = tpu.matmul %369, %388, %cst_223 {dimension_numbers = #tpu.dot_dimension_numbers<[1], [0], [0], [1], [0, 0, 1, 1], [], []>} : vector<8x128xf32>, vector<128x128xf32>, vector<8x128xf32> -> vector<8x128xf32>
    %c1_224 = arith.constant 1 : index
    %c0_225 = arith.constant 0 : index
    %c0_226 = arith.constant 0 : index
    %390 = vector.load %arg7[%c1_224, %c0_225, %c0_226] : memref<2x1x128xf32, #tpu.memory_space<vmem>>, vector<1x1x128xf32>
    %391 = vector.shape_cast %390 : vector<1x1x128xf32> to vector<1x128xf32>
    %392 = vector.broadcast %391 : vector<1x128xf32> to vector<8x128xf32>
    %393 = arith.addf %389, %392 : vector<8x128xf32>
    %394 = arith.index_cast %380 : i32 to index
    %c0_227 = arith.constant 0 : index
    %395 = vector.load %arg12[%394, %c0_227] : memref<64x384xf32, #tpu.memory_space<vmem>>, vector<8x128xf32>
    %396 = arith.addf %395, %383 : vector<8x128xf32>
    %397 = arith.negf %396 : vector<8x128xf32>
    %398 = math.exp %397 : vector<8x128xf32>
    %cst_228 = arith.constant 1.000000e+00 : f32
    %399 = vector.broadcast %cst_228 : f32 to vector<8x128xf32>
    %400 = arith.addf %399, %398 : vector<8x128xf32>
    %401 = arith.divf %399, %400 : vector<8x128xf32>
    %402 = arith.index_cast %380 : i32 to index
    %c128_229 = arith.constant 128 : index
    %403 = vector.load %arg12[%402, %c128_229] : memref<64x384xf32, #tpu.memory_space<vmem>>, vector<8x128xf32>
    %404 = arith.addf %403, %386 : vector<8x128xf32>
    %405 = arith.negf %404 : vector<8x128xf32>
    %406 = math.exp %405 : vector<8x128xf32>
    %cst_230 = arith.constant 1.000000e+00 : f32
    %407 = vector.broadcast %cst_230 : f32 to vector<8x128xf32>
    %408 = arith.addf %407, %406 : vector<8x128xf32>
    %409 = arith.divf %407, %408 : vector<8x128xf32>
    %410 = arith.index_cast %380 : i32 to index
    %c256_231 = arith.constant 256 : index
    %411 = vector.load %arg12[%410, %c256_231] : memref<64x384xf32, #tpu.memory_space<vmem>>, vector<8x128xf32>
    %412 = arith.mulf %401, %393 : vector<8x128xf32>
    %413 = arith.addf %411, %412 : vector<8x128xf32>
    %414 = math.tanh %413 : vector<8x128xf32>
    %cst_232 = arith.constant 1.000000e+00 : f32
    %415 = vector.broadcast %cst_232 : f32 to vector<8x128xf32>
    %416 = arith.subf %415, %409 : vector<8x128xf32>
    %417 = arith.mulf %416, %414 : vector<8x128xf32>
    %418 = arith.mulf %409, %369 : vector<8x128xf32>
    %419 = arith.addf %417, %418 : vector<8x128xf32>
    %c1_i32_233 = arith.constant 1 : i32
    %c8_i32_234 = arith.constant 8 : i32
    %420 = arith.muli %c1_i32_233, %c8_i32_234 : i32
    %421 = tpu.assume_multiple %420, 8 : i32
    %c1_235 = arith.constant 1 : index
    %c0_236 = arith.constant 0 : index
    %c0_237 = arith.constant 0 : index
    %422 = vector.load %arg6[%c1_235, %c0_236, %c0_237] : memref<2x128x384xf32, #tpu.memory_space<vmem>>, vector<1x128x128xf32>
    %423 = vector.shape_cast %422 : vector<1x128x128xf32> to vector<128x128xf32>
    %cst_238 = arith.constant dense<0.000000e+00> : vector<8x128xf32>
    %424 = tpu.matmul %419, %423, %cst_238 {dimension_numbers = #tpu.dot_dimension_numbers<[1], [0], [0], [1], [0, 0, 1, 1], [], []>} : vector<8x128xf32>, vector<128x128xf32>, vector<8x128xf32> -> vector<8x128xf32>
    %c1_239 = arith.constant 1 : index
    %c0_240 = arith.constant 0 : index
    %c128_241 = arith.constant 128 : index
    %425 = vector.load %arg6[%c1_239, %c0_240, %c128_241] : memref<2x128x384xf32, #tpu.memory_space<vmem>>, vector<1x128x128xf32>
    %426 = vector.shape_cast %425 : vector<1x128x128xf32> to vector<128x128xf32>
    %cst_242 = arith.constant dense<0.000000e+00> : vector<8x128xf32>
    %427 = tpu.matmul %419, %426, %cst_242 {dimension_numbers = #tpu.dot_dimension_numbers<[1], [0], [0], [1], [0, 0, 1, 1], [], []>} : vector<8x128xf32>, vector<128x128xf32>, vector<8x128xf32> -> vector<8x128xf32>
    %c1_243 = arith.constant 1 : index
    %c0_244 = arith.constant 0 : index
    %c256_245 = arith.constant 256 : index
    %428 = vector.load %arg6[%c1_243, %c0_244, %c256_245] : memref<2x128x384xf32, #tpu.memory_space<vmem>>, vector<1x128x128xf32>
    %429 = vector.shape_cast %428 : vector<1x128x128xf32> to vector<128x128xf32>
    %cst_246 = arith.constant dense<0.000000e+00> : vector<8x128xf32>
    %430 = tpu.matmul %419, %429, %cst_246 {dimension_numbers = #tpu.dot_dimension_numbers<[1], [0], [0], [1], [0, 0, 1, 1], [], []>} : vector<8x128xf32>, vector<128x128xf32>, vector<8x128xf32> -> vector<8x128xf32>
    %c1_247 = arith.constant 1 : index
    %c0_248 = arith.constant 0 : index
    %c0_249 = arith.constant 0 : index
    %431 = vector.load %arg7[%c1_247, %c0_248, %c0_249] : memref<2x1x128xf32, #tpu.memory_space<vmem>>, vector<1x1x128xf32>
    %432 = vector.shape_cast %431 : vector<1x1x128xf32> to vector<1x128xf32>
    %433 = vector.broadcast %432 : vector<1x128xf32> to vector<8x128xf32>
    %434 = arith.addf %430, %433 : vector<8x128xf32>
    %435 = arith.index_cast %421 : i32 to index
    %c0_250 = arith.constant 0 : index
    %436 = vector.load %arg12[%435, %c0_250] : memref<64x384xf32, #tpu.memory_space<vmem>>, vector<8x128xf32>
    %437 = arith.addf %436, %424 : vector<8x128xf32>
    %438 = arith.negf %437 : vector<8x128xf32>
    %439 = math.exp %438 : vector<8x128xf32>
    %cst_251 = arith.constant 1.000000e+00 : f32
    %440 = vector.broadcast %cst_251 : f32 to vector<8x128xf32>
    %441 = arith.addf %440, %439 : vector<8x128xf32>
    %442 = arith.divf %440, %441 : vector<8x128xf32>
    %443 = arith.index_cast %421 : i32 to index
    %c128_252 = arith.constant 128 : index
    %444 = vector.load %arg12[%443, %c128_252] : memref<64x384xf32, #tpu.memory_space<vmem>>, vector<8x128xf32>
    %445 = arith.addf %444, %427 : vector<8x128xf32>
    %446 = arith.negf %445 : vector<8x128xf32>
    %447 = math.exp %446 : vector<8x128xf32>
    %cst_253 = arith.constant 1.000000e+00 : f32
    %448 = vector.broadcast %cst_253 : f32 to vector<8x128xf32>
    %449 = arith.addf %448, %447 : vector<8x128xf32>
    %450 = arith.divf %448, %449 : vector<8x128xf32>
    %451 = arith.index_cast %421 : i32 to index
    %c256_254 = arith.constant 256 : index
    %452 = vector.load %arg12[%451, %c256_254] : memref<64x384xf32, #tpu.memory_space<vmem>>, vector<8x128xf32>
    %453 = arith.mulf %442, %434 : vector<8x128xf32>
    %454 = arith.addf %452, %453 : vector<8x128xf32>
    %455 = math.tanh %454 : vector<8x128xf32>
    %cst_255 = arith.constant 1.000000e+00 : f32
    %456 = vector.broadcast %cst_255 : f32 to vector<8x128xf32>
    %457 = arith.subf %456, %450 : vector<8x128xf32>
    %458 = arith.mulf %457, %455 : vector<8x128xf32>
    %459 = arith.mulf %450, %419 : vector<8x128xf32>
    %460 = arith.addf %458, %459 : vector<8x128xf32>
    %c2_i32_256 = arith.constant 2 : i32
    %c8_i32_257 = arith.constant 8 : i32
    %461 = arith.muli %c2_i32_256, %c8_i32_257 : i32
    %462 = tpu.assume_multiple %461, 8 : i32
    %c1_258 = arith.constant 1 : index
    %c0_259 = arith.constant 0 : index
    %c0_260 = arith.constant 0 : index
    %463 = vector.load %arg6[%c1_258, %c0_259, %c0_260] : memref<2x128x384xf32, #tpu.memory_space<vmem>>, vector<1x128x128xf32>
    %464 = vector.shape_cast %463 : vector<1x128x128xf32> to vector<128x128xf32>
    %cst_261 = arith.constant dense<0.000000e+00> : vector<8x128xf32>
    %465 = tpu.matmul %460, %464, %cst_261 {dimension_numbers = #tpu.dot_dimension_numbers<[1], [0], [0], [1], [0, 0, 1, 1], [], []>} : vector<8x128xf32>, vector<128x128xf32>, vector<8x128xf32> -> vector<8x128xf32>
    %c1_262 = arith.constant 1 : index
    %c0_263 = arith.constant 0 : index
    %c128_264 = arith.constant 128 : index
    %466 = vector.load %arg6[%c1_262, %c0_263, %c128_264] : memref<2x128x384xf32, #tpu.memory_space<vmem>>, vector<1x128x128xf32>
    %467 = vector.shape_cast %466 : vector<1x128x128xf32> to vector<128x128xf32>
    %cst_265 = arith.constant dense<0.000000e+00> : vector<8x128xf32>
    %468 = tpu.matmul %460, %467, %cst_265 {dimension_numbers = #tpu.dot_dimension_numbers<[1], [0], [0], [1], [0, 0, 1, 1], [], []>} : vector<8x128xf32>, vector<128x128xf32>, vector<8x128xf32> -> vector<8x128xf32>
    %c1_266 = arith.constant 1 : index
    %c0_267 = arith.constant 0 : index
    %c256_268 = arith.constant 256 : index
    %469 = vector.load %arg6[%c1_266, %c0_267, %c256_268] : memref<2x128x384xf32, #tpu.memory_space<vmem>>, vector<1x128x128xf32>
    %470 = vector.shape_cast %469 : vector<1x128x128xf32> to vector<128x128xf32>
    %cst_269 = arith.constant dense<0.000000e+00> : vector<8x128xf32>
    %471 = tpu.matmul %460, %470, %cst_269 {dimension_numbers = #tpu.dot_dimension_numbers<[1], [0], [0], [1], [0, 0, 1, 1], [], []>} : vector<8x128xf32>, vector<128x128xf32>, vector<8x128xf32> -> vector<8x128xf32>
    %c1_270 = arith.constant 1 : index
    %c0_271 = arith.constant 0 : index
    %c0_272 = arith.constant 0 : index
    %472 = vector.load %arg7[%c1_270, %c0_271, %c0_272] : memref<2x1x128xf32, #tpu.memory_space<vmem>>, vector<1x1x128xf32>
    %473 = vector.shape_cast %472 : vector<1x1x128xf32> to vector<1x128xf32>
    %474 = vector.broadcast %473 : vector<1x128xf32> to vector<8x128xf32>
    %475 = arith.addf %471, %474 : vector<8x128xf32>
    %476 = arith.index_cast %462 : i32 to index
    %c0_273 = arith.constant 0 : index
    %477 = vector.load %arg12[%476, %c0_273] : memref<64x384xf32, #tpu.memory_space<vmem>>, vector<8x128xf32>
    %478 = arith.addf %477, %465 : vector<8x128xf32>
    %479 = arith.negf %478 : vector<8x128xf32>
    %480 = math.exp %479 : vector<8x128xf32>
    %cst_274 = arith.constant 1.000000e+00 : f32
    %481 = vector.broadcast %cst_274 : f32 to vector<8x128xf32>
    %482 = arith.addf %481, %480 : vector<8x128xf32>
    %483 = arith.divf %481, %482 : vector<8x128xf32>
    %484 = arith.index_cast %462 : i32 to index
    %c128_275 = arith.constant 128 : index
    %485 = vector.load %arg12[%484, %c128_275] : memref<64x384xf32, #tpu.memory_space<vmem>>, vector<8x128xf32>
    %486 = arith.addf %485, %468 : vector<8x128xf32>
    %487 = arith.negf %486 : vector<8x128xf32>
    %488 = math.exp %487 : vector<8x128xf32>
    %cst_276 = arith.constant 1.000000e+00 : f32
    %489 = vector.broadcast %cst_276 : f32 to vector<8x128xf32>
    %490 = arith.addf %489, %488 : vector<8x128xf32>
    %491 = arith.divf %489, %490 : vector<8x128xf32>
    %492 = arith.index_cast %462 : i32 to index
    %c256_277 = arith.constant 256 : index
    %493 = vector.load %arg12[%492, %c256_277] : memref<64x384xf32, #tpu.memory_space<vmem>>, vector<8x128xf32>
    %494 = arith.mulf %483, %475 : vector<8x128xf32>
    %495 = arith.addf %493, %494 : vector<8x128xf32>
    %496 = math.tanh %495 : vector<8x128xf32>
    %cst_278 = arith.constant 1.000000e+00 : f32
    %497 = vector.broadcast %cst_278 : f32 to vector<8x128xf32>
    %498 = arith.subf %497, %491 : vector<8x128xf32>
    %499 = arith.mulf %498, %496 : vector<8x128xf32>
    %500 = arith.mulf %491, %460 : vector<8x128xf32>
    %501 = arith.addf %499, %500 : vector<8x128xf32>
    %c3_i32_279 = arith.constant 3 : i32
    %c8_i32_280 = arith.constant 8 : i32
    %502 = arith.muli %c3_i32_279, %c8_i32_280 : i32
    %503 = tpu.assume_multiple %502, 8 : i32
    %c1_281 = arith.constant 1 : index
    %c0_282 = arith.constant 0 : index
    %c0_283 = arith.constant 0 : index
    %504 = vector.load %arg6[%c1_281, %c0_282, %c0_283] : memref<2x128x384xf32, #tpu.memory_space<vmem>>, vector<1x128x128xf32>
    %505 = vector.shape_cast %504 : vector<1x128x128xf32> to vector<128x128xf32>
    %cst_284 = arith.constant dense<0.000000e+00> : vector<8x128xf32>
    %506 = tpu.matmul %501, %505, %cst_284 {dimension_numbers = #tpu.dot_dimension_numbers<[1], [0], [0], [1], [0, 0, 1, 1], [], []>} : vector<8x128xf32>, vector<128x128xf32>, vector<8x128xf32> -> vector<8x128xf32>
    %c1_285 = arith.constant 1 : index
    %c0_286 = arith.constant 0 : index
    %c128_287 = arith.constant 128 : index
    %507 = vector.load %arg6[%c1_285, %c0_286, %c128_287] : memref<2x128x384xf32, #tpu.memory_space<vmem>>, vector<1x128x128xf32>
    %508 = vector.shape_cast %507 : vector<1x128x128xf32> to vector<128x128xf32>
    %cst_288 = arith.constant dense<0.000000e+00> : vector<8x128xf32>
    %509 = tpu.matmul %501, %508, %cst_288 {dimension_numbers = #tpu.dot_dimension_numbers<[1], [0], [0], [1], [0, 0, 1, 1], [], []>} : vector<8x128xf32>, vector<128x128xf32>, vector<8x128xf32> -> vector<8x128xf32>
    %c1_289 = arith.constant 1 : index
    %c0_290 = arith.constant 0 : index
    %c256_291 = arith.constant 256 : index
    %510 = vector.load %arg6[%c1_289, %c0_290, %c256_291] : memref<2x128x384xf32, #tpu.memory_space<vmem>>, vector<1x128x128xf32>
    %511 = vector.shape_cast %510 : vector<1x128x128xf32> to vector<128x128xf32>
    %cst_292 = arith.constant dense<0.000000e+00> : vector<8x128xf32>
    %512 = tpu.matmul %501, %511, %cst_292 {dimension_numbers = #tpu.dot_dimension_numbers<[1], [0], [0], [1], [0, 0, 1, 1], [], []>} : vector<8x128xf32>, vector<128x128xf32>, vector<8x128xf32> -> vector<8x128xf32>
    %c1_293 = arith.constant 1 : index
    %c0_294 = arith.constant 0 : index
    %c0_295 = arith.constant 0 : index
    %513 = vector.load %arg7[%c1_293, %c0_294, %c0_295] : memref<2x1x128xf32, #tpu.memory_space<vmem>>, vector<1x1x128xf32>
    %514 = vector.shape_cast %513 : vector<1x1x128xf32> to vector<1x128xf32>
    %515 = vector.broadcast %514 : vector<1x128xf32> to vector<8x128xf32>
    %516 = arith.addf %512, %515 : vector<8x128xf32>
    %517 = arith.index_cast %503 : i32 to index
    %c0_296 = arith.constant 0 : index
    %518 = vector.load %arg12[%517, %c0_296] : memref<64x384xf32, #tpu.memory_space<vmem>>, vector<8x128xf32>
    %519 = arith.addf %518, %506 : vector<8x128xf32>
    %520 = arith.negf %519 : vector<8x128xf32>
    %521 = math.exp %520 : vector<8x128xf32>
    %cst_297 = arith.constant 1.000000e+00 : f32
    %522 = vector.broadcast %cst_297 : f32 to vector<8x128xf32>
    %523 = arith.addf %522, %521 : vector<8x128xf32>
    %524 = arith.divf %522, %523 : vector<8x128xf32>
    %525 = arith.index_cast %503 : i32 to index
    %c128_298 = arith.constant 128 : index
    %526 = vector.load %arg12[%525, %c128_298] : memref<64x384xf32, #tpu.memory_space<vmem>>, vector<8x128xf32>
    %527 = arith.addf %526, %509 : vector<8x128xf32>
    %528 = arith.negf %527 : vector<8x128xf32>
    %529 = math.exp %528 : vector<8x128xf32>
    %cst_299 = arith.constant 1.000000e+00 : f32
    %530 = vector.broadcast %cst_299 : f32 to vector<8x128xf32>
    %531 = arith.addf %530, %529 : vector<8x128xf32>
    %532 = arith.divf %530, %531 : vector<8x128xf32>
    %533 = arith.index_cast %503 : i32 to index
    %c256_300 = arith.constant 256 : index
    %534 = vector.load %arg12[%533, %c256_300] : memref<64x384xf32, #tpu.memory_space<vmem>>, vector<8x128xf32>
    %535 = arith.mulf %524, %516 : vector<8x128xf32>
    %536 = arith.addf %534, %535 : vector<8x128xf32>
    %537 = math.tanh %536 : vector<8x128xf32>
    %cst_301 = arith.constant 1.000000e+00 : f32
    %538 = vector.broadcast %cst_301 : f32 to vector<8x128xf32>
    %539 = arith.subf %538, %532 : vector<8x128xf32>
    %540 = arith.mulf %539, %537 : vector<8x128xf32>
    %541 = arith.mulf %532, %501 : vector<8x128xf32>
    %542 = arith.addf %540, %541 : vector<8x128xf32>
    %c4_i32_302 = arith.constant 4 : i32
    %c8_i32_303 = arith.constant 8 : i32
    %543 = arith.muli %c4_i32_302, %c8_i32_303 : i32
    %544 = tpu.assume_multiple %543, 8 : i32
    %c1_304 = arith.constant 1 : index
    %c0_305 = arith.constant 0 : index
    %c0_306 = arith.constant 0 : index
    %545 = vector.load %arg6[%c1_304, %c0_305, %c0_306] : memref<2x128x384xf32, #tpu.memory_space<vmem>>, vector<1x128x128xf32>
    %546 = vector.shape_cast %545 : vector<1x128x128xf32> to vector<128x128xf32>
    %cst_307 = arith.constant dense<0.000000e+00> : vector<8x128xf32>
    %547 = tpu.matmul %542, %546, %cst_307 {dimension_numbers = #tpu.dot_dimension_numbers<[1], [0], [0], [1], [0, 0, 1, 1], [], []>} : vector<8x128xf32>, vector<128x128xf32>, vector<8x128xf32> -> vector<8x128xf32>
    %c1_308 = arith.constant 1 : index
    %c0_309 = arith.constant 0 : index
    %c128_310 = arith.constant 128 : index
    %548 = vector.load %arg6[%c1_308, %c0_309, %c128_310] : memref<2x128x384xf32, #tpu.memory_space<vmem>>, vector<1x128x128xf32>
    %549 = vector.shape_cast %548 : vector<1x128x128xf32> to vector<128x128xf32>
    %cst_311 = arith.constant dense<0.000000e+00> : vector<8x128xf32>
    %550 = tpu.matmul %542, %549, %cst_311 {dimension_numbers = #tpu.dot_dimension_numbers<[1], [0], [0], [1], [0, 0, 1, 1], [], []>} : vector<8x128xf32>, vector<128x128xf32>, vector<8x128xf32> -> vector<8x128xf32>
    %c1_312 = arith.constant 1 : index
    %c0_313 = arith.constant 0 : index
    %c256_314 = arith.constant 256 : index
    %551 = vector.load %arg6[%c1_312, %c0_313, %c256_314] : memref<2x128x384xf32, #tpu.memory_space<vmem>>, vector<1x128x128xf32>
    %552 = vector.shape_cast %551 : vector<1x128x128xf32> to vector<128x128xf32>
    %cst_315 = arith.constant dense<0.000000e+00> : vector<8x128xf32>
    %553 = tpu.matmul %542, %552, %cst_315 {dimension_numbers = #tpu.dot_dimension_numbers<[1], [0], [0], [1], [0, 0, 1, 1], [], []>} : vector<8x128xf32>, vector<128x128xf32>, vector<8x128xf32> -> vector<8x128xf32>
    %c1_316 = arith.constant 1 : index
    %c0_317 = arith.constant 0 : index
    %c0_318 = arith.constant 0 : index
    %554 = vector.load %arg7[%c1_316, %c0_317, %c0_318] : memref<2x1x128xf32, #tpu.memory_space<vmem>>, vector<1x1x128xf32>
    %555 = vector.shape_cast %554 : vector<1x1x128xf32> to vector<1x128xf32>
    %556 = vector.broadcast %555 : vector<1x128xf32> to vector<8x128xf32>
    %557 = arith.addf %553, %556 : vector<8x128xf32>
    %558 = arith.index_cast %544 : i32 to index
    %c0_319 = arith.constant 0 : index
    %559 = vector.load %arg12[%558, %c0_319] : memref<64x384xf32, #tpu.memory_space<vmem>>, vector<8x128xf32>
    %560 = arith.addf %559, %547 : vector<8x128xf32>
    %561 = arith.negf %560 : vector<8x128xf32>
    %562 = math.exp %561 : vector<8x128xf32>
    %cst_320 = arith.constant 1.000000e+00 : f32
    %563 = vector.broadcast %cst_320 : f32 to vector<8x128xf32>
    %564 = arith.addf %563, %562 : vector<8x128xf32>
    %565 = arith.divf %563, %564 : vector<8x128xf32>
    %566 = arith.index_cast %544 : i32 to index
    %c128_321 = arith.constant 128 : index
    %567 = vector.load %arg12[%566, %c128_321] : memref<64x384xf32, #tpu.memory_space<vmem>>, vector<8x128xf32>
    %568 = arith.addf %567, %550 : vector<8x128xf32>
    %569 = arith.negf %568 : vector<8x128xf32>
    %570 = math.exp %569 : vector<8x128xf32>
    %cst_322 = arith.constant 1.000000e+00 : f32
    %571 = vector.broadcast %cst_322 : f32 to vector<8x128xf32>
    %572 = arith.addf %571, %570 : vector<8x128xf32>
    %573 = arith.divf %571, %572 : vector<8x128xf32>
    %574 = arith.index_cast %544 : i32 to index
    %c256_323 = arith.constant 256 : index
    %575 = vector.load %arg12[%574, %c256_323] : memref<64x384xf32, #tpu.memory_space<vmem>>, vector<8x128xf32>
    %576 = arith.mulf %565, %557 : vector<8x128xf32>
    %577 = arith.addf %575, %576 : vector<8x128xf32>
    %578 = math.tanh %577 : vector<8x128xf32>
    %cst_324 = arith.constant 1.000000e+00 : f32
    %579 = vector.broadcast %cst_324 : f32 to vector<8x128xf32>
    %580 = arith.subf %579, %573 : vector<8x128xf32>
    %581 = arith.mulf %580, %578 : vector<8x128xf32>
    %582 = arith.mulf %573, %542 : vector<8x128xf32>
    %583 = arith.addf %581, %582 : vector<8x128xf32>
    %c5_i32_325 = arith.constant 5 : i32
    %c8_i32_326 = arith.constant 8 : i32
    %584 = arith.muli %c5_i32_325, %c8_i32_326 : i32
    %585 = tpu.assume_multiple %584, 8 : i32
    %c1_327 = arith.constant 1 : index
    %c0_328 = arith.constant 0 : index
    %c0_329 = arith.constant 0 : index
    %586 = vector.load %arg6[%c1_327, %c0_328, %c0_329] : memref<2x128x384xf32, #tpu.memory_space<vmem>>, vector<1x128x128xf32>
    %587 = vector.shape_cast %586 : vector<1x128x128xf32> to vector<128x128xf32>
    %cst_330 = arith.constant dense<0.000000e+00> : vector<8x128xf32>
    %588 = tpu.matmul %583, %587, %cst_330 {dimension_numbers = #tpu.dot_dimension_numbers<[1], [0], [0], [1], [0, 0, 1, 1], [], []>} : vector<8x128xf32>, vector<128x128xf32>, vector<8x128xf32> -> vector<8x128xf32>
    %c1_331 = arith.constant 1 : index
    %c0_332 = arith.constant 0 : index
    %c128_333 = arith.constant 128 : index
    %589 = vector.load %arg6[%c1_331, %c0_332, %c128_333] : memref<2x128x384xf32, #tpu.memory_space<vmem>>, vector<1x128x128xf32>
    %590 = vector.shape_cast %589 : vector<1x128x128xf32> to vector<128x128xf32>
    %cst_334 = arith.constant dense<0.000000e+00> : vector<8x128xf32>
    %591 = tpu.matmul %583, %590, %cst_334 {dimension_numbers = #tpu.dot_dimension_numbers<[1], [0], [0], [1], [0, 0, 1, 1], [], []>} : vector<8x128xf32>, vector<128x128xf32>, vector<8x128xf32> -> vector<8x128xf32>
    %c1_335 = arith.constant 1 : index
    %c0_336 = arith.constant 0 : index
    %c256_337 = arith.constant 256 : index
    %592 = vector.load %arg6[%c1_335, %c0_336, %c256_337] : memref<2x128x384xf32, #tpu.memory_space<vmem>>, vector<1x128x128xf32>
    %593 = vector.shape_cast %592 : vector<1x128x128xf32> to vector<128x128xf32>
    %cst_338 = arith.constant dense<0.000000e+00> : vector<8x128xf32>
    %594 = tpu.matmul %583, %593, %cst_338 {dimension_numbers = #tpu.dot_dimension_numbers<[1], [0], [0], [1], [0, 0, 1, 1], [], []>} : vector<8x128xf32>, vector<128x128xf32>, vector<8x128xf32> -> vector<8x128xf32>
    %c1_339 = arith.constant 1 : index
    %c0_340 = arith.constant 0 : index
    %c0_341 = arith.constant 0 : index
    %595 = vector.load %arg7[%c1_339, %c0_340, %c0_341] : memref<2x1x128xf32, #tpu.memory_space<vmem>>, vector<1x1x128xf32>
    %596 = vector.shape_cast %595 : vector<1x1x128xf32> to vector<1x128xf32>
    %597 = vector.broadcast %596 : vector<1x128xf32> to vector<8x128xf32>
    %598 = arith.addf %594, %597 : vector<8x128xf32>
    %599 = arith.index_cast %585 : i32 to index
    %c0_342 = arith.constant 0 : index
    %600 = vector.load %arg12[%599, %c0_342] : memref<64x384xf32, #tpu.memory_space<vmem>>, vector<8x128xf32>
    %601 = arith.addf %600, %588 : vector<8x128xf32>
    %602 = arith.negf %601 : vector<8x128xf32>
    %603 = math.exp %602 : vector<8x128xf32>
    %cst_343 = arith.constant 1.000000e+00 : f32
    %604 = vector.broadcast %cst_343 : f32 to vector<8x128xf32>
    %605 = arith.addf %604, %603 : vector<8x128xf32>
    %606 = arith.divf %604, %605 : vector<8x128xf32>
    %607 = arith.index_cast %585 : i32 to index
    %c128_344 = arith.constant 128 : index
    %608 = vector.load %arg12[%607, %c128_344] : memref<64x384xf32, #tpu.memory_space<vmem>>, vector<8x128xf32>
    %609 = arith.addf %608, %591 : vector<8x128xf32>
    %610 = arith.negf %609 : vector<8x128xf32>
    %611 = math.exp %610 : vector<8x128xf32>
    %cst_345 = arith.constant 1.000000e+00 : f32
    %612 = vector.broadcast %cst_345 : f32 to vector<8x128xf32>
    %613 = arith.addf %612, %611 : vector<8x128xf32>
    %614 = arith.divf %612, %613 : vector<8x128xf32>
    %615 = arith.index_cast %585 : i32 to index
    %c256_346 = arith.constant 256 : index
    %616 = vector.load %arg12[%615, %c256_346] : memref<64x384xf32, #tpu.memory_space<vmem>>, vector<8x128xf32>
    %617 = arith.mulf %606, %598 : vector<8x128xf32>
    %618 = arith.addf %616, %617 : vector<8x128xf32>
    %619 = math.tanh %618 : vector<8x128xf32>
    %cst_347 = arith.constant 1.000000e+00 : f32
    %620 = vector.broadcast %cst_347 : f32 to vector<8x128xf32>
    %621 = arith.subf %620, %614 : vector<8x128xf32>
    %622 = arith.mulf %621, %619 : vector<8x128xf32>
    %623 = arith.mulf %614, %583 : vector<8x128xf32>
    %624 = arith.addf %622, %623 : vector<8x128xf32>
    %c6_i32_348 = arith.constant 6 : i32
    %c8_i32_349 = arith.constant 8 : i32
    %625 = arith.muli %c6_i32_348, %c8_i32_349 : i32
    %626 = tpu.assume_multiple %625, 8 : i32
    %c1_350 = arith.constant 1 : index
    %c0_351 = arith.constant 0 : index
    %c0_352 = arith.constant 0 : index
    %627 = vector.load %arg6[%c1_350, %c0_351, %c0_352] : memref<2x128x384xf32, #tpu.memory_space<vmem>>, vector<1x128x128xf32>
    %628 = vector.shape_cast %627 : vector<1x128x128xf32> to vector<128x128xf32>
    %cst_353 = arith.constant dense<0.000000e+00> : vector<8x128xf32>
    %629 = tpu.matmul %624, %628, %cst_353 {dimension_numbers = #tpu.dot_dimension_numbers<[1], [0], [0], [1], [0, 0, 1, 1], [], []>} : vector<8x128xf32>, vector<128x128xf32>, vector<8x128xf32> -> vector<8x128xf32>
    %c1_354 = arith.constant 1 : index
    %c0_355 = arith.constant 0 : index
    %c128_356 = arith.constant 128 : index
    %630 = vector.load %arg6[%c1_354, %c0_355, %c128_356] : memref<2x128x384xf32, #tpu.memory_space<vmem>>, vector<1x128x128xf32>
    %631 = vector.shape_cast %630 : vector<1x128x128xf32> to vector<128x128xf32>
    %cst_357 = arith.constant dense<0.000000e+00> : vector<8x128xf32>
    %632 = tpu.matmul %624, %631, %cst_357 {dimension_numbers = #tpu.dot_dimension_numbers<[1], [0], [0], [1], [0, 0, 1, 1], [], []>} : vector<8x128xf32>, vector<128x128xf32>, vector<8x128xf32> -> vector<8x128xf32>
    %c1_358 = arith.constant 1 : index
    %c0_359 = arith.constant 0 : index
    %c256_360 = arith.constant 256 : index
    %633 = vector.load %arg6[%c1_358, %c0_359, %c256_360] : memref<2x128x384xf32, #tpu.memory_space<vmem>>, vector<1x128x128xf32>
    %634 = vector.shape_cast %633 : vector<1x128x128xf32> to vector<128x128xf32>
    %cst_361 = arith.constant dense<0.000000e+00> : vector<8x128xf32>
    %635 = tpu.matmul %624, %634, %cst_361 {dimension_numbers = #tpu.dot_dimension_numbers<[1], [0], [0], [1], [0, 0, 1, 1], [], []>} : vector<8x128xf32>, vector<128x128xf32>, vector<8x128xf32> -> vector<8x128xf32>
    %c1_362 = arith.constant 1 : index
    %c0_363 = arith.constant 0 : index
    %c0_364 = arith.constant 0 : index
    %636 = vector.load %arg7[%c1_362, %c0_363, %c0_364] : memref<2x1x128xf32, #tpu.memory_space<vmem>>, vector<1x1x128xf32>
    %637 = vector.shape_cast %636 : vector<1x1x128xf32> to vector<1x128xf32>
    %638 = vector.broadcast %637 : vector<1x128xf32> to vector<8x128xf32>
    %639 = arith.addf %635, %638 : vector<8x128xf32>
    %640 = arith.index_cast %626 : i32 to index
    %c0_365 = arith.constant 0 : index
    %641 = vector.load %arg12[%640, %c0_365] : memref<64x384xf32, #tpu.memory_space<vmem>>, vector<8x128xf32>
    %642 = arith.addf %641, %629 : vector<8x128xf32>
    %643 = arith.negf %642 : vector<8x128xf32>
    %644 = math.exp %643 : vector<8x128xf32>
    %cst_366 = arith.constant 1.000000e+00 : f32
    %645 = vector.broadcast %cst_366 : f32 to vector<8x128xf32>
    %646 = arith.addf %645, %644 : vector<8x128xf32>
    %647 = arith.divf %645, %646 : vector<8x128xf32>
    %648 = arith.index_cast %626 : i32 to index
    %c128_367 = arith.constant 128 : index
    %649 = vector.load %arg12[%648, %c128_367] : memref<64x384xf32, #tpu.memory_space<vmem>>, vector<8x128xf32>
    %650 = arith.addf %649, %632 : vector<8x128xf32>
    %651 = arith.negf %650 : vector<8x128xf32>
    %652 = math.exp %651 : vector<8x128xf32>
    %cst_368 = arith.constant 1.000000e+00 : f32
    %653 = vector.broadcast %cst_368 : f32 to vector<8x128xf32>
    %654 = arith.addf %653, %652 : vector<8x128xf32>
    %655 = arith.divf %653, %654 : vector<8x128xf32>
    %656 = arith.index_cast %626 : i32 to index
    %c256_369 = arith.constant 256 : index
    %657 = vector.load %arg12[%656, %c256_369] : memref<64x384xf32, #tpu.memory_space<vmem>>, vector<8x128xf32>
    %658 = arith.mulf %647, %639 : vector<8x128xf32>
    %659 = arith.addf %657, %658 : vector<8x128xf32>
    %660 = math.tanh %659 : vector<8x128xf32>
    %cst_370 = arith.constant 1.000000e+00 : f32
    %661 = vector.broadcast %cst_370 : f32 to vector<8x128xf32>
    %662 = arith.subf %661, %655 : vector<8x128xf32>
    %663 = arith.mulf %662, %660 : vector<8x128xf32>
    %664 = arith.mulf %655, %624 : vector<8x128xf32>
    %665 = arith.addf %663, %664 : vector<8x128xf32>
    %c7_i32_371 = arith.constant 7 : i32
    %c8_i32_372 = arith.constant 8 : i32
    %666 = arith.muli %c7_i32_371, %c8_i32_372 : i32
    %667 = tpu.assume_multiple %666, 8 : i32
    %c1_373 = arith.constant 1 : index
    %c0_374 = arith.constant 0 : index
    %c0_375 = arith.constant 0 : index
    %668 = vector.load %arg6[%c1_373, %c0_374, %c0_375] : memref<2x128x384xf32, #tpu.memory_space<vmem>>, vector<1x128x128xf32>
    %669 = vector.shape_cast %668 : vector<1x128x128xf32> to vector<128x128xf32>
    %cst_376 = arith.constant dense<0.000000e+00> : vector<8x128xf32>
    %670 = tpu.matmul %665, %669, %cst_376 {dimension_numbers = #tpu.dot_dimension_numbers<[1], [0], [0], [1], [0, 0, 1, 1], [], []>} : vector<8x128xf32>, vector<128x128xf32>, vector<8x128xf32> -> vector<8x128xf32>
    %c1_377 = arith.constant 1 : index
    %c0_378 = arith.constant 0 : index
    %c128_379 = arith.constant 128 : index
    %671 = vector.load %arg6[%c1_377, %c0_378, %c128_379] : memref<2x128x384xf32, #tpu.memory_space<vmem>>, vector<1x128x128xf32>
    %672 = vector.shape_cast %671 : vector<1x128x128xf32> to vector<128x128xf32>
    %cst_380 = arith.constant dense<0.000000e+00> : vector<8x128xf32>
    %673 = tpu.matmul %665, %672, %cst_380 {dimension_numbers = #tpu.dot_dimension_numbers<[1], [0], [0], [1], [0, 0, 1, 1], [], []>} : vector<8x128xf32>, vector<128x128xf32>, vector<8x128xf32> -> vector<8x128xf32>
    %c1_381 = arith.constant 1 : index
    %c0_382 = arith.constant 0 : index
    %c256_383 = arith.constant 256 : index
    %674 = vector.load %arg6[%c1_381, %c0_382, %c256_383] : memref<2x128x384xf32, #tpu.memory_space<vmem>>, vector<1x128x128xf32>
    %675 = vector.shape_cast %674 : vector<1x128x128xf32> to vector<128x128xf32>
    %cst_384 = arith.constant dense<0.000000e+00> : vector<8x128xf32>
    %676 = tpu.matmul %665, %675, %cst_384 {dimension_numbers = #tpu.dot_dimension_numbers<[1], [0], [0], [1], [0, 0, 1, 1], [], []>} : vector<8x128xf32>, vector<128x128xf32>, vector<8x128xf32> -> vector<8x128xf32>
    %c1_385 = arith.constant 1 : index
    %c0_386 = arith.constant 0 : index
    %c0_387 = arith.constant 0 : index
    %677 = vector.load %arg7[%c1_385, %c0_386, %c0_387] : memref<2x1x128xf32, #tpu.memory_space<vmem>>, vector<1x1x128xf32>
    %678 = vector.shape_cast %677 : vector<1x1x128xf32> to vector<1x128xf32>
    %679 = vector.broadcast %678 : vector<1x128xf32> to vector<8x128xf32>
    %680 = arith.addf %676, %679 : vector<8x128xf32>
    %681 = arith.index_cast %667 : i32 to index
    %c0_388 = arith.constant 0 : index
    %682 = vector.load %arg12[%681, %c0_388] : memref<64x384xf32, #tpu.memory_space<vmem>>, vector<8x128xf32>
    %683 = arith.addf %682, %670 : vector<8x128xf32>
    %684 = arith.negf %683 : vector<8x128xf32>
    %685 = math.exp %684 : vector<8x128xf32>
    %cst_389 = arith.constant 1.000000e+00 : f32
    %686 = vector.broadcast %cst_389 : f32 to vector<8x128xf32>
    %687 = arith.addf %686, %685 : vector<8x128xf32>
    %688 = arith.divf %686, %687 : vector<8x128xf32>
    %689 = arith.index_cast %667 : i32 to index
    %c128_390 = arith.constant 128 : index
    %690 = vector.load %arg12[%689, %c128_390] : memref<64x384xf32, #tpu.memory_space<vmem>>, vector<8x128xf32>
    %691 = arith.addf %690, %673 : vector<8x128xf32>
    %692 = arith.negf %691 : vector<8x128xf32>
    %693 = math.exp %692 : vector<8x128xf32>
    %cst_391 = arith.constant 1.000000e+00 : f32
    %694 = vector.broadcast %cst_391 : f32 to vector<8x128xf32>
    %695 = arith.addf %694, %693 : vector<8x128xf32>
    %696 = arith.divf %694, %695 : vector<8x128xf32>
    %697 = arith.index_cast %667 : i32 to index
    %c256_392 = arith.constant 256 : index
    %698 = vector.load %arg12[%697, %c256_392] : memref<64x384xf32, #tpu.memory_space<vmem>>, vector<8x128xf32>
    %699 = arith.mulf %688, %680 : vector<8x128xf32>
    %700 = arith.addf %698, %699 : vector<8x128xf32>
    %701 = math.tanh %700 : vector<8x128xf32>
    %cst_393 = arith.constant 1.000000e+00 : f32
    %702 = vector.broadcast %cst_393 : f32 to vector<8x128xf32>
    %703 = arith.subf %702, %696 : vector<8x128xf32>
    %704 = arith.mulf %703, %701 : vector<8x128xf32>
    %705 = arith.mulf %696, %665 : vector<8x128xf32>
    %706 = arith.addf %704, %705 : vector<8x128xf32>
    %c8_i32_394 = arith.constant 8 : i32
    %c0_395 = arith.constant 0 : index
    %c0_396 = arith.constant 0 : index
    %707 = vector.load %arg8[%c0_395, %c0_396] : memref<128x128xf32, #tpu.memory_space<vmem>>, vector<128x128xf32>
    %cst_397 = arith.constant dense<0.000000e+00> : vector<8x128xf32>
    %708 = tpu.matmul %706, %707, %cst_397 {dimension_numbers = #tpu.dot_dimension_numbers<[1], [0], [0], [1], [0, 0, 1, 1], [], []>} : vector<8x128xf32>, vector<128x128xf32>, vector<8x128xf32> -> vector<8x128xf32>
    %c0_398 = arith.constant 0 : index
    %c0_399 = arith.constant 0 : index
    %709 = vector.load %arg9[%c0_398, %c0_399] : memref<1x128xf32, #tpu.memory_space<vmem>>, vector<1x128xf32>
    %710 = vector.broadcast %709 : vector<1x128xf32> to vector<8x128xf32>
    %711 = arith.addf %708, %710 : vector<8x128xf32>
    %c0_400 = arith.constant 0 : index
    %c0_401 = arith.constant 0 : index
    %712 = vector.load %arg10[%c0_400, %c0_401] : memref<8x128xf32, #tpu.memory_space<vmem>>, vector<8x128xf32>
    tpu.vector_store %arg10[%c0_400, %c0_401], %711 {strides = array<i32>} : memref<8x128xf32, #tpu.memory_space<vmem>>, vector<8x128xf32>,
    return
  }
  func.func @transform_0(%arg0: i32) -> (i32, i32, i32) {
    %c0_i32 = arith.constant 0 : i32
    %c0_i32_0 = arith.constant 0 : i32
    %c0_i32_1 = arith.constant 0 : i32
    return %c0_i32, %arg0, %c0_i32_0 : i32, i32, i32
  }
  func.func @transform_1(%arg0: i32) -> (i32, i32) {
    %c0_i32 = arith.constant 0 : i32
    %c0_i32_0 = arith.constant 0 : i32
    %c0_i32_1 = arith.constant 0 : i32
    return %c0_i32, %c0_i32_0 : i32, i32
  }
  func.func @transform_2(%arg0: i32) -> (i32, i32) {
    %c0_i32 = arith.constant 0 : i32
    %c0_i32_0 = arith.constant 0 : i32
    %c0_i32_1 = arith.constant 0 : i32
    return %c0_i32, %c0_i32_0 : i32, i32
  }
  func.func @transform_3(%arg0: i32) -> (i32, i32, i32) {
    %c0_i32 = arith.constant 0 : i32
    %c0_i32_0 = arith.constant 0 : i32
    %c0_i32_1 = arith.constant 0 : i32
    %c0_i32_2 = arith.constant 0 : i32
    return %c0_i32, %c0_i32_0, %c0_i32_1 : i32, i32, i32
  }
  func.func @transform_4(%arg0: i32) -> (i32, i32, i32) {
    %c0_i32 = arith.constant 0 : i32
    %c0_i32_0 = arith.constant 0 : i32
    %c0_i32_1 = arith.constant 0 : i32
    %c0_i32_2 = arith.constant 0 : i32
    return %c0_i32, %c0_i32_0, %c0_i32_1 : i32, i32, i32
  }
  func.func @transform_5(%arg0: i32) -> (i32, i32, i32) {
    %c0_i32 = arith.constant 0 : i32
    %c0_i32_0 = arith.constant 0 : i32
    %c0_i32_1 = arith.constant 0 : i32
    %c0_i32_2 = arith.constant 0 : i32
    return %c0_i32, %c0_i32_0, %c0_i32_1 : i32, i32, i32
  }
  func.func @transform_6(%arg0: i32) -> (i32, i32, i32) {
    %c0_i32 = arith.constant 0 : i32
    %c0_i32_0 = arith.constant 0 : i32
    %c0_i32_1 = arith.constant 0 : i32
    %c0_i32_2 = arith.constant 0 : i32
    return %c0_i32, %c0_i32_0, %c0_i32_1 : i32, i32, i32
  }
  func.func @transform_7(%arg0: i32) -> (i32, i32) {
    %c0_i32 = arith.constant 0 : i32
    %c0_i32_0 = arith.constant 0 : i32
    %c0_i32_1 = arith.constant 0 : i32
    return %c0_i32, %c0_i32_0 : i32, i32
  }
  func.func @transform_8(%arg0: i32) -> (i32, i32) {
    %c0_i32 = arith.constant 0 : i32
    %c0_i32_0 = arith.constant 0 : i32
    %c0_i32_1 = arith.constant 0 : i32
    return %c0_i32, %c0_i32_0 : i32, i32
  }
  func.func @transform_9(%arg0: i32) -> (i32, i32) {
    %c0_i32 = arith.constant 0 : i32
    %c0_i32_0 = arith.constant 0 : i32
    return %arg0, %c0_i32 : i32, i32
  }
}

</mosaic_0001>

<bundles_post_ra>
// kernel: tpu_custom_call.1
= control target key start
LH: loop header
LB: loop body
LE: loop exit
PB: predicated region body
PF: predicated region fallthrough
CT: control target
= control target key end

     0   :  { %14 = vsyncpa [#allocation5], 0  ;;  %s4957_s0 = inlined_call_operand.hbm [shape: f32[8,8,8], index: 0, kind: input, shape index: {}]   ;;  %s4958_s1 = inlined_call_operand.hbm [shape: f32[8,384], index: 1, kind: input, shape index: {}]   ;;  %s4959_s2 = inlined_call_operand.hbm [shape: f32[1,384], index: 2, kind: input, shape index: {}]   ;;  %s4960_s3 = inlined_call_operand.hbm [shape: f32[1,128,384], index: 3, kind: input, shape index: {}]   ;;  %s4961_s4 = inlined_call_operand.vmem [shape: f32[1,1,384], index: 4, kind: input, shape index: {}]   ;;  %s4962_s5 = inlined_call_operand.hbm [shape: f32[2,128,384], index: 5, kind: input, shape index: {}]   ;;  %s4963_s6 = inlined_call_operand.vmem [shape: f32[2,1,128], index: 6, kind: input, shape index: {}]   ;;  %s4964_s7 = inlined_call_operand.hbm [shape: f32[128,128], index: 7, kind: input, shape index: {}]   ;;  %s4965_s8 = inlined_call_operand.vmem [shape: f32[1,128], index: 8, kind: input, shape index: {}]   ;;  %s4966_s9 = inlined_call_operand.hbm [shape: f32[8,128], index: 9, kind: output, shape index: {}]  }
   0x1   :  { %15 = vsyncpa [#allocation8], 0 }
   0x2   :  { %16 = vsyncpa [#allocation11], 0 }
   0x3   :  { %17 = vsyncpa [#allocation14], 0  ;;  %s37_s11 = sshll.u32 %s4958_s1, 4  ;;  %s38_s11 = int_to_ptr.hbm [resolvable:$true] %s37_s11 }
   0x4   :  { %18 = vsyncpa [#allocation6], 0  ;;  %s3329_s12 = smov [#allocation7]   ;;  %s58_s16 = sshll.u32 %s4960_s3, 4  ;;  %s59_s16 = int_to_ptr.hbm [resolvable:$true] %s58_s16 }
   0x5   :  { %s39_s13 = sshll.u32 %s3329_s12, 4  ;;  %s3330_s17 = smov [#allocation10]   ;;  %s40_s13 = int_to_ptr.vmem [resolvable:$true] %s39_s13 }
   0x6   :  { %42 = dma.hbm_to_vmem [thread:$0]  %s38_s11, 384, %s40_s13, [#allocation8]  }
   0x7   :  { %s60_s18 = sshll.u32 %s3330_s17, 4  ;;  %s3331_s19 = smov 384   ;;  %s61_s18 = int_to_ptr.vmem [resolvable:$true] %s60_s18 }
   0x8   :  { %s3332_s20 = smov 24   ;;  %s23_s1 = sshll.u32 %s4957_s0, 4  ;;  %s24_s1 = int_to_ptr.hbm [resolvable:$true] %s23_s1 }
   0x9   :  { %66 = dma.hbm_to_vmem [thread:$0]  %s59_s16, 6144, %s61_s18, [#allocation11], %s3331_s19, %s3331_s19, %s3332_s20  }
   0xa   :  { %s3333_s23 = smov [#allocation4]   ;;  %s48_s3 = sshll.u32 %s4959_s2, 4  ;;  %s49_s3 = int_to_ptr.hbm [resolvable:$true] %s48_s3 }
   0xb   :  { %s25_s24 = sshll.u32 %s3333_s23, 4  ;;  %s3334_s27 = smov 128   ;;  %s26_s24 = int_to_ptr.vmem [resolvable:$true] %s25_s24 }
   0xc   :  { %s3335_s28 = smov 8   ;;  %s3336_s29 = smov [#allocation9]  }
   0xd   :  { %31 = dma.hbm_to_vmem [thread:$0]  %s24_s1, 1024, %s26_s24, [#allocation5], %s3334_s27, %s3334_s27, %s3335_s28  }
   0xe   :  { %s50_s30 = sshll.u32 %s3336_s29, 4  ;;  %s73_s12 = sshll.u32 %s4962_s5, 4  ;;  %s51_s30 = int_to_ptr.vmem [resolvable:$true] %s50_s30  ;;  %s74_s12 = int_to_ptr.hbm [resolvable:$true] %s73_s12 }
   0xf   :  { %53 = dma.hbm_to_vmem [thread:$0]  %s49_s3, 48, %s51_s30, [#allocation8]  }
  0x10   :  { %s88_s14 = sshll.u32 %s4964_s7, 4  ;;  %s3337_s15 = smov [#allocation12]   ;;  %s89_s14 = int_to_ptr.hbm [resolvable:$true] %s88_s14 }
  0x11   :  { %s75_s16 = sshll.u32 %s3337_s15, 4  ;;  %s3338_s2 = smov [#allocation13]   ;;  %s76_s16 = int_to_ptr.vmem [resolvable:$true] %s75_s16 }
  0x12   :  { %81 = dma.hbm_to_vmem [thread:$0]  %s74_s12, 12288, %s76_s16, [#allocation11], %s3331_s19, %s3331_s19, %s3332_s20  }
  0x13   :  { %s90_s17 = sshll.u32 %s3338_s2, 4  ;;  %s91_s17 = int_to_ptr.vmem [resolvable:$true] %s90_s17 }
  0x14   :  { %96 = dma.hbm_to_vmem [thread:$0]  %s89_s14, 2048, %s91_s17, [#allocation14], %s3334_s27, %s3334_s27, %s3335_s28  }
  0x15   :  { %3319 = dma.done.wait [#allocation5], 1024  }
  0x16   :  { %3320 = vsyncadd [#allocation5], 4294966272 }
  0x17   :  { %3321 = dma.done.wait [#allocation8], 432  }
  0x18   :  { %3322 = vsyncadd [#allocation8], 4294966864 }
  0x19   :  { %3323 = dma.done.wait [#allocation11], 18432  }
  0x1a   :  { %3324 = vsyncadd [#allocation11], 4294948864 }
  0x1b   :  { %3325 = dma.done.wait [#allocation14], 2048  }
  0x1c   :  { %3326 = vsyncadd [#allocation14], 4294965248  ;;  %v3409_v0 = vld [vmem:[#allocation12 + $0x168] sm:$0xff]  ;;  %v3411_v1 = vld [vmem:[#allocation12 + $0x150] sm:$0xff]  ;;  %vm142_vm0 = vcmask 64512   ;;  %v4967_v39 = vmov 0.0  }
  0x1d   :  { %330 = vmatpush.msra.mxu3 %v3409_v0  ;;  %v3414_v2 = vld [vmem:[#allocation12 + $0x138] sm:$0xff]  ;;  %v131_v3 = vld [vmem:[#allocation7] sm:$0xff]  ;;  %v3429_v8 = vld [vmem:[#allocation12 + $0xf0] sm:$0xff]  ;;  %s3340_s14 = smov [#allocation15]   ;;  %s2842_s17 = sshll.u32 %s4966_s9, 4  ;;  %s2843_s17 = int_to_ptr.hbm [resolvable:$true] %s2842_s17 }
  0x1e   :  { %182 = vmatpush.msra.mxu0 %v131_v3  ;;  %v3417_v4 = vld [vmem:[#allocation4] sm:$0xff]  ;;  %2919 = vmatpush.msra.mxu1 %v131_v3  ;;  %v3427_v7 = vld [vmem:[#allocation12 + $0x178] sm:$0xff]  ;;  %v3437_v11 = vld [vmem:[#allocation4 + $0x8] sm:$0xff]  ;;  %s2840_s15 = sshll.u32 %s3340_s14, 4  ;;  %s2841_s15 = int_to_ptr.vmem [resolvable:$true] %s2840_s15 }
  0x1f   :  { %331 = vmatpush.msra.mxu3 %v3411_v1  ;;  %v3419_v5 = vld [vmem:[#allocation12 + $0x120] sm:$0xff]  ;;  %2862 = vmatmul.msk.f32.vlgmr.msra.gmra.mxu0 %vm142_vm0, %v3417_v4  ;;  %v3424_v6 = vld [vmem:[#allocation12 + $0x108] sm:$0xff]  ;;  %v3435_v10 = vld [vmem:[#allocation12 + $0xd8] sm:$0xff] }
  0x20   :  { %406 = vmatpush.msrb.mxu0 %v3427_v7  ;;  %v3432_v9 = vld [vmem:[#allocation12 + $0x160] sm:$0xff]  ;;  %v3440_v12 = vld [vmem:[#allocation12 + $0x148] sm:$0xff]  ;;  %v3445_v14 = vld [vmem:[#allocation12 + $0x130] sm:$0xff] }
  0x21   :  { %332 = vmatpush.msra.mxu3 %v3414_v2  ;;  %v3443_v13 = vld [vmem:[#allocation12 + $0xc0] sm:$0xff]  ;;  %v3450_v15 = vld [vmem:[#allocation12 + $0xa8] sm:$0xff]  ;;  %v3453_v16 = vld [vmem:[#allocation12 + $0x118] sm:$0xff] }
  0x22   :  { %407 = vmatpush.msrb.mxu0 %v3432_v9  ;;  %v3457_v17 = vld [vmem:[#allocation12 + $0x90] sm:$0xff]  ;;  %v3459_v18 = vld [vmem:[#allocation12 + $0x100] sm:$0xff]  ;;  %v3465_v20 = vld [vmem:[#allocation12 + $0x78] sm:$0xff] }
  0x23   :  { %333 = vmatpush.msra.mxu3 %v3419_v5  ;;  %v3462_v19 = vld [vmem:[#allocation4 + $0x10] sm:$0xff]  ;;  %v3467_v21 = vld [vmem:[#allocation12 + $0xe8] sm:$0xff]  ;;  %v3473_v24 = vld [vmem:[#allocation12 + $0x60] sm:$0xff] }
  0x24   :  { %408 = vmatpush.msrb.mxu0 %v3440_v12  ;;  %v3471_v22 = vld [vmem:[#allocation4 + $0x30] sm:$0xff]  ;;  %v132_v23 = vld [vmem:[#allocation7 + $0x8] sm:$0xff]  ;;  %v3491_v29 = vld [vmem:[#allocation12 + $0xa0] sm:$0xff] }
  0x25   :  { %334 = vmatpush.msra.mxu3 %v3424_v6  ;;  %v3477_v25 = vld [vmem:[#allocation12 + $0xd0] sm:$0xff]  ;;  %2868 = vmatmul.msk.f32.vlgmr.msra.gmra.mxu1 %vm142_vm0, %v3471_v22  ;;  %v3483_v26 = vld [vmem:[#allocation12 + $0x48] sm:$0xff]  ;;  %v3485_v27 = vld [vmem:[#allocation12 + $0xb8] sm:$0xff] }
  0x26   :  { %409 = vmatpush.msrb.mxu0 %v3445_v14  ;;  %223 = vmatpush.msrb.mxu1 %v132_v23  ;;  %v3489_v28 = vld [vmem:[#allocation12 + $0x30] sm:$0xff]  ;;  %v3495_v30 = vld [vmem:[#allocation4 + $0x18] sm:$0xff]  ;;  %v3500_v32 = vld [vmem:[#allocation12 + $0x88] sm:$0xff] }
  0x27   :  { %335 = vmatpush.msra.mxu3 %v3429_v8  ;;  %2863 = vmatmul.msk.f32.gmra.mxu0 %vm142_vm0, %v3437_v11  ;;  %v3498_v31 = vld [vmem:[#allocation12 + $0x18] sm:$0xff]  ;;  %v3507_v34 = vld [vmem:[#allocation12] sm:$0xff]  ;;  %v3511_v35 = vld [vmem:[#allocation12 + $0x70] sm:$0xff] }
  0x28   :  { %410 = vmatpush.msrb.mxu0 %v3453_v16  ;;  %496 = vmatpush.msra.mxu1 %v3409_v0  ;;  %v3505_v33 = vld [vmem:[#allocation4 + $0x38] sm:$0xff]  ;;  %v133_v36 = vld [vmem:[#allocation7 + $0x10] sm:$0xff]  ;;  %v3532_v42 = vld [vmem:[#allocation4 + $0x20] sm:$0xff] }
  0x29   :  { %336 = vmatpush.msra.mxu3 %v3435_v10  ;;  %v3517_v37 = vld [vmem:[#allocation12 + $0x170] sm:$0xff]  ;;  %v3519_v38 = vld [vmem:[#allocation12 + $0x58] sm:$0xff]  ;;  %264 = vmatpush.msra.mxu2 %v133_v36  ;;  %v3527_v41 = vld [vmem:[#allocation12 + $0x40] sm:$0xff] }
  0x2a   :  { %411 = vmatpush.msrb.mxu0 %v3459_v18  ;;  %497 = vmatpush.msra.mxu1 %v3411_v1  ;;  %v3525_v40 = vld [vmem:[#allocation12 + $0x158] sm:$0xff]  ;;  %v3535_v43 = vld [vmem:[#allocation12 + $0x140] sm:$0xff]  ;;  %v3537_v44 = vld [vmem:[#allocation12 + $0x28] sm:$0xff] }
  0x2b   :  { %337 = vmatpush.msra.mxu3 %v3443_v13  ;;  %2878 = vmatmul.msk.f32.vlgmr.msra.gmra.mxu2 %vm142_vm0, %v3417_v4  ;;  %v3543_v45 = vld [vmem:[#allocation12 + $0x128] sm:$0xff]  ;;  %v3547_v46 = vld [vmem:[#allocation12 + $0x10] sm:$0xff]  ;;  %v3559_v48 = vld [vmem:[#allocation12 + $0xf8] sm:$0xff] }
  0x2c   :  { %412 = vmatpush.msrb.mxu0 %v3467_v21  ;;  %498 = vmatpush.msra.mxu1 %v3414_v2  ;;  %v3553_v47 = vld [vmem:[#allocation12 + $0x110] sm:$0xff]  ;;  %v3568_v50 = vld [vmem:[#allocation12 + $0xe0] sm:$0xff]  ;;  %v3574_v51 = vld [vmem:[#allocation12 + $0xc8] sm:$0xff] }
  0x2d   :  { %338 = vmatpush.msra.mxu3 %v3450_v15  ;;  %2869 = vmatmul.msk.f32.gmra.mxu1 %vm142_vm0, %v3505_v33  ;;  %v3565_v49 = vld [vmem:[#allocation4 + $0x28] sm:$0xff]  ;;  %v3588_v53 = vld [vmem:[#allocation12 + $0x98] sm:$0xff]  ;;  %v3595_v54 = vld [vmem:[#allocation12 + $0x80] sm:$0xff] }
  0x2e   :  { %413 = vmatpush.msrb.mxu0 %v3477_v25  ;;  %532 = vmatpush.msrb.mxu2 %v3517_v37  ;;  %v3582_v52 = vld [vmem:[#allocation12 + $0xb0] sm:$0xff]  ;;  %v3601_v55 = vld [vmem:[#allocation12 + $0x68] sm:$0xff]  ;;  %v3614_v57 = vld [vmem:[#allocation12 + $0x38] sm:$0xff] }
  0x2f   :  { %339 = vmatpush.msra.mxu3 %v3457_v17  ;;  %2864 = vmatmul.msk.f32.gmra.mxu0 %vm142_vm0, %v3462_v19  ;;  %v3608_v56 = vld [vmem:[#allocation12 + $0x50] sm:$0xff]  ;;  %v3621_v58 = vld [vmem:[#allocation12 + $0x20] sm:$0xff]  ;;  %v3627_v59 = vld [vmem:[#allocation12 + $0x8] sm:$0xff] }
  0x30   :  { %414 = vmatpush.msrb.mxu0 %v3485_v27  ;;  %499 = vmatpush.msra.mxu1 %v3419_v5  ;;  %v134_v62 = vld [vmem:[#allocation9] sm:$0x7] }
  0x31   :  { %340 = vmatpush.msra.mxu3 %v3465_v20  ;;  %533 = vmatpush.msrb.mxu2 %v3525_v40  ;;  %v3730_v63 = vperm.slane %v134_v62, 0 }
  0x32   :  { %415 = vmatpush.msrb.mxu0 %v3491_v29  ;;  %500 = vmatpush.msra.mxu1 %v3424_v6 }
  0x33   :  { %341 = vmatpush.msra.mxu3 %v3473_v24  ;;  %2879 = vmatmul.msk.f32.gmra.mxu2 %vm142_vm0, %v3437_v11 }
  0x34   :  { %416 = vmatpush.msrb.mxu0 %v3500_v32  ;;  %501 = vmatpush.msra.mxu1 %v3429_v8 }
  0x35   :  { %342 = vmatpush.msra.mxu3 %v3483_v26  ;;  %2870 = vmatmul.msk.f32.vlgmr.msrb.gmra.mxu1 %vm142_vm0, %v3417_v4 }
  0x36   :  { %417 = vmatpush.msrb.mxu0 %v3511_v35  ;;  %534 = vmatpush.msrb.mxu2 %v3535_v43 }
  0x37   :  { %343 = vmatpush.msra.mxu3 %v3489_v28  ;;  %2865 = vmatmul.msk.f32.gmra.mxu0 %vm142_vm0, %v3495_v30 }
  0x38   :  { %418 = vmatpush.msrb.mxu0 %v3519_v38  ;;  %502 = vmatpush.msra.mxu1 %v3435_v10 }
  0x39   :  { %344 = vmatpush.msra.mxu3 %v3498_v31  ;;  %535 = vmatpush.msrb.mxu2 %v3543_v45 }
  0x3a   :  { %419 = vmatpush.msrb.mxu0 %v3527_v41  ;;  %503 = vmatpush.msra.mxu1 %v3443_v13 }
  0x3b   :  { %345 = vmatpush.msra.mxu3 %v3507_v34  ;;  %536 = vmatpush.msrb.mxu2 %v3553_v47 }
  0x3c   :  { %346 = vmatmul.f32.vlgmr.msra.gmra.mxu3 %v4967_v39  ;;  %420 = vmatpush.msrb.mxu0 %v3537_v44 }
  0x3d   :  { %366 = vmatpush.msrb.mxu3 %v3517_v37  ;;  %2871 = vmatmul.msk.f32.gmra.mxu1 %vm142_vm0, %v3437_v11 }
  0x3e   :  { %421 = vmatpush.msrb.mxu0 %v3547_v46  ;;  %537 = vmatpush.msrb.mxu2 %v3559_v48 }
  0x3f   :  { %367 = vmatpush.msrb.mxu3 %v3525_v40  ;;  %2866 = vmatmul.msk.f32.gmra.mxu0 %vm142_vm0, %v3532_v42 }
  0x40   :  { %663 = vmatpush.msra.mxu0 %v3409_v0  ;;  %2880 = vmatmul.msk.f32.gmra.mxu2 %vm142_vm0, %v3462_v19 }
  0x41   :  { %368 = vmatpush.msrb.mxu3 %v3535_v43  ;;  %504 = vmatpush.msra.mxu1 %v3450_v15 }
  0x42   :  { %664 = vmatpush.msra.mxu0 %v3411_v1  ;;  %538 = vmatpush.msrb.mxu2 %v3568_v50 }
  0x43   :  { %369 = vmatpush.msrb.mxu3 %v3543_v45  ;;  %505 = vmatpush.msra.mxu1 %v3457_v17 }
  0x44   :  { %665 = vmatpush.msra.mxu0 %v3414_v2  ;;  %539 = vmatpush.msrb.mxu2 %v3574_v51 }
  0x45   :  { %370 = vmatpush.msrb.mxu3 %v3553_v47  ;;  %2872 = vmatmul.msk.f32.gmra.mxu1 %vm142_vm0, %v3462_v19 }
  0x46   :  { %540 = vmatpush.msrb.mxu2 %v3582_v52  ;;  %506 = vmatpush.msra.mxu1 %v3465_v20 }
  0x47   :  { %371 = vmatpush.msrb.mxu3 %v3559_v48  ;;  %2867 = vmatmul.msk.f32.gmra.mxu0 %vm142_vm0, %v3565_v49 }
  0x48   :  { %666 = vmatpush.msra.mxu0 %v3419_v5  ;;  %541 = vmatpush.msrb.mxu2 %v3588_v53 }
  0x49   :  { %372 = vmatpush.msrb.mxu3 %v3568_v50  ;;  %2881 = vmatmul.msk.f32.gmra.mxu2 %vm142_vm0, %v3495_v30 }
  0x4a   :  { %507 = vmatpush.msra.mxu1 %v3473_v24  ;;  %542 = vmatpush.msrb.mxu2 %v3595_v54 }
  0x4b   :  { %373 = vmatpush.msrb.mxu3 %v3574_v51  ;;  %667 = vmatpush.msra.mxu0 %v3424_v6 }
  0x4c   :  { %508 = vmatpush.msra.mxu1 %v3483_v26  ;;  %543 = vmatpush.msrb.mxu2 %v3601_v55 }
  0x4d   :  { %374 = vmatpush.msrb.mxu3 %v3582_v52  ;;  %2873 = vmatmul.msk.f32.gmra.mxu1 %vm142_vm0, %v3495_v30 }
  0x4e   :  { %668 = vmatpush.msra.mxu0 %v3429_v8  ;;  %544 = vmatpush.msrb.mxu2 %v3608_v56 }
  0x4f   :  { %375 = vmatpush.msrb.mxu3 %v3588_v53  ;;  %422 = vmatmul.f32.vlgmr.msrb.gmra.mxu0 %v4967_v39 }
  0x50   :  { %509 = vmatpush.msra.mxu1 %v3489_v28  ;;  %669 = vmatpush.msra.mxu0 %v3435_v10 }
  0x51   :  { %376 = vmatpush.msrb.mxu3 %v3595_v54  ;;  %545 = vmatpush.msrb.mxu2 %v3614_v57 }
  0x52   :  { %2882 = vmatmul.msk.f32.gmra.mxu2 %vm142_vm0, %v3532_v42  ;;  %510 = vmatpush.msra.mxu1 %v3498_v31 }
  0x53   :  { %377 = vmatpush.msrb.mxu3 %v3601_v55  ;;  %546 = vmatpush.msrb.mxu2 %v3621_v58 }
  0x54   :  { %670 = vmatpush.msra.mxu0 %v3443_v13  ;;  %511 = vmatpush.msra.mxu1 %v3507_v34 }
  0x55   :  { %378 = vmatpush.msrb.mxu3 %v3608_v56  ;;  %2874 = vmatmul.msk.f32.gmra.mxu1 %vm142_vm0, %v3532_v42 }
  0x56   :  { %547 = vmatpush.msrb.mxu2 %v3627_v59  ;;  %699 = vmatpush.msrb.mxu1 %v3517_v37 }
  0x57   :  { %379 = vmatpush.msrb.mxu3 %v3614_v57  ;;  %671 = vmatpush.msra.mxu0 %v3450_v15 }
  0x58   :  { %739 = vmatpush.msra.mxu2 %v3427_v7  ;;  %700 = vmatpush.msrb.mxu1 %v3525_v40 }
  0x59   :  { %380 = vmatpush.msrb.mxu3 %v3621_v58  ;;  %672 = vmatpush.msra.mxu0 %v3457_v17 }
  0x5a   :  { %2883 = vmatmul.msk.f32.gmra.mxu2 %vm142_vm0, %v3565_v49  ;;  %701 = vmatpush.msrb.mxu1 %v3535_v43 }
  0x5b   :  { %381 = vmatpush.msrb.mxu3 %v3627_v59  ;;  %740 = vmatpush.msra.mxu2 %v3432_v9 }
  0x5c   :  { %382 = vmatmul.f32.vlgmr.msrb.gmra.mxu3 %v4967_v39  ;;  %673 = vmatpush.msra.mxu0 %v3465_v20  ;;  %v4007_v39 = vld [vmem:[#allocation12 + $0x68] sm:$0xff] }
  0x5d   :  { %572 = vmatpush.msra.mxu3 %v3427_v7  ;;  %741 = vmatpush.msra.mxu2 %v3440_v12 }
  0x5e   :  { %2875 = vmatmul.msk.f32.gmra.mxu1 %vm142_vm0, %v3565_v49  ;;  %674 = vmatpush.msra.mxu0 %v3473_v24 }
  0x5f   :  { %573 = vmatpush.msra.mxu3 %v3432_v9  ;;  %702 = vmatpush.msrb.mxu1 %v3543_v45 }
  0x60   :  { %742 = vmatpush.msra.mxu2 %v3445_v14  ;;  %675 = vmatpush.msra.mxu0 %v3483_v26 }
  0x61   :  { %574 = vmatpush.msra.mxu3 %v3440_v12  ;;  %703 = vmatpush.msrb.mxu1 %v3553_v47 }
  0x62   :  { %2884 = vmatmul.msk.f32.gmra.mxu2 %vm142_vm0, %v3471_v22  ;;  %676 = vmatpush.msra.mxu0 %v3489_v28  ;;  %v3751_v28 = vperm.slane %v134_v62, 1 }
  0x63   :  { %575 = vmatpush.msra.mxu3 %v3445_v14  ;;  %743 = vmatpush.msra.mxu2 %v3453_v16 }
  0x64   :  { %704 = vmatpush.msrb.mxu1 %v3559_v48  ;;  %677 = vmatpush.msra.mxu0 %v3498_v31 }
  0x65   :  { %576 = vmatpush.msra.mxu3 %v3453_v16  ;;  %744 = vmatpush.msra.mxu2 %v3459_v18 }
  0x66   :  { %2876 = vmatmul.msk.f32.gmra.mxu1 %vm142_vm0, %v3471_v22  ;;  %678 = vmatpush.msra.mxu0 %v3507_v34 }
  0x67   :  { %577 = vmatpush.msra.mxu3 %v3459_v18  ;;  %705 = vmatpush.msrb.mxu1 %v3568_v50 }
  0x68   :  { %745 = vmatpush.msra.mxu2 %v3467_v21  ;;  %866 = vmatpush.msrb.mxu0 %v3517_v37 }
  0x69   :  { %578 = vmatpush.msra.mxu3 %v3467_v21  ;;  %706 = vmatpush.msrb.mxu1 %v3574_v51 }
  0x6a   :  { %2885 = vmatmul.msk.f32.gmra.mxu2 %vm142_vm0, %v3505_v33  ;;  %867 = vmatpush.msrb.mxu0 %v3525_v40 }
  0x6b   :  { %579 = vmatpush.msra.mxu3 %v3477_v25  ;;  %746 = vmatpush.msra.mxu2 %v3477_v25 }
  0x6c   :  { %707 = vmatpush.msrb.mxu1 %v3582_v52  ;;  %868 = vmatpush.msrb.mxu0 %v3535_v43 }
  0x6d   :  { %580 = vmatpush.msra.mxu3 %v3485_v27  ;;  %747 = vmatpush.msra.mxu2 %v3485_v27 }
  0x6e   :  { %2877 = vmatmul.msk.f32.gmra.mxu1 %vm142_vm0, %v3505_v33  ;;  %869 = vmatpush.msrb.mxu0 %v3543_v45 }
  0x6f   :  { %581 = vmatpush.msra.mxu3 %v3491_v29  ;;  %708 = vmatpush.msrb.mxu1 %v3588_v53 }
  0x70   :  { %748 = vmatpush.msra.mxu2 %v3491_v29  ;;  %870 = vmatpush.msrb.mxu0 %v3553_v47  ;;  %v2932_v47 = vld [vmem:[%s4963_s6] ss:$0 sm:$0xff] }
  0x71   :  { %582 = vmatpush.msra.mxu3 %v3500_v32  ;;  %709 = vmatpush.msrb.mxu1 %v3595_v54 }
  0x72   :  { %749 = vmatpush.msra.mxu2 %v3500_v32  ;;  %871 = vmatpush.msrb.mxu0 %v3559_v48 }
  0x73   :  { %583 = vmatpush.msra.mxu3 %v3511_v35  ;;  %710 = vmatpush.msrb.mxu1 %v3601_v55 }
  0x74   :  { %750 = vmatpush.msra.mxu2 %v3511_v35  ;;  %872 = vmatpush.msrb.mxu0 %v3568_v50 }
  0x75   :  { %584 = vmatpush.msra.mxu3 %v3519_v38  ;;  %711 = vmatpush.msrb.mxu1 %v3608_v56 }
  0x76   :  { %751 = vmatpush.msra.mxu2 %v3519_v38  ;;  %873 = vmatpush.msrb.mxu0 %v3574_v51 }
  0x77   :  { %585 = vmatpush.msra.mxu3 %v3527_v41  ;;  %712 = vmatpush.msrb.mxu1 %v3614_v57 }
  0x78   :  { %752 = vmatpush.msra.mxu2 %v3527_v41  ;;  %874 = vmatpush.msrb.mxu0 %v3582_v52 }
  0x79   :  { %586 = vmatpush.msra.mxu3 %v3537_v44  ;;  %713 = vmatpush.msrb.mxu1 %v3621_v58 }
  0x7a   :  { %753 = vmatpush.msra.mxu2 %v3537_v44  ;;  %875 = vmatpush.msrb.mxu0 %v3588_v53 }
  0x7b   :  { %587 = vmatpush.msra.mxu3 %v3547_v46  ;;  %714 = vmatpush.msrb.mxu1 %v3627_v59 }
  0x7c   :  { %754 = vmatpush.msra.mxu2 %v3547_v46  ;;  %876 = vmatpush.msrb.mxu0 %v3595_v54 }
  0x7e   :  { %877 = vmatpush.msrb.mxu0 %v3601_v55  ;;  %v3757_v55 = vperm.slane %v134_v62, 2 }
  0x9c   :  { %v184_v60 = vpop.f32.mrf.mxu0 }
  0x9d   :  { %v185_v10 = vadd.f32 %v184_v60, %v3730_v63 }
  0xa2   :  { %v202_v1 = vpop.f32.mrf.mxu1 }
  0xa3   :  { %v3736_v3 = vadd.f32 %v202_v1, %v3730_v63 }
  0xa4   :  { %v3728_v61 = vpop.f32.mrf.mxu0 }
  0xa5   :  { %4991 = vst [vmem:[#allocation21_spill] sm:$0xff] %v3736_v3 }
  0xaa   :  { %v205_v5 = vpop.f32.mrf.mxu1 }
  0xab   :  { %v3742_v8 = vadd.f32 %v205_v5, %v3730_v63 }
  0xac   :  { %v190_v0 = vpop.f32.mrf.mxu0 }
  0xad   :  { %v3733_v2 = vadd.f32 %v190_v0, %v3730_v63  ;;  %4992 = vst [vmem:[#allocation22_spill] sm:$0xff] %v3742_v8  ;;  %v4023_v8 = vld [vmem:[#allocation12 + $0x40] sm:$0xff] }
  0xae   :  { %v266_v57 = vpop.f32.mrf.mxu2 }
  0xaf   :  { %v267_v60 = vadd.f32 %v266_v57, %v3757_v55 }
  0xb2   :  { %v225_v30 = vpop.f32.mrf.mxu1 }
  0xb3   :  { %v226_v33 = vadd.f32 %v225_v30, %v3751_v28 }
  0xb4   :  { %v193_v4 = vpop.f32.mrf.mxu0 }
  0xb5   :  { %v3739_v6 = vadd.f32 %v193_v4, %v3730_v63 }
  0xbc   :  { %v196_v11 = vpop.f32.mrf.mxu0 }
  0xbd   :  { %v3746_v13 = vadd.f32 %v196_v11, %v3730_v63 }
  0xbf   :  { %v347_v15 = vpop.f32.mrf.mxu3 }
  0xc0   :  { %v430_v17 = vadd.f32 %v347_v15, %v185_v10 }
  0xc2   :  { %v2886_v19 = vmul.f32 -1.442695, %v430_v17 }
  0xc4   :  { %2942 = vpow2.f32 %v2886_v19  ;;  %v199_v20 = vpop.f32.mrf.mxu0 }
  0xc5   :  { %v3749_v22 = vadd.f32 %v199_v20, %v3730_v63 }
  0xca   :  { %v2943_v23 = vpop.eup %2942 }
  0xcb   :  { %v434_v24 = vadd.f32 1.0, %v2943_v23 }
  0xcc   :  { %v423_v50 = vpop.f32.mrf.mxu0 }
  0xcd   :  { %2944 = vrcp.f32 %v434_v24  ;;  %v446_v45 = vand.u32 2147483648, %v434_v24  ;;  %vm440_vm2 = vweird.f32 %v434_v24  ;;  %v444_v48 = vand.u32 2147483647, %v434_v24 }
  0xce   :  { %v424_v54 = vadd.f32 %v2932_v47, %v423_v50 }
  0xcf   :  { %v447_v53 = vor.u32 1.1754944e-38, %v446_v45  ;;  %vm445_vm4 = vcmp.eq.f32.partialorder %v444_v48, 8.507059e+37 }
  0xd3   :  { %v2945_v26 = vpop.eup %2944 }
  0xd4   :  { %v436_v31 = vmul.f32 %v2945_v26, %v434_v24  ;;  %vm441_vm1 = vweird.f32 %v2945_v26 }
  0xd5   :  { %vm442_vm3 = vmor %vm440_vm2, %vm441_vm1 }
  0xd6   :  { %v437_v34 = vsub.f32 1.0, %v436_v31 }
  0xd8   :  { %v438_v42 = vmul.f32 %v2945_v26, %v437_v34 }
  0xda   :  { %v439_v43 = vadd.f32 %v2945_v26, %v438_v42 }
  0xdc   :  { %v443_v51 = vsel %vm442_vm3, %v2945_v26, %v439_v43 }
  0xdd   :  { %v448_v56 = vsel %vm445_vm4, %v447_v53, %v443_v51 }
  0xde   :  { %v472_v58 = vmul.f32 %v448_v56, %v424_v54 }
  0xdf   :  { %v383_v36 = vpop.f32.mrf.mxu3 }
  0xe0   :  { %v451_v37 = vadd.f32 %v383_v36, %v226_v33  ;;  %v473_v4 = vadd.f32 %v472_v58, %v267_v60 }
  0xe2   :  { %v2887_v40 = vmul.f32 -1.442695, %v451_v37 }
  0xe4   :  { %2946 = vpow2.f32 %v2887_v40 }
  0xea   :  { %v2947_v49 = vpop.eup %2946 }
  0xeb   :  { %v455_v52 = vadd.f32 1.0, %v2947_v49 }
  0xed   :  { %2948 = vrcp.f32 %v455_v52  ;;  %v467_v10 = vand.u32 2147483648, %v455_v52  ;;  %v465_v15 = vand.u32 2147483647, %v455_v52  ;;  %vm461_vm6 = vweird.f32 %v455_v52 }
  0xee   :  { %2950 = vtanh.f32 %v473_v4 }
  0xef   :  { %v468_v62 = vor.u32 1.1754944e-38, %v467_v10  ;;  %vm466_vm8 = vcmp.eq.f32.partialorder %v465_v15, 8.507059e+37 }
  0xf3   :  { %v2949_v0 = vpop.eup %2948 }
  0xf4   :  { %v457_v1 = vmul.f32 %v2949_v0, %v455_v52  ;;  %vm462_vm5 = vweird.f32 %v2949_v0  ;;  %v2951_v24 = vpop.eup %2950 }
  0xf5   :  { %vm463_vm7 = vmor %vm461_vm6, %vm462_vm5 }
  0xf6   :  { %v458_v5 = vsub.f32 1.0, %v457_v1 }
  0xf8   :  { %v459_v11 = vmul.f32 %v2949_v0, %v458_v5 }
  0xfa   :  { %v460_v17 = vadd.f32 %v2949_v0, %v459_v11 }
  0xfc   :  { %v464_v19 = vsel %vm463_vm7, %v2949_v0, %v460_v17 }
  0xfd   :  { %v469_v20 = vsel %vm466_vm8, %v468_v62, %v464_v19 }
  0xfe   :  { %v475_v23 = vsub.f32 1.0, %v469_v20  ;;  %v477_v30 = vmul.f32 0.0, %v469_v20 }
 0x100   :  { %v476_v26 = vmul.f32 %v2951_v24, %v475_v23 }
 0x102   :  { %v3760_v31 = vadd.f32 %v477_v30, %v476_v26 }
 0x104   :  { %4993 = vst [vmem:[#allocation23_spill] sm:$0xff] %v3760_v31  ;;  %512 = vmatmul.f32.vlgmr.msra.gmra.mxu1 %v3760_v31  ;;  %548 = vmatmul.f32.vlgmr.msrb.gmra.mxu2 %v3760_v31 }
 0x105   :  { %588 = vmatmul.f32.vlgmr.msra.gmra.mxu3 %v3760_v31  ;;  %906 = vmatpush.msra.mxu1 %v3427_v7  ;;  %v228_v7 = vpop.f32.mrf.mxu1 }
 0x106   :  { %v229_v36 = vadd.f32 %v228_v7, %v3751_v28 }
 0x107   :  { %907 = vmatpush.msra.mxu1 %v3432_v9  ;;  %v269_v9 = vpop.f32.mrf.mxu2 }
 0x108   :  { %v270_v5 = vadd.f32 %v269_v9, %v3757_v55 }
 0x109   :  { %908 = vmatpush.msra.mxu1 %v3440_v12 }
 0x10b   :  { %909 = vmatpush.msra.mxu1 %v3445_v14 }
 0x10d   :  { %910 = vmatpush.msra.mxu1 %v3453_v16  ;;  %v3781_v12 = vpop.f32.mrf.mxu1 }
 0x10f   :  { %911 = vmatpush.msra.mxu1 %v3459_v18  ;;  %v3783_v14 = vpop.f32.mrf.mxu2 }
 0x111   :  { %912 = vmatpush.msra.mxu1 %v3467_v21 }
 0x113   :  { %913 = vmatpush.msra.mxu1 %v3477_v25 }
 0x115   :  { %914 = vmatpush.msra.mxu1 %v3485_v27  ;;  %v3785_v16 = vpop.f32.mrf.mxu1 }
 0x117   :  { %915 = vmatpush.msra.mxu1 %v3491_v29  ;;  %v3787_v18 = vpop.f32.mrf.mxu2 }
 0x119   :  { %916 = vmatpush.msra.mxu1 %v3500_v32 }
 0x11b   :  { %917 = vmatpush.msra.mxu1 %v3511_v35 }
 0x11d   :  { %918 = vmatpush.msra.mxu1 %v3519_v38  ;;  %v3789_v21 = vpop.f32.mrf.mxu1 }
 0x11f   :  { %919 = vmatpush.msra.mxu1 %v3527_v41  ;;  %v3791_v25 = vpop.f32.mrf.mxu2 }
 0x121   :  { %920 = vmatpush.msra.mxu1 %v3537_v44  ;;  %v188_v44 = vadd.f32 %v3728_v61, %v3730_v63  ;;  %v2933_v63 = vld [vmem:[%s4963_s6] ss:$0 sm:$0xff] }
 0x123   :  { %921 = vmatpush.msra.mxu1 %v3547_v46 }
 0x125   :  { %v3793_v27 = vpop.f32.mrf.mxu1 }
 0x126   :  { %4994 = vst [vmem:[#allocation24_spill] sm:$0xff] %v3793_v27 }
 0x127   :  { %v3795_v29 = vpop.f32.mrf.mxu2 }
 0x128   :  { %4995 = vst [vmem:[#allocation25_spill] sm:$0xff] %v3795_v29 }
 0x12d   :  { %v3797_v32 = vpop.f32.mrf.mxu1 }
 0x12e   :  { %4996 = vst [vmem:[#allocation26_spill] sm:$0xff] %v3797_v32 }
 0x12f   :  { %v3799_v35 = vpop.f32.mrf.mxu2 }
 0x130   :  { %4997 = vst [vmem:[#allocation27_spill] sm:$0xff] %v3799_v35  ;;  %v4038_v35 = vld [vmem:[#allocation12 + $0x10] sm:$0xff] }
 0x135   :  { %v3801_v38 = vpop.f32.mrf.mxu1 }
 0x136   :  { %4998 = vst [vmem:[#allocation28_spill] sm:$0xff] %v3801_v38  ;;  %v4036_v38 = vld [vmem:[#allocation12 + $0x8] sm:$0xff] }
 0x137   :  { %v3803_v41 = vpop.f32.mrf.mxu2  ;;  %5001 = vst [vmem:[#allocation31_spill] sm:$0xff] %v4036_v38 }
 0x138   :  { %4999 = vst [vmem:[#allocation29_spill] sm:$0xff] %v3803_v41  ;;  %v4015_v41 = vld [vmem:[#allocation12 + $0x58] sm:$0xff] }
 0x181   :  { %v513_v46 = vpop.f32.mrf.mxu1 }
 0x182   :  { %v596_v33 = vadd.f32 %v513_v46, %v188_v44 }
 0x184   :  { %v2888_v34 = vmul.f32 -1.442695, %v596_v33  ;;  %v3818_v33 = vld [vmem:[#allocation12 + $0x168] sm:$0xff] }
 0x185   :  { %830 = vmatpush.msrb.mxu3 %v3818_v33  ;;  %997 = vmatpush.msrb.mxu2 %v3818_v33 }
 0x186   :  { %2952 = vpow2.f32 %v2888_v34  ;;  %v3822_v34 = vld [vmem:[#allocation12 + $0x150] sm:$0xff] }
 0x187   :  { %v549_v37 = vpop.f32.mrf.mxu2  ;;  %831 = vmatpush.msrb.mxu3 %v3822_v34  ;;  %998 = vmatpush.msrb.mxu2 %v3822_v34 }
 0x188   :  { %v617_v40 = vadd.f32 %v549_v37, %v229_v36  ;;  %v589_v56 = vpop.f32.mrf.mxu3  ;;  %v3827_v36 = vld [vmem:[#allocation12 + $0x138] sm:$0xff]  ;;  %v3832_v37 = vld [vmem:[#allocation12 + $0x120] sm:$0xff] }
 0x189   :  { %v590_v1 = vadd.f32 %v2933_v63, %v589_v56  ;;  %832 = vmatpush.msrb.mxu3 %v3827_v36  ;;  %999 = vmatpush.msrb.mxu2 %v3827_v36  ;;  %v3865_v63 = vld [vmem:[#allocation12 + $0x90] sm:$0xff] }
 0x18a   :  { %v2889_v42 = vmul.f32 -1.442695, %v617_v40  ;;  %v3837_v40 = vld [vmem:[#allocation12 + $0x108] sm:$0xff]  ;;  %v3882_v56 = vld [vmem:[#allocation12 + $0x50] sm:$0xff] }
 0x18b   :  { %833 = vmatpush.msrb.mxu3 %v3832_v37  ;;  %1000 = vmatpush.msrb.mxu2 %v3832_v37 }
 0x18c   :  { %v2953_v43 = vpop.eup %2952  ;;  %2954 = vpow2.f32 %v2889_v42  ;;  %v3842_v42 = vld [vmem:[#allocation12 + $0xf0] sm:$0xff]  ;;  %878 = vmatpush.msrb.mxu0 %v3882_v56 }
 0x18d   :  { %v600_v45 = vadd.f32 1.0, %v2953_v43  ;;  %834 = vmatpush.msrb.mxu3 %v3837_v40  ;;  %1001 = vmatpush.msrb.mxu2 %v3837_v40  ;;  %v3847_v43 = vld [vmem:[#allocation12 + $0xd8] sm:$0xff] }
 0x18f   :  { %2956 = vrcp.f32 %v600_v45  ;;  %v612_v61 = vand.u32 2147483648, %v600_v45  ;;  %v610_v53 = vand.u32 2147483647, %v600_v45  ;;  %vm606_vm10 = vweird.f32 %v600_v45  ;;  %835 = vmatpush.msrb.mxu3 %v3842_v42  ;;  %1002 = vmatpush.msrb.mxu2 %v3842_v42 }
 0x191   :  { %v613_v60 = vor.u32 1.1754944e-38, %v612_v61  ;;  %vm611_vm12 = vcmp.eq.f32.partialorder %v610_v53, 8.507059e+37  ;;  %836 = vmatpush.msrb.mxu3 %v3847_v43  ;;  %1003 = vmatpush.msrb.mxu2 %v3847_v43  ;;  %v3870_v53 = vld [vmem:[#allocation12 + $0x78] sm:$0xff] }
 0x192   :  { %v2955_v47 = vpop.eup %2954 }
 0x193   :  { %v621_v48 = vadd.f32 1.0, %v2955_v47  ;;  %v232_v47 = vadd.f32 %v3781_v12, %v3751_v28 }
 0x195   :  { %v2957_v49 = vpop.eup %2956  ;;  %2958 = vrcp.f32 %v621_v48  ;;  %v633_v15 = vand.u32 2147483648, %v621_v48  ;;  %v631_v62 = vand.u32 2147483647, %v621_v48  ;;  %vm627_vm14 = vweird.f32 %v621_v48 }
 0x196   :  { %v602_v50 = vmul.f32 %v2957_v49, %v600_v45  ;;  %vm607_vm9 = vweird.f32 %v2957_v49  ;;  %v3852_v45 = vld [vmem:[#allocation12 + $0xc0] sm:$0xff] }
 0x197   :  { %vm608_vm11 = vmor %vm606_vm10, %vm607_vm9  ;;  %v634_v23 = vor.u32 1.1754944e-38, %v633_v15  ;;  %vm632_vm0 = vcmp.eq.f32.partialorder %v631_v62, 8.507059e+37  ;;  %837 = vmatpush.msrb.mxu3 %v3852_v45  ;;  %1004 = vmatpush.msrb.mxu2 %v3852_v45 }
 0x198   :  { %v603_v51 = vsub.f32 1.0, %v602_v50 }
 0x19a   :  { %v604_v52 = vmul.f32 %v2957_v49, %v603_v51 }
 0x19b   :  { %v2959_v54 = vpop.eup %2958 }
 0x19c   :  { %v623_v57 = vmul.f32 %v2959_v54, %v621_v48  ;;  %v605_v58 = vadd.f32 %v2957_v49, %v604_v52  ;;  %vm628_vm13 = vweird.f32 %v2959_v54  ;;  %v3859_v48 = vld [vmem:[#allocation12 + $0xa8] sm:$0xff] }
 0x19d   :  { %vm629_vm15 = vmor %vm627_vm14, %vm628_vm13  ;;  %838 = vmatpush.msrb.mxu3 %v3859_v48  ;;  %1005 = vmatpush.msrb.mxu2 %v3859_v48 }
 0x19e   :  { %v624_v0 = vsub.f32 1.0, %v623_v57  ;;  %v609_v4 = vsel %vm608_vm11, %v2957_v49, %v605_v58  ;;  %v3887_v57 = vld [vmem:[#allocation12 + $0x30] sm:$0xff]  ;;  %v3889_v58 = vld [vmem:[#allocation12 + $0x38] sm:$0xff] }
 0x19f   :  { %v614_v10 = vsel %vm611_vm12, %v613_v60, %v609_v4  ;;  %839 = vmatpush.msrb.mxu3 %v3865_v63  ;;  %1006 = vmatpush.msrb.mxu2 %v3865_v63 }
 0x1a0   :  { %v625_v11 = vmul.f32 %v2959_v54, %v624_v0  ;;  %v638_v17 = vmul.f32 %v614_v10, %v590_v1  ;;  %879 = vmatpush.msrb.mxu0 %v3889_v58  ;;  %v3895_v0 = vld [vmem:[#allocation12 + $0x18] sm:$0xff]  ;;  %v3897_v1 = vld [vmem:[#allocation12 + $0x20] sm:$0xff] }
 0x1a1   :  { %840 = vmatpush.msrb.mxu3 %v3870_v53  ;;  %1007 = vmatpush.msrb.mxu2 %v3870_v53  ;;  %v3903_v10 = vld [vmem:[#allocation12] sm:$0xff] }
 0x1a2   :  { %v626_v19 = vadd.f32 %v2959_v54, %v625_v11  ;;  %v639_v20 = vadd.f32 %v638_v17, %v270_v5  ;;  %880 = vmatpush.msrb.mxu0 %v3897_v1 }
 0x1a4   :  { %v630_v24 = vsel %vm629_vm15, %v2959_v54, %v626_v19  ;;  %2960 = vtanh.f32 %v639_v20  ;;  %v3880_v54 = vld [vmem:[#allocation12 + $0x48] sm:$0xff]  ;;  %881 = vmatpush.msrb.mxu0 %v3627_v59 }
 0x1a5   :  { %v635_v26 = vsel %vm632_vm0, %v634_v23, %v630_v24 }
 0x1a6   :  { %v641_v30 = vsub.f32 1.0, %v635_v26  ;;  %v643_v9 = vmul.f32 %v635_v26, %v3760_v31  ;;  %v2934_v26 = vld [vmem:[%s4963_s6] ss:$0 sm:$0xff] }
 0x1aa   :  { %v2961_v7 = vpop.eup %2960 }
 0x1ab   :  { %v642_v44 = vmul.f32 %v2961_v7, %v641_v30 }
 0x1ad   :  { %v3813_v46 = vadd.f32 %v643_v9, %v642_v44 }
 0x1af   :  { %5000 = vst [vmem:[#allocation30_spill] sm:$0xff] %v3813_v46  ;;  %679 = vmatmul.f32.vlgmr.msra.gmra.mxu0 %v3813_v46  ;;  %715 = vmatmul.f32.vlgmr.msrb.gmra.mxu1 %v3813_v46 }
 0x1b0   :  { %755 = vmatmul.f32.vlgmr.msra.gmra.mxu2 %v3813_v46  ;;  %1164 = vmatpush.msrb.mxu1 %v3818_v33 }
 0x1b2   :  { %1165 = vmatpush.msrb.mxu1 %v3822_v34 }
 0x1b4   :  { %1166 = vmatpush.msrb.mxu1 %v3827_v36 }
 0x1b6   :  { %1167 = vmatpush.msrb.mxu1 %v3832_v37 }
 0x1b8   :  { %1168 = vmatpush.msrb.mxu1 %v3837_v40 }
 0x1ba   :  { %1169 = vmatpush.msrb.mxu1 %v3842_v42 }
 0x1bc   :  { %1170 = vmatpush.msrb.mxu1 %v3847_v43 }
 0x1be   :  { %1171 = vmatpush.msrb.mxu1 %v3852_v45 }
 0x1c0   :  { %1172 = vmatpush.msrb.mxu1 %v3859_v48 }
 0x1c2   :  { %1173 = vmatpush.msrb.mxu1 %v3865_v63 }
 0x1c4   :  { %1174 = vmatpush.msrb.mxu1 %v3870_v53 }
 0x22c   :  { %v680_v49 = vpop.f32.mrf.mxu0  ;;  %v716_v50 = vpop.f32.mrf.mxu1 }
 0x22d   :  { %v763_v51 = vadd.f32 %v680_v49, %v3733_v2  ;;  %v784_v61 = vadd.f32 %v716_v50, %v232_v47  ;;  %v3875_v2 = vld [vmem:[#allocation12 + $0x60] sm:$0xff] }
 0x22e   :  { %841 = vmatpush.msrb.mxu3 %v3875_v2  ;;  %1008 = vmatpush.msrb.mxu2 %v3875_v2 }
 0x22f   :  { %v2890_v12 = vmul.f32 -1.442695, %v763_v51  ;;  %v2891_v52 = vmul.f32 -1.442695, %v784_v61  ;;  %1175 = vmatpush.msrb.mxu1 %v3875_v2 }
 0x230   :  { %842 = vmatpush.msrb.mxu3 %v3880_v54  ;;  %1009 = vmatpush.msrb.mxu2 %v3880_v54 }
 0x231   :  { %2962 = vpow2.f32 %v2890_v12  ;;  %1176 = vmatpush.msrb.mxu1 %v3880_v54  ;;  %v273_v12 = vadd.f32 %v3783_v14, %v3757_v55  ;;  %v3922_v14 = vld [vmem:[#allocation12 + $0x170] sm:$0xff] }
 0x232   :  { %2964 = vpow2.f32 %v2891_v52  ;;  %843 = vmatpush.msrb.mxu3 %v3887_v57  ;;  %1010 = vmatpush.msrb.mxu2 %v3887_v57 }
 0x233   :  { %1177 = vmatpush.msrb.mxu1 %v3887_v57  ;;  %v756_v44 = vpop.f32.mrf.mxu2 }
 0x234   :  { %844 = vmatpush.msrb.mxu3 %v3895_v0  ;;  %1011 = vmatpush.msrb.mxu2 %v3895_v0  ;;  %v757_v49 = vadd.f32 %v2934_v26, %v756_v44  ;;  %v3938_v44 = vld [vmem:[#allocation12 + $0x148] sm:$0xff] }
 0x235   :  { %1178 = vmatpush.msrb.mxu1 %v3895_v0 }
 0x236   :  { %845 = vmatpush.msrb.mxu3 %v3903_v10  ;;  %1012 = vmatpush.msrb.mxu2 %v3903_v10 }
 0x237   :  { %v2963_v60 = vpop.eup %2962  ;;  %1179 = vmatpush.msrb.mxu1 %v3903_v10 }
 0x238   :  { %v2965_v4 = vpop.eup %2964  ;;  %v767_v5 = vadd.f32 1.0, %v2963_v60  ;;  %1033 = vmatpush.msra.mxu3 %v3922_v14  ;;  %1200 = vmatpush.msra.mxu2 %v3922_v14 }
 0x239   :  { %v788_v11 = vadd.f32 1.0, %v2965_v4 }
 0x23a   :  { %2966 = vrcp.f32 %v767_v5  ;;  %v779_v24 = vand.u32 2147483648, %v767_v5  ;;  %v777_v7 = vand.u32 2147483647, %v767_v5  ;;  %vm773_vm2 = vweird.f32 %v767_v5 }
 0x23b   :  { %2968 = vrcp.f32 %v788_v11  ;;  %v800_v52 = vand.u32 2147483648, %v788_v11  ;;  %vm794_vm6 = vweird.f32 %v788_v11  ;;  %v798_v4 = vand.u32 2147483647, %v788_v11 }
 0x23c   :  { %v780_v47 = vor.u32 1.1754944e-38, %v779_v24  ;;  %vm778_vm4 = vcmp.eq.f32.partialorder %v777_v7, 8.507059e+37  ;;  %v3930_v7 = vld [vmem:[#allocation12 + $0x160] sm:$0xff] }
 0x23d   :  { %vm799_vm8 = vcmp.eq.f32.partialorder %v798_v4, 8.507059e+37  ;;  %v3970_v4 = vld [vmem:[#allocation12 + $0xe0] sm:$0xff] }
 0x240   :  { %v2967_v15 = vpop.eup %2966 }
 0x241   :  { %v2969_v17 = vpop.eup %2968  ;;  %v769_v62 = vmul.f32 %v2967_v15, %v767_v5  ;;  %vm774_vm1 = vweird.f32 %v2967_v15 }
 0x242   :  { %v790_v19 = vmul.f32 %v2969_v17, %v788_v11  ;;  %vm775_vm3 = vmor %vm773_vm2, %vm774_vm1  ;;  %vm795_vm5 = vweird.f32 %v2969_v17  ;;  %v3924_v11 = vld [vmem:[#allocation12 + $0x178] sm:$0xff] }
 0x243   :  { %v770_v20 = vsub.f32 1.0, %v769_v62  ;;  %vm796_vm7 = vmor %vm794_vm6, %vm795_vm5  ;;  %1073 = vmatpush.msra.mxu0 %v3924_v11 }
 0x244   :  { %v791_v23 = vsub.f32 1.0, %v790_v19 }
 0x245   :  { %v771_v30 = vmul.f32 %v2967_v15, %v770_v20  ;;  %v801_v20 = vor.u32 1.1754944e-38, %v800_v52  ;;  %1074 = vmatpush.msra.mxu0 %v3930_v7 }
 0x246   :  { %v792_v59 = vmul.f32 %v2969_v17, %v791_v23 }
 0x247   :  { %v772_v9 = vadd.f32 %v2967_v15, %v771_v30  ;;  %1075 = vmatpush.msra.mxu0 %v3938_v44 }
 0x248   :  { %v793_v51 = vadd.f32 %v2969_v17, %v792_v59  ;;  %v3936_v59 = vld [vmem:[#allocation12 + $0x140] sm:$0xff] }
 0x249   :  { %v776_v50 = vsel %vm775_vm3, %v2967_v15, %v772_v9  ;;  %v3944_v9 = vld [vmem:[#allocation12 + $0x128] sm:$0xff] }
 0x24a   :  { %v781_v61 = vsel %vm778_vm4, %v780_v47, %v776_v50  ;;  %v797_v19 = vsel %vm796_vm7, %v2969_v17, %v793_v51  ;;  %v3928_v17 = vld [vmem:[#allocation12 + $0x158] sm:$0xff]  ;;  %v3946_v47 = vld [vmem:[#allocation12 + $0x130] sm:$0xff]  ;;  %v235_v51 = vadd.f32 %v3785_v16, %v3751_v28 }
 0x24b   :  { %v805_v60 = vmul.f32 %v781_v61, %v757_v49  ;;  %v802_v5 = vsel %vm799_vm8, %v801_v20, %v797_v19  ;;  %1034 = vmatpush.msra.mxu3 %v3928_v17  ;;  %1201 = vmatpush.msra.mxu2 %v3928_v17  ;;  %v3952_v49 = vld [vmem:[#allocation12 + $0x110] sm:$0xff]  ;;  %v3954_v50 = vld [vmem:[#allocation12 + $0x118] sm:$0xff]  ;;  %v3978_v19 = vld [vmem:[#allocation12 + $0xc8] sm:$0xff] }
 0x24c   :  { %v808_v23 = vsub.f32 1.0, %v802_v5  ;;  %v810_v26 = vmul.f32 %v802_v5, %v3813_v46  ;;  %1076 = vmatpush.msra.mxu0 %v3946_v47  ;;  %v3962_v61 = vld [vmem:[#allocation12 + $0xf8] sm:$0xff]  ;;  %v3980_v20 = vld [vmem:[#allocation12 + $0xd0] sm:$0xff] }
 0x24d   :  { %v806_v62 = vadd.f32 %v805_v60, %v273_v12  ;;  %1035 = vmatpush.msra.mxu3 %v3936_v59  ;;  %1202 = vmatpush.msra.mxu2 %v3936_v59  ;;  %v3964_v12 = vld [vmem:[#allocation12 + $0x100] sm:$0xff]  ;;  %v3986_v5 = vld [vmem:[#allocation12 + $0xb0] sm:$0xff] }
 0x24e   :  { %1077 = vmatpush.msra.mxu0 %v3954_v50 }
 0x24f   :  { %2970 = vtanh.f32 %v806_v62  ;;  %1036 = vmatpush.msra.mxu3 %v3944_v9  ;;  %1203 = vmatpush.msra.mxu2 %v3944_v9  ;;  %v3972_v62 = vld [vmem:[#allocation12 + $0xe8] sm:$0xff] }
 0x250   :  { %1078 = vmatpush.msra.mxu0 %v3964_v12 }
 0x251   :  { %1037 = vmatpush.msra.mxu3 %v3952_v49  ;;  %1204 = vmatpush.msra.mxu2 %v3952_v49 }
 0x252   :  { %1079 = vmatpush.msra.mxu0 %v3972_v62 }
 0x253   :  { %1038 = vmatpush.msra.mxu3 %v3962_v61  ;;  %1205 = vmatpush.msra.mxu2 %v3962_v61 }
 0x254   :  { %1080 = vmatpush.msra.mxu0 %v3980_v20 }
 0x255   :  { %v2971_v15 = vpop.eup %2970  ;;  %1039 = vmatpush.msra.mxu3 %v3970_v4  ;;  %1206 = vmatpush.msra.mxu2 %v3970_v4 }
 0x256   :  { %v809_v24 = vmul.f32 %v2971_v15, %v808_v23  ;;  %v3988_v23 = vld [vmem:[#allocation12 + $0xb8] sm:$0xff] }
 0x257   :  { %1040 = vmatpush.msra.mxu3 %v3978_v19  ;;  %1207 = vmatpush.msra.mxu2 %v3978_v19 }
 0x258   :  { %v3917_v30 = vadd.f32 %v810_v26, %v809_v24  ;;  %1081 = vmatpush.msra.mxu0 %v3988_v23  ;;  %v3995_v26 = vld [vmem:[#allocation12 + $0x98] sm:$0xff] }
 0x259   :  { %1041 = vmatpush.msra.mxu3 %v3986_v5  ;;  %1208 = vmatpush.msra.mxu2 %v3986_v5 }
 0x25a   :  { %846 = vmatmul.f32.vlgmr.msrb.gmra.mxu3 %v3917_v30  ;;  %882 = vmatmul.f32.vlgmr.msrb.gmra.mxu0 %v3917_v30 }
 0x25b   :  { %922 = vmatmul.f32.vlgmr.msra.gmra.mxu1 %v3917_v30  ;;  %1042 = vmatpush.msra.mxu3 %v3995_v26 }
 0x25c   :  { %1367 = vmatpush.msra.mxu1 %v3922_v14  ;;  %1209 = vmatpush.msra.mxu2 %v3995_v26 }
 0x25e   :  { %1368 = vmatpush.msra.mxu1 %v3928_v17 }
 0x260   :  { %1369 = vmatpush.msra.mxu1 %v3936_v59 }
 0x262   :  { %1370 = vmatpush.msra.mxu1 %v3944_v9 }
 0x264   :  { %1371 = vmatpush.msra.mxu1 %v3952_v49 }
 0x266   :  { %1372 = vmatpush.msra.mxu1 %v3962_v61 }
 0x268   :  { %1373 = vmatpush.msra.mxu1 %v3970_v4 }
 0x26a   :  { %1374 = vmatpush.msra.mxu1 %v3978_v19 }
 0x26c   :  { %1375 = vmatpush.msra.mxu1 %v3986_v5 }
 0x26e   :  { %1376 = vmatpush.msra.mxu1 %v3995_v26 }
 0x2d7   :  { %v883_v52 = vpop.f32.mrf.mxu0 }
 0x2d8   :  { %v951_v60 = vadd.f32 %v883_v52, %v235_v51  ;;  %v3997_v51 = vld [vmem:[#allocation12 + $0xa0] sm:$0xff]  ;;  %v923_v29 = vpop.f32.mrf.mxu1 }
 0x2d9   :  { %1082 = vmatpush.msra.mxu0 %v3997_v51 }
 0x2da   :  { %v2893_v16 = vmul.f32 -1.442695, %v951_v60  ;;  %v4003_v60 = vld [vmem:[#allocation12 + $0x80] sm:$0xff] }
 0x2db   :  { %1043 = vmatpush.msra.mxu3 %v4003_v60  ;;  %1210 = vmatpush.msra.mxu2 %v4003_v60 }
 0x2dc   :  { %2972 = vpow2.f32 %v2893_v16  ;;  %v4005_v16 = vld [vmem:[#allocation12 + $0x88] sm:$0xff]  ;;  %1377 = vmatpush.msra.mxu1 %v4003_v60 }
 0x2dd   :  { %v847_v15 = vpop.f32.mrf.mxu3  ;;  %1083 = vmatpush.msra.mxu0 %v4005_v16  ;;  %1044 = vmatpush.msra.mxu3 %v4007_v39 }
 0x2de   :  { %v930_v24 = vadd.f32 %v847_v15, %v3739_v6  ;;  %v4013_v6 = vld [vmem:[#allocation12 + $0x70] sm:$0xff]  ;;  %1211 = vmatpush.msra.mxu2 %v4007_v39  ;;  %1378 = vmatpush.msra.mxu1 %v4007_v39 }
 0x2df   :  { %1084 = vmatpush.msra.mxu0 %v4013_v6  ;;  %1045 = vmatpush.msra.mxu3 %v3882_v56 }
 0x2e0   :  { %v2892_v52 = vmul.f32 -1.442695, %v930_v24  ;;  %1212 = vmatpush.msra.mxu2 %v3882_v56  ;;  %1379 = vmatpush.msra.mxu1 %v3882_v56 }
 0x2e1   :  { %1085 = vmatpush.msra.mxu0 %v4015_v41  ;;  %1046 = vmatpush.msra.mxu3 %v3889_v58 }
 0x2e2   :  { %v2973_v15 = vpop.eup %2972  ;;  %2974 = vpow2.f32 %v2892_v52  ;;  %v4030_v52 = vld [vmem:[#allocation12 + $0x28] sm:$0xff]  ;;  %1213 = vmatpush.msra.mxu2 %v3889_v58  ;;  %1380 = vmatpush.msra.mxu1 %v3889_v58 }
 0x2e3   :  { %v4019_v24 = vadd.f32 1.0, %v2973_v15  ;;  %1086 = vmatpush.msra.mxu0 %v4023_v8  ;;  %1047 = vmatpush.msra.mxu3 %v3897_v1 }
 0x2e4   :  { %1214 = vmatpush.msra.mxu2 %v3897_v1  ;;  %1381 = vmatpush.msra.mxu1 %v3897_v1 }
 0x2e5   :  { %2976 = vrcp.f32 %v4019_v24  ;;  %1087 = vmatpush.msra.mxu0 %v4030_v52  ;;  %1048 = vmatpush.msra.mxu3 %v4036_v38  ;;  %vm961_vm14 = vweird.f32 %v4019_v24 }
 0x2e6   :  { %1215 = vmatpush.msra.mxu2 %v4036_v38  ;;  %1382 = vmatpush.msra.mxu1 %v4036_v38 }
 0x2e7   :  { %1088 = vmatpush.msra.mxu0 %v4038_v35  ;;  %1240 = vmatpush.msrb.mxu3 %v3924_v11 }
 0x2e8   :  { %v2975_v15 = vpop.eup %2974 }
 0x2e9   :  { %v934_v3 = vadd.f32 1.0, %v2975_v15  ;;  %1331 = vmatpush.msrb.mxu0 %v3818_v33  ;;  %1241 = vmatpush.msrb.mxu3 %v3930_v7 }
 0x2eb   :  { %2978 = vrcp.f32 %v934_v3  ;;  %v2977_v56 = vpop.eup %2976  ;;  %1332 = vmatpush.msrb.mxu0 %v3822_v34  ;;  %1242 = vmatpush.msrb.mxu3 %v3938_v44  ;;  %v946_v38 = vand.u32 2147483648, %v934_v3  ;;  %v2935_v34 = vld [vmem:[%s4963_s6] ss:$0 sm:$0xff]  ;;  %v944_v31 = vand.u32 2147483647, %v934_v3  ;;  %vm940_vm10 = vweird.f32 %v934_v3 }
 0x2ec   :  { %v957_v58 = vmul.f32 %v2977_v56, %v4019_v24  ;;  %vm962_vm13 = vweird.f32 %v2977_v56 }
 0x2ed   :  { %1333 = vmatpush.msrb.mxu0 %v3827_v36  ;;  %1243 = vmatpush.msrb.mxu3 %v3946_v47  ;;  %vm945_vm12 = vcmp.eq.f32.partialorder %v944_v31, 8.507059e+37  ;;  %vm963_vm15 = vmor %vm961_vm14, %vm962_vm13 }
 0x2ee   :  { %v958_v32 = vsub.f32 1.0, %v957_v58  ;;  %v947_v58 = vor.u32 1.1754944e-38, %v946_v38 }
 0x2ef   :  { %1334 = vmatpush.msrb.mxu0 %v3832_v37  ;;  %1244 = vmatpush.msrb.mxu3 %v3954_v50 }
 0x2f0   :  { %v959_v36 = vmul.f32 %v2977_v56, %v958_v32  ;;  %v276_v32 = vadd.f32 %v3787_v18, %v3757_v55 }
 0x2f1   :  { %v2979_v1 = vpop.eup %2978  ;;  %1335 = vmatpush.msrb.mxu0 %v3837_v40  ;;  %1245 = vmatpush.msrb.mxu3 %v3964_v12  ;;  %v924_v40 = vadd.f32 %v2935_v34, %v923_v29  ;;  %v965_v29 = vand.u32 2147483647, %v4019_v24 }
 0x2f2   :  { %v936_v15 = vmul.f32 %v2979_v1, %v934_v3  ;;  %vm941_vm9 = vweird.f32 %v2979_v1  ;;  %v967_v3 = vand.u32 2147483648, %v4019_v24 }
 0x2f3   :  { %1336 = vmatpush.msrb.mxu0 %v3842_v42  ;;  %1246 = vmatpush.msrb.mxu3 %v3972_v62  ;;  %vm942_vm11 = vmor %vm940_vm10, %vm941_vm9  ;;  %vm966_vm0 = vcmp.eq.f32.partialorder %v965_v29, 8.507059e+37 }
 0x2f4   :  { %v937_v33 = vsub.f32 1.0, %v936_v15  ;;  %v968_v42 = vor.u32 1.1754944e-38, %v967_v3 }
 0x2f5   :  { %1337 = vmatpush.msrb.mxu0 %v3847_v43  ;;  %1247 = vmatpush.msrb.mxu3 %v3980_v20 }
 0x2f6   :  { %v938_v46 = vmul.f32 %v2979_v1, %v937_v33  ;;  %v960_v33 = vadd.f32 %v2977_v56, %v959_v36 }
 0x2f7   :  { %1338 = vmatpush.msrb.mxu0 %v3852_v45  ;;  %1248 = vmatpush.msrb.mxu3 %v3988_v23 }
 0x2f8   :  { %v939_v37 = vadd.f32 %v2979_v1, %v938_v46  ;;  %v964_v38 = vsel %vm963_vm15, %v2977_v56, %v960_v33  ;;  %v279_v33 = vadd.f32 %v3791_v25, %v3757_v55  ;;  %v1702_v25 = vld [vmem:[#allocation10 + $0x168] sm:$0xff] }
 0x2f9   :  { %1339 = vmatpush.msrb.mxu0 %v3859_v48  ;;  %1249 = vmatpush.msrb.mxu3 %v3997_v51  ;;  %v969_v18 = vsel %vm966_vm0, %v968_v42, %v964_v38 }
 0x2fa   :  { %v943_v15 = vsel %vm942_vm11, %v2979_v1, %v939_v37  ;;  %v977_v45 = vmul.f32 %v969_v18, %v3917_v30 }
 0x2fb   :  { %v948_v27 = vsel %vm945_vm12, %v947_v58, %v943_v15  ;;  %1340 = vmatpush.msrb.mxu0 %v3865_v63  ;;  %1250 = vmatpush.msrb.mxu3 %v4005_v16 }
 0x2fc   :  { %v972_v46 = vmul.f32 %v948_v27, %v924_v40  ;;  %v975_v27 = vsub.f32 1.0, %v969_v18 }
 0x2fd   :  { %1341 = vmatpush.msrb.mxu0 %v3870_v53  ;;  %1251 = vmatpush.msrb.mxu3 %v4013_v6  ;;  %v238_v53 = vadd.f32 %v3789_v21, %v3751_v28 }
 0x2fe   :  { %v973_v31 = vadd.f32 %v972_v46, %v276_v32 }
 0x2ff   :  { %1342 = vmatpush.msrb.mxu0 %v3875_v2  ;;  %1252 = vmatpush.msrb.mxu3 %v4015_v41 }
 0x300   :  { %2980 = vtanh.f32 %v973_v31 }
 0x301   :  { %1343 = vmatpush.msrb.mxu0 %v3880_v54  ;;  %1253 = vmatpush.msrb.mxu3 %v4023_v8 }
 0x303   :  { %1344 = vmatpush.msrb.mxu0 %v3887_v57  ;;  %1254 = vmatpush.msrb.mxu3 %v4030_v52 }
 0x305   :  { %1345 = vmatpush.msrb.mxu0 %v3895_v0  ;;  %1255 = vmatpush.msrb.mxu3 %v4038_v35 }
 0x306   :  { %v2981_v43 = vpop.eup %2980 }
 0x307   :  { %v976_v48 = vmul.f32 %v2981_v43, %v975_v27  ;;  %1346 = vmatpush.msrb.mxu0 %v3903_v10 }
 0x309   :  { %v4089_v63 = vadd.f32 %v977_v45, %v976_v48 }
 0x30b   :  { %1013 = vmatmul.f32.vlgmr.msrb.gmra.mxu2 %v4089_v63  ;;  %1049 = vmatmul.f32.vlgmr.msra.gmra.mxu3 %v4089_v63 }
 0x30c   :  { %1089 = vmatmul.f32.vlgmr.msra.gmra.mxu0 %v4089_v63  ;;  %1407 = vmatpush.msrb.mxu2 %v3924_v11 }
 0x30d   :  { %1534 = vmatpush.msra.mxu0 %v3922_v14 }
 0x30e   :  { %1408 = vmatpush.msrb.mxu2 %v3930_v7 }
 0x30f   :  { %1535 = vmatpush.msra.mxu0 %v3928_v17 }
 0x310   :  { %1409 = vmatpush.msrb.mxu2 %v3938_v44 }
 0x311   :  { %1536 = vmatpush.msra.mxu0 %v3936_v59 }
 0x312   :  { %1410 = vmatpush.msrb.mxu2 %v3946_v47 }
 0x313   :  { %1537 = vmatpush.msra.mxu0 %v3944_v9 }
 0x314   :  { %1411 = vmatpush.msrb.mxu2 %v3954_v50 }
 0x315   :  { %1538 = vmatpush.msra.mxu0 %v3952_v49 }
 0x316   :  { %1412 = vmatpush.msrb.mxu2 %v3964_v12 }
 0x317   :  { %1539 = vmatpush.msra.mxu0 %v3962_v61 }
 0x318   :  { %1413 = vmatpush.msrb.mxu2 %v3972_v62 }
 0x319   :  { %1540 = vmatpush.msra.mxu0 %v3970_v4 }
 0x31a   :  { %1414 = vmatpush.msrb.mxu2 %v3980_v20 }
 0x31b   :  { %1541 = vmatpush.msra.mxu0 %v3978_v19 }
 0x31c   :  { %1415 = vmatpush.msrb.mxu2 %v3988_v23 }
 0x31d   :  { %1542 = vmatpush.msra.mxu0 %v3986_v5 }
 0x31e   :  { %1416 = vmatpush.msrb.mxu2 %v3997_v51 }
 0x31f   :  { %1543 = vmatpush.msra.mxu0 %v3995_v26 }
 0x320   :  { %1417 = vmatpush.msrb.mxu2 %v4005_v16 }
 0x321   :  { %1544 = vmatpush.msra.mxu0 %v4003_v60 }
 0x322   :  { %1418 = vmatpush.msrb.mxu2 %v4013_v6 }
 0x323   :  { %1545 = vmatpush.msra.mxu0 %v4007_v39 }
 0x324   :  { %1419 = vmatpush.msrb.mxu2 %v4015_v41 }
 0x326   :  { %1420 = vmatpush.msrb.mxu2 %v4023_v8 }
 0x328   :  { %1421 = vmatpush.msrb.mxu2 %v4030_v52 }
 0x32a   :  { %1422 = vmatpush.msrb.mxu2 %v4038_v35 }
 0x389   :  { %v1090_v56 = vpop.f32.mrf.mxu0 }
 0x38e   :  { %v1014_v2 = vpop.f32.mrf.mxu2  ;;  %v1050_v54 = vpop.f32.mrf.mxu3 }
 0x38f   :  { %v1097_v57 = vadd.f32 %v1014_v2, %v3746_v13  ;;  %v1118_v0 = vadd.f32 %v1050_v54, %v238_v53  ;;  %v2936_v13 = vld [vmem:[%s4963_s6] ss:$0 sm:$0xff]  ;;  %v1675_v53 = vld [vmem:[#allocation10 + $0x90] sm:$0xff] }
 0x390   :  { %v1091_v37 = vadd.f32 %v2936_v13, %v1090_v56 }
 0x391   :  { %v2894_v10 = vmul.f32 -1.442695, %v1097_v57  ;;  %v2895_v14 = vmul.f32 -1.442695, %v1118_v0  ;;  %v1669_v57 = vld [vmem:[#allocation10 + $0x60] sm:$0xff]  ;;  %v1666_v0 = vld [vmem:[#allocation10 + $0x48] sm:$0xff] }
 0x393   :  { %2982 = vpow2.f32 %v2894_v10  ;;  %v1663_v10 = vld [vmem:[#allocation10 + $0x30] sm:$0xff] }
 0x394   :  { %2984 = vpow2.f32 %v2895_v14 }
 0x399   :  { %v2983_v17 = vpop.eup %2982 }
 0x39a   :  { %v2985_v39 = vpop.eup %2984  ;;  %v1101_v59 = vadd.f32 1.0, %v2983_v17  ;;  %v1660_v17 = vld [vmem:[#allocation10 + $0x18] sm:$0xff] }
 0x39b   :  { %v1122_v9 = vadd.f32 1.0, %v2985_v39 }
 0x39c   :  { %2986 = vrcp.f32 %v1101_v59  ;;  %v1113_v5 = vand.u32 2147483648, %v1101_v59  ;;  %v1111_v24 = vand.u32 2147483647, %v1101_v59  ;;  %vm1107_vm2 = vweird.f32 %v1101_v59 }
 0x39d   :  { %2988 = vrcp.f32 %v1122_v9  ;;  %v1134_v3 = vand.u32 2147483648, %v1122_v9  ;;  %vm1128_vm6 = vweird.f32 %v1122_v9  ;;  %v1132_v46 = vand.u32 2147483647, %v1122_v9 }
 0x39e   :  { %v1114_v36 = vor.u32 1.1754944e-38, %v1113_v5  ;;  %vm1112_vm4 = vcmp.eq.f32.partialorder %v1111_v24, 8.507059e+37 }
 0x39f   :  { %v1135_v38 = vor.u32 1.1754944e-38, %v1134_v3  ;;  %vm1133_vm8 = vcmp.eq.f32.partialorder %v1132_v46, 8.507059e+37 }
 0x3a2   :  { %v2987_v49 = vpop.eup %2986 }
 0x3a3   :  { %v2989_v61 = vpop.eup %2988  ;;  %v1103_v4 = vmul.f32 %v2987_v49, %v1101_v59  ;;  %vm1108_vm1 = vweird.f32 %v2987_v49  ;;  %v1657_v59 = vld [vmem:[#allocation10] sm:$0xff] }
 0x3a4   :  { %v1124_v19 = vmul.f32 %v2989_v61, %v1122_v9  ;;  %vm1109_vm3 = vmor %vm1107_vm2, %vm1108_vm1  ;;  %vm1129_vm5 = vweird.f32 %v2989_v61 }
 0x3a5   :  { %v1104_v21 = vsub.f32 1.0, %v1103_v4  ;;  %vm1130_vm7 = vmor %vm1128_vm6, %vm1129_vm5 }
 0x3a6   :  { %v1125_v26 = vsub.f32 1.0, %v1124_v19  ;;  %v2937_v19 = vld [vmem:[%s4963_s6] ss:$0 sm:$0xff] }
 0x3a7   :  { %v1105_v60 = vmul.f32 %v2987_v49, %v1104_v21 }
 0x3a8   :  { %v1126_v1 = vmul.f32 %v2989_v61, %v1125_v26 }
 0x3a9   :  { %v1106_v34 = vadd.f32 %v2987_v49, %v1105_v60 }
 0x3aa   :  { %v1127_v15 = vadd.f32 %v2989_v61, %v1126_v1 }
 0x3ab   :  { %v1110_v58 = vsel %vm1109_vm3, %v2987_v49, %v1106_v34 }
 0x3ac   :  { %v1115_v40 = vsel %vm1112_vm4, %v1114_v36, %v1110_v58  ;;  %v1131_v31 = vsel %vm1130_vm7, %v2989_v61, %v1127_v15 }
 0x3ad   :  { %v1139_v32 = vmul.f32 %v1115_v40, %v1091_v37  ;;  %v1136_v42 = vsel %vm1133_vm8, %v1135_v38, %v1131_v31  ;;  %v5003_v37 = vld [vmem:[#allocation25_spill] sm:$0xff] }
 0x3ae   :  { %v1142_v18 = vsub.f32 1.0, %v1136_v42  ;;  %v1144_v45 = vmul.f32 %v1136_v42, %v4089_v63  ;;  %v282_v58 = vadd.f32 %v5003_v37, %v3757_v55  ;;  %v4202_v37 = vld [vmem:[#allocation12 + $0x228] sm:$0xff] }
 0x3af   :  { %v1140_v29 = vadd.f32 %v1139_v32, %v279_v33 }
 0x3b1   :  { %2990 = vtanh.f32 %v1140_v29 }
 0x3b7   :  { %v2991_v27 = vpop.eup %2990 }
 0x3b8   :  { %v1143_v43 = vmul.f32 %v2991_v27, %v1142_v18 }
 0x3ba   :  { %v4134_v48 = vadd.f32 %v1144_v45, %v1143_v43 }
 0x3bc   :  { %1180 = vmatmul.f32.vlgmr.msrb.gmra.mxu1 %v4134_v48  ;;  %1216 = vmatmul.f32.vlgmr.msra.gmra.mxu2 %v4134_v48 }
 0x3bd   :  { %1256 = vmatmul.f32.vlgmr.msrb.gmra.mxu3 %v4134_v48  ;;  %1574 = vmatpush.msrb.mxu1 %v3924_v11  ;;  %v1699_v11 = vld [vmem:[#allocation10 + $0x150] sm:$0xff] }
 0x3be   :  { %1713 = vmatpush.msra.mxu2 %v1702_v25 }
 0x3bf   :  { %1575 = vmatpush.msrb.mxu1 %v3930_v7  ;;  %v1696_v7 = vld [vmem:[#allocation10 + $0x138] sm:$0xff] }
 0x3c0   :  { %1714 = vmatpush.msra.mxu2 %v1699_v11  ;;  %v5004_v11 = vld [vmem:[#allocation23_spill] sm:$0xff] }
 0x3c1   :  { %1576 = vmatpush.msrb.mxu1 %v3938_v44  ;;  %v1693_v44 = vld [vmem:[#allocation10 + $0x120] sm:$0xff] }
 0x3c2   :  { %1715 = vmatpush.msra.mxu2 %v1696_v7  ;;  %v5005_v7 = vld [vmem:[#allocation30_spill] sm:$0xff] }
 0x3c3   :  { %1577 = vmatpush.msrb.mxu1 %v3946_v47  ;;  %v1690_v47 = vld [vmem:[#allocation10 + $0x108] sm:$0xff] }
 0x3c4   :  { %1716 = vmatpush.msra.mxu2 %v1693_v44  ;;  %v1497_v44 = vld [vmem:[#allocation12 + $0x168] sm:$0xff] }
 0x3c5   :  { %1578 = vmatpush.msrb.mxu1 %v3954_v50  ;;  %1498 = vmatpush.msra.mxu3 %v1497_v44  ;;  %v4212_v44 = vld [vmem:[#allocation12 + $0x1e0] sm:$0xff] }
 0x3c6   :  { %1717 = vmatpush.msra.mxu2 %v1690_v47  ;;  %v1496_v47 = vld [vmem:[#allocation12 + $0x150] sm:$0xff] }
 0x3c7   :  { %1579 = vmatpush.msrb.mxu1 %v3964_v12  ;;  %1499 = vmatpush.msra.mxu3 %v1496_v47  ;;  %v1679_v47 = vld [vmem:[#allocation10 + $0xb0] sm:$0xff] }
 0x3c9   :  { %1580 = vmatpush.msrb.mxu1 %v3972_v62  ;;  %v1684_v62 = vld [vmem:[#allocation10 + $0xd8] sm:$0xff] }
 0x3cb   :  { %1581 = vmatpush.msrb.mxu1 %v3980_v20 }
 0x3cd   :  { %1582 = vmatpush.msrb.mxu1 %v3988_v23  ;;  %v1681_v23 = vld [vmem:[#allocation10 + $0xc0] sm:$0xff] }
 0x3cf   :  { %1583 = vmatpush.msrb.mxu1 %v3997_v51 }
 0x3d1   :  { %1584 = vmatpush.msrb.mxu1 %v4005_v16 }
 0x3d3   :  { %1585 = vmatpush.msrb.mxu1 %v4013_v6  ;;  %v1678_v6 = vld [vmem:[#allocation10 + $0xa8] sm:$0xff] }
 0x3d5   :  { %1586 = vmatpush.msrb.mxu1 %v4015_v41  ;;  %v1687_v41 = vld [vmem:[#allocation10 + $0xf0] sm:$0xff] }
 0x3d6   :  { %1718 = vmatpush.msra.mxu2 %v1687_v41  ;;  %v1493_v41 = vld [vmem:[#allocation12 + $0x108] sm:$0xff] }
 0x3d7   :  { %1587 = vmatpush.msrb.mxu1 %v4023_v8 }
 0x3d8   :  { %1719 = vmatpush.msra.mxu2 %v1684_v62  ;;  %v1491_v62 = vld [vmem:[#allocation12 + $0xd8] sm:$0xff] }
 0x3d9   :  { %1588 = vmatpush.msrb.mxu1 %v4030_v52 }
 0x3da   :  { %1720 = vmatpush.msra.mxu2 %v1681_v23  ;;  %v1488_v23 = vld [vmem:[#allocation12 + $0x90] sm:$0xff] }
 0x3db   :  { %1589 = vmatpush.msrb.mxu1 %v4038_v35  ;;  %v5002_v35 = vld [vmem:[#allocation24_spill] sm:$0xff] }
 0x3dc   :  { %v241_v20 = vadd.f32 %v5002_v35, %v3751_v28  ;;  %1721 = vmatpush.msra.mxu2 %v1678_v6  ;;  %v1490_v35 = vld [vmem:[#allocation12 + $0xc0] sm:$0xff]  ;;  %v4175_v6 = vld [vmem:[#allocation12 + $0x2e8] sm:$0xff] }
 0x3de   :  { %1722 = vmatpush.msra.mxu2 %v1675_v53  ;;  %v1521_v53 = vld [vmem:[#allocation12 + $0x50] sm:$0xff] }
 0x3df   :  { %1546 = vmatpush.msra.mxu0 %v1521_v53  ;;  %v1670_v53 = vld [vmem:[#allocation10 + $0x68] sm:$0xff] }
 0x439   :  { %v1181_v50 = vpop.f32.mrf.mxu1 }
 0x43a   :  { %v1264_v12 = vadd.f32 %v1181_v50, %v3749_v22  ;;  %v1672_v22 = vld [vmem:[#allocation10 + $0x78] sm:$0xff] }
 0x43b   :  { %1723 = vmatpush.msra.mxu2 %v1672_v22  ;;  %v1495_v50 = vld [vmem:[#allocation12 + $0x138] sm:$0xff]  ;;  %v1484_v22 = vld [vmem:[#allocation12 + $0x30] sm:$0xff] }
 0x43c   :  { %v2896_v8 = vmul.f32 -1.442695, %v1264_v12  ;;  %v1494_v12 = vld [vmem:[#allocation12 + $0x120] sm:$0xff]  ;;  %1500 = vmatpush.msra.mxu3 %v1495_v50  ;;  %v1680_v50 = vld [vmem:[#allocation10 + $0xb8] sm:$0xff] }
 0x43d   :  { %1724 = vmatpush.msra.mxu2 %v1669_v57  ;;  %v4181_v57 = vld [vmem:[#allocation12 + $0x2b8] sm:$0xff] }
 0x43e   :  { %2992 = vpow2.f32 %v2896_v8  ;;  %1501 = vmatpush.msra.mxu3 %v1494_v12  ;;  %v1492_v8 = vld [vmem:[#allocation12 + $0xf0] sm:$0xff]  ;;  %v4215_v12 = vld [vmem:[#allocation12 + $0x1c8] sm:$0xff] }
 0x43f   :  { %v1217_v51 = vpop.f32.mrf.mxu2  ;;  %1725 = vmatpush.msra.mxu2 %v1666_v0  ;;  %v1483_v0 = vld [vmem:[#allocation12 + $0x18] sm:$0xff] }
 0x440   :  { %v1285_v16 = vadd.f32 %v1217_v51, %v241_v20  ;;  %v1257_v13 = vpop.f32.mrf.mxu3  ;;  %1502 = vmatpush.msra.mxu3 %v1493_v41  ;;  %v1489_v20 = vld [vmem:[#allocation12 + $0xa8] sm:$0xff]  ;;  %v1487_v51 = vld [vmem:[#allocation12 + $0x78] sm:$0xff] }
 0x441   :  { %1726 = vmatpush.msra.mxu2 %v1663_v10  ;;  %v1258_v34 = vadd.f32 %v2937_v19, %v1257_v13  ;;  %v1519_v10 = vld [vmem:[#allocation12 + $0x20] sm:$0xff]  ;;  %v4191_v19 = vld [vmem:[#allocation12 + $0x270] sm:$0xff]  ;;  %v1694_v13 = vld [vmem:[#allocation10 + $0x128] sm:$0xff] }
 0x442   :  { %v2897_v52 = vmul.f32 -1.442695, %v1285_v16  ;;  %1503 = vmatpush.msra.mxu3 %v1492_v8  ;;  %v1486_v16 = vld [vmem:[#allocation12 + $0x60] sm:$0xff]  ;;  %v1676_v41 = vld [vmem:[#allocation10 + $0x98] sm:$0xff] }
 0x443   :  { %1727 = vmatpush.msra.mxu2 %v1660_v17  ;;  %v1482_v17 = vld [vmem:[#allocation12] sm:$0xff] }
 0x444   :  { %v2993_v2 = vpop.eup %2992  ;;  %2994 = vpow2.f32 %v2897_v52  ;;  %1504 = vmatpush.msra.mxu3 %v1491_v62  ;;  %v1485_v52 = vld [vmem:[#allocation12 + $0x48] sm:$0xff]  ;;  %v1677_v8 = vld [vmem:[#allocation10 + $0xa0] sm:$0xff]  ;;  %v4218_v62 = vld [vmem:[#allocation12 + $0x1b0] sm:$0xff] }
 0x445   :  { %v1268_v54 = vadd.f32 1.0, %v2993_v2  ;;  %1728 = vmatpush.msra.mxu2 %v1657_v59  ;;  %v4178_v2 = vld [vmem:[#allocation12 + $0x2d0] sm:$0xff] }
 0x446   :  { %1505 = vmatpush.msra.mxu3 %v1490_v35  ;;  %v1703_v59 = vld [vmem:[#allocation10 + $0x170] sm:$0xff] }
 0x447   :  { %2996 = vrcp.f32 %v1268_v54  ;;  %v1280_v4 = vand.u32 2147483648, %v1268_v54  ;;  %v1278_v5 = vand.u32 2147483647, %v1268_v54  ;;  %vm1274_vm10 = vweird.f32 %v1268_v54 }
 0x448   :  { %1506 = vmatpush.msra.mxu3 %v1489_v20  ;;  %v1673_v20 = vld [vmem:[#allocation10 + $0x80] sm:$0xff] }
 0x449   :  { %v1281_v56 = vor.u32 1.1754944e-38, %v1280_v4  ;;  %vm1279_vm12 = vcmp.eq.f32.partialorder %v1278_v5, 8.507059e+37  ;;  %v1701_v4 = vld [vmem:[#allocation10 + $0x160] sm:$0xff]  ;;  %v1698_v5 = vld [vmem:[#allocation10 + $0x148] sm:$0xff] }
 0x44a   :  { %v2995_v14 = vpop.eup %2994  ;;  %1507 = vmatpush.msra.mxu3 %v1488_v23  ;;  %v1674_v23 = vld [vmem:[#allocation10 + $0x88] sm:$0xff] }
 0x44b   :  { %v1289_v39 = vadd.f32 1.0, %v2995_v14  ;;  %v4184_v14 = vld [vmem:[#allocation12 + $0x2a0] sm:$0xff] }
 0x44c   :  { %1508 = vmatpush.msra.mxu3 %v1487_v51  ;;  %v4221_v51 = vld [vmem:[#allocation12 + $0x198] sm:$0xff] }
 0x44d   :  { %v2997_v9 = vpop.eup %2996  ;;  %2998 = vrcp.f32 %v1289_v39  ;;  %v1301_v33 = vand.u32 2147483648, %v1289_v39  ;;  %v1299_v3 = vand.u32 2147483647, %v1289_v39  ;;  %vm1295_vm14 = vweird.f32 %v1289_v39 }
 0x44e   :  { %v1270_v49 = vmul.f32 %v2997_v9, %v1268_v54  ;;  %vm1275_vm9 = vweird.f32 %v2997_v9  ;;  %1509 = vmatpush.msra.mxu3 %v1486_v16  ;;  %v1520_v54 = vld [vmem:[#allocation12 + $0x38] sm:$0xff] }
 0x44f   :  { %vm1276_vm11 = vmor %vm1274_vm10, %vm1275_vm9  ;;  %v1302_v31 = vor.u32 1.1754944e-38, %v1301_v33  ;;  %vm1300_vm0 = vcmp.eq.f32.partialorder %v1299_v3, 8.507059e+37  ;;  %1547 = vmatpush.msra.mxu0 %v1520_v54  ;;  %v1688_v3 = vld [vmem:[#allocation10 + $0xf8] sm:$0xff]  ;;  %v4223_v54 = vld [vmem:[#allocation12 + $0x180] sm:$0xff] }
 0x450   :  { %v1271_v61 = vsub.f32 1.0, %v1270_v49  ;;  %1510 = vmatpush.msra.mxu3 %v1485_v52  ;;  %v4188_v49 = vld [vmem:[#allocation12 + $0x288] sm:$0xff]  ;;  %5009 = vst [vmem:[#allocation24_spill] sm:$0xff] %v4223_v54 }
 0x451   :  { %1548 = vmatpush.msra.mxu0 %v1519_v10  ;;  %v1667_v10 = vld [vmem:[#allocation10 + $0x50] sm:$0xff] }
 0x452   :  { %v1272_v21 = vmul.f32 %v2997_v9, %v1271_v61  ;;  %1511 = vmatpush.msra.mxu3 %v1484_v22  ;;  %v1700_v61 = vld [vmem:[#allocation10 + $0x158] sm:$0xff]  ;;  %v1671_v22 = vld [vmem:[#allocation10 + $0x70] sm:$0xff] }
 0x453   :  { %v2999_v26 = vpop.eup %2998 }
 0x454   :  { %v1291_v60 = vmul.f32 %v2999_v26, %v1289_v39  ;;  %v1273_v24 = vadd.f32 %v2997_v9, %v1272_v21  ;;  %vm1296_vm13 = vweird.f32 %v2999_v26  ;;  %1512 = vmatpush.msra.mxu3 %v1483_v0  ;;  %v5006_v39 = vld [vmem:[#allocation31_spill] sm:$0xff]  ;;  %v1697_v21 = vld [vmem:[#allocation10 + $0x140] sm:$0xff] }
 0x455   :  { %vm1297_vm15 = vmor %vm1295_vm14, %vm1296_vm13  ;;  %1549 = vmatpush.msra.mxu0 %v5006_v39  ;;  %v1664_v39 = vld [vmem:[#allocation10 + $0x38] sm:$0xff] }
 0x456   :  { %v1292_v1 = vsub.f32 1.0, %v1291_v60  ;;  %v1277_v36 = vsel %vm1276_vm11, %v2997_v9, %v1273_v24  ;;  %1513 = vmatpush.msra.mxu3 %v1482_v17  ;;  %v1704_v9 = vld [vmem:[#allocation10 + $0x178] sm:$0xff]  ;;  %v1695_v60 = vld [vmem:[#allocation10 + $0x130] sm:$0xff]  ;;  %v4197_v24 = vld [vmem:[#allocation12 + $0x240] sm:$0xff] }
 0x457   :  { %v1282_v40 = vsel %vm1279_vm12, %v1281_v56, %v1277_v36  ;;  %v5007_v56 = vld [vmem:[#allocation26_spill] sm:$0xff]  ;;  %v1692_v36 = vld [vmem:[#allocation10 + $0x118] sm:$0xff] }
 0x458   :  { %v1293_v15 = vmul.f32 %v2999_v26, %v1292_v1  ;;  %v1306_v32 = vmul.f32 %v1282_v40, %v1258_v34  ;;  %1754 = vmatpush.msrb.mxu3 %v1703_v59  ;;  %v244_v1 = vadd.f32 %v5007_v56, %v3751_v28  ;;  %v1691_v34 = vld [vmem:[#allocation10 + $0x110] sm:$0xff]  ;;  %v1668_v17 = vld [vmem:[#allocation10 + $0x58] sm:$0xff]  ;;  %v1665_v59 = vld [vmem:[#allocation10 + $0x40] sm:$0xff] }
 0x459   :  { %v1659_v56 = vld [vmem:[#allocation10 + $0x10] sm:$0xff] }
 0x45a   :  { %v1294_v46 = vadd.f32 %v2999_v26, %v1293_v15  ;;  %v1307_v29 = vadd.f32 %v1306_v32, %v282_v58  ;;  %1755 = vmatpush.msrb.mxu3 %v1700_v61  ;;  %v5008_v15 = vld [vmem:[#allocation21_spill] sm:$0xff]  ;;  %v1661_v61 = vld [vmem:[#allocation10 + $0x20] sm:$0xff] }
 0x45c   :  { %v1298_v38 = vsel %vm1297_vm15, %v2999_v26, %v1294_v46  ;;  %3000 = vtanh.f32 %v1307_v29  ;;  %v4194_v26 = vld [vmem:[#allocation12 + $0x258] sm:$0xff]  ;;  %1756 = vmatpush.msrb.mxu3 %v1697_v21  ;;  %v1689_v46 = vld [vmem:[#allocation10 + $0x100] sm:$0xff]  ;;  %v4206_v29 = vld [vmem:[#allocation12 + $0x210] sm:$0xff] }
 0x45d   :  { %v1303_v42 = vsel %vm1300_vm0, %v1302_v31, %v1298_v38 }
 0x45e   :  { %v1309_v18 = vsub.f32 1.0, %v1303_v42  ;;  %v1311_v45 = vmul.f32 %v1303_v42, %v4134_v48  ;;  %1757 = vmatpush.msrb.mxu3 %v1694_v13  ;;  %v1685_v42 = vld [vmem:[#allocation10 + $0xe0] sm:$0xff] }
 0x460   :  { %1758 = vmatpush.msrb.mxu3 %v1691_v34 }
 0x462   :  { %v3001_v27 = vpop.eup %3000  ;;  %1759 = vmatpush.msrb.mxu3 %v1688_v3 }
 0x463   :  { %v1310_v43 = vmul.f32 %v3001_v27, %v1309_v18  ;;  %v1686_v18 = vld [vmem:[#allocation10 + $0xe8] sm:$0xff]  ;;  %v4209_v27 = vld [vmem:[#allocation12 + $0x1f8] sm:$0xff] }
 0x464   :  { %1760 = vmatpush.msrb.mxu3 %v1685_v42 }
 0x465   :  { %v4164_v25 = vadd.f32 %v1311_v45, %v1310_v43  ;;  %v1682_v43 = vld [vmem:[#allocation10 + $0xc8] sm:$0xff]  ;;  %v1683_v45 = vld [vmem:[#allocation10 + $0xd0] sm:$0xff] }
 0x466   :  { %1761 = vmatpush.msrb.mxu3 %v1682_v43  ;;  %v5010_v43 = vld [vmem:[#allocation27_spill] sm:$0xff] }
 0x467   :  { %1347 = vmatmul.f32.vlgmr.msrb.gmra.mxu0 %v4164_v25  ;;  %1383 = vmatmul.f32.vlgmr.msra.gmra.mxu1 %v4164_v25 }
 0x468   :  { %1423 = vmatmul.f32.vlgmr.msrb.gmra.mxu2 %v4164_v25  ;;  %1877 = vmatpush.msra.mxu1 %v4175_v6 }
 0x469   :  { %1795 = vmatpush.msrb.mxu0 %v1704_v9  ;;  %1762 = vmatpush.msrb.mxu3 %v1679_v47 }
 0x46a   :  { %1878 = vmatpush.msra.mxu1 %v4178_v2 }
 0x46b   :  { %1796 = vmatpush.msrb.mxu0 %v1701_v4  ;;  %1763 = vmatpush.msrb.mxu3 %v1676_v41  ;;  %v1662_v4 = vld [vmem:[#allocation10 + $0x28] sm:$0xff] }
 0x46c   :  { %1879 = vmatpush.msra.mxu1 %v4181_v57 }
 0x46d   :  { %1797 = vmatpush.msrb.mxu0 %v1698_v5  ;;  %1764 = vmatpush.msrb.mxu3 %v1673_v20 }
 0x46e   :  { %1880 = vmatpush.msra.mxu1 %v4184_v14 }
 0x46f   :  { %1798 = vmatpush.msrb.mxu0 %v1695_v60  ;;  %1765 = vmatpush.msrb.mxu3 %v1670_v53  ;;  %v1658_v60 = vld [vmem:[#allocation10 + $0x8] sm:$0xff] }
 0x470   :  { %1729 = vmatmul.f32.vlgmr.msra.gmra.mxu2 %v5004_v11  ;;  %1881 = vmatpush.msra.mxu1 %v4188_v49 }
 0x471   :  { %1799 = vmatpush.msrb.mxu0 %v1692_v36  ;;  %1766 = vmatpush.msrb.mxu3 %v1667_v10 }
 0x472   :  { %1882 = vmatpush.msra.mxu1 %v4191_v19 }
 0x473   :  { %1800 = vmatpush.msrb.mxu0 %v1689_v46  ;;  %1767 = vmatpush.msrb.mxu3 %v1664_v39  ;;  %v4245_v39 = vld [vmem:[#allocation12 + $0x2c0] sm:$0xff] }
 0x474   :  { %1883 = vmatpush.msra.mxu1 %v4194_v26 }
 0x475   :  { %1801 = vmatpush.msrb.mxu0 %v1686_v18  ;;  %1768 = vmatpush.msrb.mxu3 %v1661_v61  ;;  %v5011_v61 = vmov 0.0  }
 0x476   :  { %1884 = vmatpush.msra.mxu1 %v4197_v24 }
 0x477   :  { %1802 = vmatpush.msrb.mxu0 %v1683_v45  ;;  %1769 = vmatpush.msrb.mxu3 %v1658_v60  ;;  %v285_v45 = vadd.f32 %v5010_v43, %v3757_v55  ;;  %v4287_v60 = vld [vmem:[#allocation12 + $0x200] sm:$0xff] }
 0x478   :  { %1732 = vmatmul.f32.gmra.mxu2 %v5005_v7  ;;  %1885 = vmatpush.msra.mxu1 %v4202_v37 }
 0x479   :  { %1803 = vmatpush.msrb.mxu0 %v1680_v50 }
 0x47a   :  { %1886 = vmatpush.msra.mxu1 %v4206_v29 }
 0x47b   :  { %1804 = vmatpush.msrb.mxu0 %v1677_v8 }
 0x47c   :  { %1887 = vmatpush.msra.mxu1 %v4209_v27 }
 0x47d   :  { %1805 = vmatpush.msrb.mxu0 %v1674_v23 }
 0x47e   :  { %1888 = vmatpush.msra.mxu1 %v4212_v44 }
 0x47f   :  { %1806 = vmatpush.msrb.mxu0 %v1671_v22 }
 0x480   :  { %1735 = vmatmul.f32.gmra.mxu2 %v3917_v30  ;;  %1889 = vmatpush.msra.mxu1 %v4215_v12 }
 0x481   :  { %1807 = vmatpush.msrb.mxu0 %v1668_v17  ;;  %v4235_v17 = vld [vmem:[#allocation12 + $0x2f0] sm:$0xff] }
 0x482   :  { %1890 = vmatpush.msra.mxu1 %v4218_v62 }
 0x483   :  { %1808 = vmatpush.msrb.mxu0 %v1665_v59  ;;  %v4250_v59 = vld [vmem:[#allocation12 + $0x2a8] sm:$0xff] }
 0x484   :  { %1891 = vmatpush.msra.mxu1 %v4221_v51 }
 0x485   :  { %1809 = vmatpush.msrb.mxu0 %v1662_v4  ;;  %v4262_v4 = vld [vmem:[#allocation12 + $0x278] sm:$0xff] }
 0x486   :  { %1892 = vmatpush.msra.mxu1 %v4223_v54 }
 0x487   :  { %1810 = vmatpush.msrb.mxu0 %v1659_v56  ;;  %v4292_v56 = vld [vmem:[#allocation12 + $0x1e8] sm:$0xff] }
 0x488   :  { %1738 = vmatmul.f32.gmra.mxu2 %v4089_v63 }
 0x490   :  { %1741 = vmatmul.f32.gmra.mxu2 %v4134_v48 }
 0x498   :  { %1744 = vmatmul.f32.gmra.mxu2 %v4164_v25 }
 0x4e4   :  { %v1348_v58 = vpop.f32.mrf.mxu0  ;;  %v1384_v40 = vpop.f32.mrf.mxu1 }
 0x4e5   :  { %v1431_v33 = vadd.f32 %v1348_v58, %v5008_v15  ;;  %v1452_v32 = vadd.f32 %v1384_v40, %v244_v1  ;;  %v2938_v58 = vld [vmem:[%s4963_s6] ss:$0 sm:$0xff] }
 0x4e7   :  { %v2898_v31 = vmul.f32 -1.442695, %v1431_v33  ;;  %v2899_v38 = vmul.f32 -1.442695, %v1452_v32 }
 0x4e9   :  { %3002 = vpow2.f32 %v2898_v31 }
 0x4ea   :  { %3004 = vpow2.f32 %v2899_v38 }
 0x4eb   :  { %v1424_v32 = vpop.f32.mrf.mxu2 }
 0x4ec   :  { %v1425_v31 = vadd.f32 %v2938_v58, %v1424_v32  ;;  %v4315_v58 = vld [vmem:[#allocation12 + $0x188] sm:$0xff]  ;;  %v4370_v32 = vld [vmem:[#allocation12 + $0x298] sm:$0xff] }
 0x4ed   :  { %5013 = vst [vmem:[#allocation23_spill] sm:$0xff] %v4315_v58 }
 0x4ef   :  { %v3003_v35 = vpop.eup %3002 }
 0x4f0   :  { %v3005_v16 = vpop.eup %3004  ;;  %v1435_v52 = vadd.f32 1.0, %v3003_v35 }
 0x4f1   :  { %v1456_v0 = vadd.f32 1.0, %v3005_v16 }
 0x4f2   :  { %3006 = vrcp.f32 %v1435_v52  ;;  %v1447_v36 = vand.u32 2147483648, %v1435_v52  ;;  %v1445_v15 = vand.u32 2147483647, %v1435_v52  ;;  %vm1441_vm2 = vweird.f32 %v1435_v52 }
 0x4f3   :  { %3008 = vrcp.f32 %v1456_v0  ;;  %v1468_v47 = vand.u32 2147483648, %v1456_v0  ;;  %vm1462_vm6 = vweird.f32 %v1456_v0  ;;  %v1466_v41 = vand.u32 2147483647, %v1456_v0 }
 0x4f4   :  { %v1448_v46 = vor.u32 1.1754944e-38, %v1447_v36  ;;  %vm1446_vm4 = vcmp.eq.f32.partialorder %v1445_v15, 8.507059e+37  ;;  %v4310_v36 = vld [vmem:[#allocation12 + $0x1a0] sm:$0xff] }
 0x4f5   :  { %v1469_v20 = vor.u32 1.1754944e-38, %v1468_v47  ;;  %vm1467_vm8 = vcmp.eq.f32.partialorder %v1466_v41, 8.507059e+37  ;;  %5012 = vst [vmem:[#allocation25_spill] sm:$0xff] %v4310_v36  ;;  %v4402_v41 = vld [vmem:[#allocation12 + $0x220] sm:$0xff] }
 0x4f8   :  { %v3007_v9 = vpop.eup %3006 }
 0x4f9   :  { %v3009_v21 = vpop.eup %3008  ;;  %v1437_v5 = vmul.f32 %v3007_v9, %v1435_v52  ;;  %vm1442_vm1 = vweird.f32 %v3007_v9 }
 0x4fa   :  { %v1458_v13 = vmul.f32 %v3009_v21, %v1456_v0  ;;  %vm1443_vm3 = vmor %vm1441_vm2, %vm1442_vm1  ;;  %vm1463_vm5 = vweird.f32 %v3009_v21  ;;  %v4241_v0 = vld [vmem:[#allocation12 + $0x2d8] sm:$0xff] }
 0x4fb   :  { %v1438_v1 = vsub.f32 1.0, %v1437_v5  ;;  %vm1464_vm7 = vmor %vm1462_vm6, %vm1463_vm5  ;;  %v4271_v5 = vld [vmem:[#allocation12 + $0x248] sm:$0xff] }
 0x4fc   :  { %v1459_v34 = vsub.f32 1.0, %v1458_v13  ;;  %v4282_v13 = vld [vmem:[#allocation12 + $0x218] sm:$0xff] }
 0x4fd   :  { %v1439_v40 = vmul.f32 %v3007_v9, %v1438_v1  ;;  %v4303_v1 = vld [vmem:[#allocation12 + $0x1b8] sm:$0xff] }
 0x4fe   :  { %v1460_v33 = vmul.f32 %v3009_v21, %v1459_v34  ;;  %v4305_v34 = vld [vmem:[#allocation12 + $0x2f8] sm:$0xff] }
 0x4ff   :  { %v1440_v3 = vadd.f32 %v3007_v9, %v1439_v40  ;;  %1954 = vmatpush.msrb.mxu2 %v4305_v34 }
 0x500   :  { %v1461_v42 = vadd.f32 %v3009_v21, %v1460_v33  ;;  %v4368_v33 = vld [vmem:[#allocation12 + $0x2b0] sm:$0xff] }
 0x501   :  { %v1444_v38 = vsel %vm1443_vm3, %v3007_v9, %v1440_v3  ;;  %v4255_v9 = vld [vmem:[#allocation12 + $0x290] sm:$0xff] }
 0x502   :  { %v1449_v18 = vsel %vm1446_vm4, %v1448_v46, %v1444_v38  ;;  %v1465_v35 = vsel %vm1464_vm7, %v3009_v21, %v1461_v42  ;;  %v4266_v21 = vld [vmem:[#allocation12 + $0x260] sm:$0xff]  ;;  %v5015_v38 = vld [vmem:[#allocation22_spill] sm:$0xff] }
 0x503   :  { %v1473_v50 = vmul.f32 %v1449_v18, %v1425_v31  ;;  %v1470_v23 = vsel %vm1467_vm8, %v1469_v20, %v1465_v35  ;;  %v4374_v46 = vld [vmem:[#allocation12 + $0x280] sm:$0xff]  ;;  %v4385_v18 = vld [vmem:[#allocation12 + $0x250] sm:$0xff]  ;;  %v4406_v20 = vld [vmem:[#allocation12 + $0x208] sm:$0xff] }
 0x504   :  { %v1476_v16 = vsub.f32 1.0, %v1470_v23  ;;  %v1478_v22 = vmul.f32 %v1470_v23, %v4164_v25  ;;  %v4411_v23 = vld [vmem:[#allocation12 + $0x1f0] sm:$0xff] }
 0x505   :  { %v1474_v8 = vadd.f32 %v1473_v50, %v285_v45  ;;  %v4390_v45 = vld [vmem:[#allocation12 + $0x238] sm:$0xff] }
 0x507   :  { %3010 = vtanh.f32 %v1474_v8 }
 0x50d   :  { %v3011_v52 = vpop.eup %3010 }
 0x50e   :  { %v1477_v53 = vmul.f32 %v3011_v52, %v1476_v16  ;;  %v4418_v52 = vld [vmem:[#allocation12 + $0x1d8] sm:$0xff] }
 0x50f   :  { %5016 = vst [vmem:[#allocation30_spill] sm:$0xff] %v4418_v52 }
 0x510   :  { %v4233_v10 = vadd.f32 %v1478_v22, %v1477_v53  ;;  %v4425_v22 = vld [vmem:[#allocation12 + $0x1c0] sm:$0xff] }
 0x511   :  { %5017 = vst [vmem:[#allocation31_spill] sm:$0xff] %v4425_v22 }
 0x512   :  { %1514 = vmatmul.f32.vlgmr.msra.gmra.mxu3 %v4233_v10  ;;  %1550 = vmatmul.f32.vlgmr.msra.gmra.mxu0 %v4233_v10 }
 0x513   :  { %1590 = vmatmul.f32.vlgmr.msrb.gmra.mxu1 %v4233_v10  ;;  %1747 = vmatmul.f32.gmra.mxu2 %v4233_v10 }
 0x514   :  { %1913 = vmatpush.msrb.mxu1 %v4235_v17  ;;  %2024 = vmatpush.msra.mxu3 %v4175_v6 }
 0x515   :  { %2044 = vmatpush.msra.mxu0 %v4235_v17 }
 0x516   :  { %1914 = vmatpush.msrb.mxu1 %v4241_v0  ;;  %2025 = vmatpush.msra.mxu3 %v4178_v2 }
 0x517   :  { %2045 = vmatpush.msra.mxu0 %v4241_v0 }
 0x518   :  { %1915 = vmatpush.msrb.mxu1 %v4245_v39  ;;  %2026 = vmatpush.msra.mxu3 %v4181_v57 }
 0x519   :  { %2046 = vmatpush.msra.mxu0 %v4245_v39 }
 0x51a   :  { %1916 = vmatpush.msrb.mxu1 %v4250_v59  ;;  %1770 = vmatmul.f32.vlgmr.msrb.gmra.mxu3 %v5004_v11 }
 0x51b   :  { %1811 = vmatmul.f32.vlgmr.msrb.gmra.mxu0 %v5004_v11  ;;  %1893 = vmatmul.f32.vlgmr.msra.gmra.mxu1 %v5011_v61  ;;  %v4276_v11 = vld [vmem:[#allocation12 + $0x230] sm:$0xff] }
 0x51c   :  { %1917 = vmatpush.msrb.mxu1 %v4255_v9  ;;  %2027 = vmatpush.msra.mxu3 %v4184_v14 }
 0x51d   :  { %2047 = vmatpush.msra.mxu0 %v4250_v59 }
 0x51e   :  { %1918 = vmatpush.msrb.mxu1 %v4262_v4  ;;  %2028 = vmatpush.msra.mxu3 %v4188_v49 }
 0x51f   :  { %2048 = vmatpush.msra.mxu0 %v4255_v9 }
 0x520   :  { %1919 = vmatpush.msrb.mxu1 %v4266_v21  ;;  %2029 = vmatpush.msra.mxu3 %v4191_v19 }
 0x521   :  { %2049 = vmatpush.msra.mxu0 %v4262_v4 }
 0x522   :  { %1920 = vmatpush.msrb.mxu1 %v4271_v5  ;;  %1773 = vmatmul.f32.gmra.mxu3 %v5005_v7 }
 0x523   :  { %1814 = vmatmul.f32.gmra.mxu0 %v5005_v7  ;;  %2030 = vmatpush.msra.mxu3 %v4194_v26  ;;  %v4297_v7 = vld [vmem:[#allocation12 + $0x1d0] sm:$0xff] }
 0x524   :  { %1921 = vmatpush.msrb.mxu1 %v4276_v11  ;;  %2050 = vmatpush.msra.mxu0 %v4266_v21 }
 0x525   :  { %2031 = vmatpush.msra.mxu3 %v4197_v24 }
 0x526   :  { %1922 = vmatpush.msrb.mxu1 %v4282_v13  ;;  %2051 = vmatpush.msra.mxu0 %v4271_v5 }
 0x527   :  { %2032 = vmatpush.msra.mxu3 %v4202_v37 }
 0x528   :  { %1923 = vmatpush.msrb.mxu1 %v4287_v60  ;;  %2052 = vmatpush.msra.mxu0 %v4276_v11 }
 0x529   :  { %2033 = vmatpush.msra.mxu3 %v4206_v29 }
 0x52a   :  { %1924 = vmatpush.msrb.mxu1 %v4292_v56  ;;  %1776 = vmatmul.f32.gmra.mxu3 %v3917_v30 }
 0x52b   :  { %1817 = vmatmul.f32.gmra.mxu0 %v3917_v30  ;;  %2034 = vmatpush.msra.mxu3 %v4209_v27  ;;  %v4356_v30 = vld [vmem:[#allocation12 + $0x2e0] sm:$0xff] }
 0x52c   :  { %1925 = vmatpush.msrb.mxu1 %v4297_v7  ;;  %2053 = vmatpush.msra.mxu0 %v4282_v13 }
 0x52d   :  { %2035 = vmatpush.msra.mxu3 %v4212_v44  ;;  %1955 = vmatpush.msrb.mxu2 %v4356_v30 }
 0x52e   :  { %1926 = vmatpush.msrb.mxu1 %v4303_v1  ;;  %2054 = vmatpush.msra.mxu0 %v4287_v60 }
 0x52f   :  { %2036 = vmatpush.msra.mxu3 %v4215_v12 }
 0x530   :  { %1927 = vmatpush.msrb.mxu1 %v4310_v36  ;;  %2055 = vmatpush.msra.mxu0 %v4292_v56 }
 0x531   :  { %2037 = vmatpush.msra.mxu3 %v4218_v62 }
 0x532   :  { %1928 = vmatpush.msrb.mxu1 %v4315_v58  ;;  %1779 = vmatmul.f32.gmra.mxu3 %v4089_v63 }
 0x533   :  { %1929 = vmatmul.f32.vlgmr.msrb.gmra.mxu1 %v5011_v61  ;;  %1820 = vmatmul.f32.gmra.mxu0 %v4089_v63  ;;  %v4358_v63 = vld [vmem:[#allocation12 + $0x2c8] sm:$0xff] }
 0x534   :  { %2064 = vmatpush.msra.mxu1 %v4305_v34  ;;  %2038 = vmatpush.msra.mxu3 %v4221_v51 }
 0x535   :  { %2056 = vmatpush.msra.mxu0 %v4297_v7  ;;  %1956 = vmatpush.msrb.mxu2 %v4358_v63 }
 0x536   :  { %2039 = vmatpush.msra.mxu3 %v4223_v54  ;;  %2065 = vmatpush.msra.mxu1 %v4356_v30 }
 0x537   :  { %2057 = vmatpush.msra.mxu0 %v4303_v1  ;;  %1957 = vmatpush.msrb.mxu2 %v4368_v33 }
 0x538   :  { %2154 = vmatpush.msrb.mxu3 %v4235_v17  ;;  %2066 = vmatpush.msra.mxu1 %v4358_v63 }
 0x539   :  { %2058 = vmatpush.msra.mxu0 %v4310_v36  ;;  %1958 = vmatpush.msrb.mxu2 %v4370_v32 }
 0x53a   :  { %2155 = vmatpush.msrb.mxu3 %v4241_v0  ;;  %2067 = vmatpush.msra.mxu1 %v4368_v33 }
 0x53b   :  { %1782 = vmatmul.f32.gmra.mxu3 %v4134_v48  ;;  %1823 = vmatmul.f32.gmra.mxu0 %v4134_v48  ;;  %v5014_v48 = vld [vmem:[#allocation28_spill] sm:$0xff] }
 0x53c   :  { %2156 = vmatpush.msrb.mxu3 %v4245_v39  ;;  %2059 = vmatpush.msra.mxu0 %v4315_v58 }
 0x53d   :  { %2068 = vmatpush.msra.mxu1 %v4370_v32  ;;  %1959 = vmatpush.msrb.mxu2 %v4374_v46 }
 0x53e   :  { %2174 = vmatpush.msrb.mxu0 %v4305_v34  ;;  %2157 = vmatpush.msrb.mxu3 %v4250_v59 }
 0x53f   :  { %2069 = vmatpush.msra.mxu1 %v4374_v46 }
 0x540   :  { %2158 = vmatpush.msrb.mxu3 %v4255_v9  ;;  %2175 = vmatpush.msrb.mxu0 %v4356_v30 }
 0x542   :  { %2159 = vmatpush.msrb.mxu3 %v4262_v4  ;;  %2176 = vmatpush.msrb.mxu0 %v4358_v63 }
 0x543   :  { %1785 = vmatmul.f32.gmra.mxu3 %v4164_v25  ;;  %1826 = vmatmul.f32.gmra.mxu0 %v4164_v25  ;;  %v247_v25 = vadd.f32 %v5014_v48, %v3751_v28  ;;  %v4379_v28 = vld [vmem:[#allocation12 + $0x268] sm:$0xff] }
 0x544   :  { %2160 = vmatpush.msrb.mxu3 %v4266_v21  ;;  %2177 = vmatpush.msrb.mxu0 %v4368_v33 }
 0x545   :  { %1960 = vmatpush.msrb.mxu2 %v4379_v28  ;;  %2070 = vmatpush.msra.mxu1 %v4379_v28 }
 0x546   :  { %2161 = vmatpush.msrb.mxu3 %v4271_v5  ;;  %2178 = vmatpush.msrb.mxu0 %v4370_v32 }
 0x547   :  { %1961 = vmatpush.msrb.mxu2 %v4385_v18  ;;  %2071 = vmatpush.msra.mxu1 %v4385_v18 }
 0x548   :  { %2162 = vmatpush.msrb.mxu3 %v4276_v11  ;;  %2179 = vmatpush.msrb.mxu0 %v4374_v46 }
 0x549   :  { %1962 = vmatpush.msrb.mxu2 %v4390_v45  ;;  %2072 = vmatpush.msra.mxu1 %v4390_v45 }
 0x54a   :  { %2163 = vmatpush.msrb.mxu3 %v4282_v13  ;;  %2180 = vmatpush.msrb.mxu0 %v4379_v28 }
 0x54b   :  { %1788 = vmatmul.f32.gmra.mxu3 %v4233_v10  ;;  %1829 = vmatmul.f32.gmra.mxu0 %v4233_v10 }
 0x54c   :  { %2164 = vmatpush.msrb.mxu3 %v4287_v60  ;;  %2181 = vmatpush.msrb.mxu0 %v4385_v18 }
 0x54d   :  { %1963 = vmatpush.msrb.mxu2 %v4402_v41  ;;  %2073 = vmatpush.msra.mxu1 %v4402_v41 }
 0x54e   :  { %2165 = vmatpush.msrb.mxu3 %v4292_v56  ;;  %2182 = vmatpush.msrb.mxu0 %v4390_v45 }
 0x54f   :  { %1964 = vmatpush.msrb.mxu2 %v4406_v20  ;;  %2074 = vmatpush.msra.mxu1 %v4406_v20 }
 0x550   :  { %2166 = vmatpush.msrb.mxu3 %v4297_v7  ;;  %2183 = vmatpush.msrb.mxu0 %v4402_v41 }
 0x551   :  { %1965 = vmatpush.msrb.mxu2 %v4411_v23  ;;  %2075 = vmatpush.msra.mxu1 %v4411_v23 }
 0x552   :  { %2167 = vmatpush.msrb.mxu3 %v4303_v1  ;;  %2184 = vmatpush.msrb.mxu0 %v4406_v20 }
 0x553   :  { %1966 = vmatpush.msrb.mxu2 %v4418_v52  ;;  %2076 = vmatpush.msra.mxu1 %v4418_v52 }
 0x554   :  { %2168 = vmatpush.msrb.mxu3 %v4310_v36  ;;  %2185 = vmatpush.msrb.mxu0 %v4411_v23 }
 0x555   :  { %1967 = vmatpush.msrb.mxu2 %v4425_v22  ;;  %2077 = vmatpush.msra.mxu1 %v4425_v22 }
 0x556   :  { %2169 = vmatpush.msrb.mxu3 %v4315_v58  ;;  %2186 = vmatpush.msrb.mxu0 %v4418_v52 }
 0x558   :  { %2187 = vmatpush.msrb.mxu0 %v4425_v22 }
 0x58f   :  { %v1551_v40 = vpop.f32.mrf.mxu0 }
 0x590   :  { %v1619_v15 = vadd.f32 %v1551_v40, %v247_v25  ;;  %v4430_v25 = vld [vmem:[#allocation12 + $0x1a8] sm:$0xff]  ;;  %v4432_v40 = vld [vmem:[#allocation12 + $0x190] sm:$0xff] }
 0x591   :  { %5018 = vst [vmem:[#allocation26_spill] sm:$0xff] %v4430_v25  ;;  %1968 = vmatpush.msrb.mxu2 %v4430_v25  ;;  %2078 = vmatpush.msra.mxu1 %v4430_v25 }
 0x592   :  { %v2901_v3 = vmul.f32 -1.442695, %v1619_v15  ;;  %5019 = vst [vmem:[#allocation21_spill] sm:$0xff] %v4432_v40  ;;  %2188 = vmatpush.msrb.mxu0 %v4430_v25 }
 0x593   :  { %1969 = vmatpush.msrb.mxu2 %v4432_v40  ;;  %2079 = vmatpush.msra.mxu1 %v4432_v40 }
 0x594   :  { %3012 = vpow2.f32 %v2901_v3  ;;  %2189 = vmatpush.msrb.mxu0 %v4432_v40 }
 0x595   :  { %v1515_v31 = vpop.f32.mrf.mxu3  ;;  %2134 = vmatpush.msra.mxu2 %v4175_v6  ;;  %2244 = vmatpush.msrb.mxu1 %v4175_v6 }
 0x596   :  { %v1598_v42 = vadd.f32 %v1515_v31, %v5015_v38 }
 0x597   :  { %2135 = vmatpush.msra.mxu2 %v4178_v2  ;;  %2245 = vmatpush.msrb.mxu1 %v4178_v2 }
 0x598   :  { %v2900_v43 = vmul.f32 -1.442695, %v1598_v42  ;;  %v2939_v42 = vld [vmem:[%s4963_s6] ss:$0 sm:$0xff] }
 0x599   :  { %2136 = vmatpush.msra.mxu2 %v4181_v57  ;;  %2246 = vmatpush.msrb.mxu1 %v4181_v57 }
 0x59a   :  { %v3013_v47 = vpop.eup %3012  ;;  %3014 = vpow2.f32 %v2900_v43 }
 0x59b   :  { %v4396_v50 = vadd.f32 1.0, %v3013_v47  ;;  %2137 = vmatpush.msra.mxu2 %v4184_v14  ;;  %2247 = vmatpush.msrb.mxu1 %v4184_v14 }
 0x59d   :  { %3016 = vrcp.f32 %v4396_v50  ;;  %vm1629_vm14 = vweird.f32 %v4396_v50  ;;  %2138 = vmatpush.msra.mxu2 %v4188_v49  ;;  %2248 = vmatpush.msrb.mxu1 %v4188_v49 }
 0x59f   :  { %2139 = vmatpush.msra.mxu2 %v4191_v19  ;;  %2249 = vmatpush.msrb.mxu1 %v4191_v19 }
 0x5a0   :  { %v3015_v8 = vpop.eup %3014 }
 0x5a1   :  { %v1602_v35 = vadd.f32 1.0, %v3015_v8  ;;  %v1591_v8 = vpop.f32.mrf.mxu1  ;;  %2140 = vmatpush.msra.mxu2 %v4194_v26  ;;  %2250 = vmatpush.msrb.mxu1 %v4194_v26 }
 0x5a2   :  { %v1592_v25 = vadd.f32 %v2939_v42, %v1591_v8  ;;  %v1705_v8 = vld [vmem:[%s4961_s4] sm:$0x7] }
 0x5a3   :  { %3018 = vrcp.f32 %v1602_v35  ;;  %v4414_v16 = vpop.eup %3016  ;;  %v1614_v38 = vand.u32 2147483648, %v1602_v35  ;;  %v1612_v47 = vand.u32 2147483647, %v1602_v35  ;;  %vm1608_vm10 = vweird.f32 %v1602_v35  ;;  %2141 = vmatpush.msra.mxu2 %v4197_v24  ;;  %2251 = vmatpush.msrb.mxu1 %v4197_v24 }
 0x5a4   :  { %v1625_v53 = vmul.f32 %v4414_v16, %v4396_v50  ;;  %vm1630_vm13 = vweird.f32 %v4414_v16 }
 0x5a5   :  { %v1615_v40 = vor.u32 1.1754944e-38, %v1614_v38  ;;  %vm1613_vm12 = vcmp.eq.f32.partialorder %v1612_v47, 8.507059e+37  ;;  %vm1631_vm15 = vmor %vm1629_vm14, %vm1630_vm13  ;;  %2142 = vmatpush.msra.mxu2 %v4202_v37  ;;  %2252 = vmatpush.msrb.mxu1 %v4202_v37 }
 0x5a6   :  { %v1626_v3 = vsub.f32 1.0, %v1625_v53 }
 0x5a7   :  { %2143 = vmatpush.msra.mxu2 %v4206_v29  ;;  %2253 = vmatpush.msrb.mxu1 %v4206_v29 }
 0x5a8   :  { %v1627_v53 = vmul.f32 %v4414_v16, %v1626_v3 }
 0x5a9   :  { %v3019_v48 = vpop.eup %3018  ;;  %2144 = vmatpush.msra.mxu2 %v4209_v27  ;;  %2254 = vmatpush.msrb.mxu1 %v4209_v27 }
 0x5aa   :  { %v1604_v15 = vmul.f32 %v3019_v48, %v1602_v35  ;;  %vm1609_vm9 = vweird.f32 %v3019_v48  ;;  %v1628_v52 = vadd.f32 %v4414_v16, %v1627_v53  ;;  %v5020_v35 = vld [vmem:[#allocation29_spill] sm:$0xff] }
 0x5ab   :  { %vm1610_vm11 = vmor %vm1608_vm10, %vm1609_vm9  ;;  %v288_v3 = vadd.f32 %v5020_v35, %v3757_v55  ;;  %2145 = vmatpush.msra.mxu2 %v4212_v44  ;;  %2255 = vmatpush.msrb.mxu1 %v4212_v44 }
 0x5ac   :  { %v1605_v31 = vsub.f32 1.0, %v1604_v15  ;;  %v1632_v42 = vsel %vm1631_vm15, %v4414_v16, %v1628_v52 }
 0x5ad   :  { %2146 = vmatpush.msra.mxu2 %v4215_v12  ;;  %2256 = vmatpush.msrb.mxu1 %v4215_v12 }
 0x5ae   :  { %v1606_v43 = vmul.f32 %v3019_v48, %v1605_v31 }
 0x5af   :  { %2147 = vmatpush.msra.mxu2 %v4218_v62  ;;  %2257 = vmatpush.msrb.mxu1 %v4218_v62 }
 0x5b0   :  { %v1607_v15 = vadd.f32 %v3019_v48, %v1606_v43  ;;  %v1635_v43 = vand.u32 2147483648, %v4396_v50 }
 0x5b1   :  { %2148 = vmatpush.msra.mxu2 %v4221_v51  ;;  %2258 = vmatpush.msrb.mxu1 %v4221_v51 }
 0x5b2   :  { %v1611_v31 = vsel %vm1610_vm11, %v3019_v48, %v1607_v15  ;;  %v1633_v48 = vand.u32 2147483647, %v4396_v50  ;;  %v1636_v55 = vor.u32 1.1754944e-38, %v1635_v43  ;;  %v4510_v15 = vperm.slane %v1705_v8, 0 }
 0x5b3   :  { %v1616_v22 = vsel %vm1613_vm12, %v1615_v40, %v1611_v31  ;;  %2149 = vmatpush.msra.mxu2 %v4223_v54  ;;  %2259 = vmatpush.msrb.mxu1 %v4223_v54  ;;  %v1894_v31 = vpop.f32.mrf.mxu1  ;;  %v4513_v43 = vperm.slane %v1705_v8, 1 }
 0x5b4   :  { %v1640_v38 = vmul.f32 %v1616_v22, %v1592_v25  ;;  %vm1634_vm0 = vcmp.eq.f32.partialorder %v1633_v48, 8.507059e+37  ;;  %5023 = vst [vmem:[#allocation22_spill] sm:$0xff] %v4510_v15 }
 0x5b5   :  { %v1637_v22 = vsel %vm1634_vm0, %v1636_v55, %v1632_v42  ;;  %5024 = vst [vmem:[#allocation29_spill] sm:$0xff] %v4513_v43 }
 0x5b6   :  { %v1641_v40 = vadd.f32 %v1640_v38, %v288_v3  ;;  %v1643_v50 = vsub.f32 1.0, %v1637_v22  ;;  %v1645_v25 = vmul.f32 %v1637_v22, %v4233_v10  ;;  %v1730_v10 = vpop.f32.mrf.mxu2  ;;  %v1771_v38 = vpop.f32.mrf.mxu3 }
 0x5b7   :  { %v1731_v35 = vadd.f32 %v1730_v10, %v4510_v15  ;;  %v1772_v55 = vadd.f32 %v1771_v38, %v4513_v43 }
 0x5b8   :  { %3020 = vtanh.f32 %v1641_v40 }
 0x5b9   :  { %v1975_v3 = vadd.f32 %v1894_v31, %v1731_v35 }
 0x5bb   :  { %v2903_v40 = vmul.f32 -1.442695, %v1975_v3  ;;  %v1930_v42 = vpop.f32.mrf.mxu1 }
 0x5bc   :  { %v1996_v22 = vadd.f32 %v1930_v42, %v1772_v55 }
 0x5bd   :  { %3022 = vpow2.f32 %v2903_v40 }
 0x5be   :  { %v3021_v16 = vpop.eup %3020 }
 0x5bf   :  { %v1644_v52 = vmul.f32 %v3021_v16, %v1643_v50  ;;  %v2904_v50 = vmul.f32 -1.442695, %v1996_v22 }
 0x5c1   :  { %v1646_v47 = vadd.f32 %v1645_v25, %v1644_v52  ;;  %3024 = vpow2.f32 %v2904_v50 }
 0x5c3   :  { %1750 = vmatmul.f32.gmra.mxu2 %v1646_v47  ;;  %1791 = vmatmul.f32.gmra.mxu3 %v1646_v47  ;;  %v3023_v52 = vpop.eup %3022 }
 0x5c4   :  { %1832 = vmatmul.f32.gmra.mxu0 %v1646_v47  ;;  %v1979_v25 = vadd.f32 1.0, %v3023_v52  ;;  %v4529_v52 = vld [vmem:[%s4963_s6 + $0x1] ss:$0 sm:$0xff] }
 0x5c6   :  { %3026 = vrcp.f32 %v1979_v25  ;;  %v1991_v50 = vand.u32 2147483648, %v1979_v25  ;;  %vm1985_vm2 = vweird.f32 %v1979_v25 }
 0x5c7   :  { %v3025_v47 = vpop.eup %3024 }
 0x5c8   :  { %v2000_v31 = vadd.f32 1.0, %v3025_v47  ;;  %v1989_v47 = vand.u32 2147483647, %v1979_v25  ;;  %v1992_v15 = vor.u32 1.1754944e-38, %v1991_v50 }
 0x5ca   :  { %3028 = vrcp.f32 %v2000_v31  ;;  %vm1990_vm4 = vcmp.eq.f32.partialorder %v1989_v47, 8.507059e+37  ;;  %v2012_v54 = vand.u32 2147483648, %v2000_v31  ;;  %vm2006_vm6 = vweird.f32 %v2000_v31 }
 0x5cb   :  { %1970 = vmatmul.f32.vlgmr.msrb.gmra.mxu2 %v5011_v61  ;;  %v4503_v61 = vpop.f32.mrf.mxu2 }
 0x5cc   :  { %2264 = vmatpush.msrb.mxu2 %v4235_v17  ;;  %5021 = vst [vmem:[#allocation27_spill] sm:$0xff] %v4503_v61  ;;  %v3027_v35 = vpop.eup %3026  ;;  %v1812_v61 = vpop.f32.mrf.mxu0 }
 0x5cd   :  { %vm1986_vm1 = vweird.f32 %v3027_v35 }
 0x5ce   :  { %2265 = vmatpush.msrb.mxu2 %v4241_v0  ;;  %vm1987_vm3 = vmor %vm1985_vm2, %vm1986_vm1 }
 0x5d0   :  { %2266 = vmatpush.msrb.mxu2 %v4245_v39 }
 0x5d2   :  { %2267 = vmatpush.msrb.mxu2 %v4250_v59 }
 0x5d3   :  { %v4508_v53 = vpop.f32.mrf.mxu2 }
 0x5d4   :  { %2268 = vmatpush.msrb.mxu2 %v4255_v9  ;;  %5022 = vst [vmem:[#allocation28_spill] sm:$0xff] %v4508_v53  ;;  %v3029_v53 = vpop.eup %3028 }
 0x5d5   :  { %v2002_v42 = vmul.f32 %v3029_v53, %v2000_v31  ;;  %vm2007_vm5 = vweird.f32 %v3029_v53 }
 0x5d6   :  { %2269 = vmatpush.msrb.mxu2 %v4262_v4  ;;  %vm2008_vm7 = vmor %vm2006_vm6, %vm2007_vm5 }
 0x5d7   :  { %v2003_v22 = vsub.f32 1.0, %v2002_v42 }
 0x5d8   :  { %2270 = vmatpush.msrb.mxu2 %v4266_v21 }
 0x5da   :  { %2271 = vmatpush.msrb.mxu2 %v4271_v5 }
 0x5db   :  { %v4515_v48 = vpop.f32.mrf.mxu2 }
 0x5dc   :  { %2272 = vmatpush.msrb.mxu2 %v4276_v11  ;;  %5025 = vst [vmem:[#allocation32_spill] sm:$0xff] %v4515_v48  ;;  %v1981_v48 = vmul.f32 %v3027_v35, %v1979_v25  ;;  %v2010_v25 = vand.u32 2147483647, %v2000_v31 }
 0x5de   :  { %2273 = vmatpush.msrb.mxu2 %v4282_v13  ;;  %v1982_v38 = vsub.f32 1.0, %v1981_v48  ;;  %vm2011_vm8 = vcmp.eq.f32.partialorder %v2010_v25, 8.507059e+37  ;;  %v5046_v25 = vld [vmem:[#allocation27_spill] sm:$0xff] }
 0x5e0   :  { %2274 = vmatpush.msrb.mxu2 %v4287_v60  ;;  %v1983_v40 = vmul.f32 %v3027_v35, %v1982_v38 }
 0x5e2   :  { %2275 = vmatpush.msrb.mxu2 %v4292_v56 }
 0x5e3   :  { %v4518_v16 = vpop.f32.mrf.mxu2 }
 0x5e4   :  { %2276 = vmatpush.msrb.mxu2 %v4297_v7  ;;  %5026 = vst [vmem:[#allocation33_spill] sm:$0xff] %v4518_v16  ;;  %v1984_v16 = vadd.f32 %v3027_v35, %v1983_v40 }
 0x5e6   :  { %2277 = vmatpush.msrb.mxu2 %v4303_v1  ;;  %v1988_v48 = vsel %vm1987_vm3, %v3027_v35, %v1984_v16  ;;  %v2013_v16 = vor.u32 1.1754944e-38, %v2012_v54 }
 0x5e7   :  { %v1993_v40 = vsel %vm1990_vm4, %v1992_v15, %v1988_v48 }
 0x5e8   :  { %2278 = vmatpush.msrb.mxu2 %v4310_v36 }
 0x5ea   :  { %2279 = vmatpush.msrb.mxu2 %v4315_v58 }
 0x5eb   :  { %v4520_v10 = vpop.f32.mrf.mxu2 }
 0x5ec   :  { %5027 = vst [vmem:[#allocation34_spill] sm:$0xff] %v4520_v10  ;;  %v2004_v10 = vmul.f32 %v3029_v53, %v2003_v22 }
 0x5f3   :  { %v4522_v3 = vpop.f32.mrf.mxu2 }
 0x5f4   :  { %5028 = vst [vmem:[#allocation35_spill] sm:$0xff] %v4522_v3  ;;  %v4531_v3 = vperm.slane %v1705_v8, 2 }
 0x5f6   :  { %v1813_v43 = vadd.f32 %v1812_v61, %v4531_v3 }
 0x646   :  { %v4524_v55 = vpop.f32.mrf.mxu2 }
 0x647   :  { %5029 = vst [vmem:[#allocation36_spill] sm:$0xff] %v4524_v55  ;;  %v2005_v55 = vadd.f32 %v3029_v53, %v2004_v10  ;;  %v5044_v10 = vld [vmem:[#allocation29_spill] sm:$0xff] }
 0x649   :  { %v2009_v8 = vsel %vm2008_vm7, %v3029_v53, %v2005_v55 }
 0x64a   :  { %v2014_v35 = vsel %vm2011_vm8, %v2013_v16, %v2009_v8 }
 0x64b   :  { %v2020_v50 = vsub.f32 1.0, %v2014_v35  ;;  %v2022_v47 = vmul.f32 0.0, %v2014_v35 }
 0x64e   :  { %v1971_v38 = vpop.f32.mrf.mxu2 }
 0x64f   :  { %v1972_v42 = vadd.f32 %v4529_v52, %v1971_v38 }
 0x651   :  { %v2017_v58 = vmul.f32 %v1993_v40, %v1972_v42  ;;  %v5045_v40 = vld [vmem:[#allocation22_spill] sm:$0xff] }
 0x653   :  { %v2018_v22 = vadd.f32 %v2017_v58, %v1813_v43 }
 0x655   :  { %3030 = vtanh.f32 %v2018_v22  ;;  %v1734_v22 = vadd.f32 %v5046_v25, %v5045_v40 }
 0x65b   :  { %v3031_v36 = vpop.eup %3030 }
 0x65c   :  { %v2021_v38 = vmul.f32 %v3031_v36, %v2020_v50 }
 0x65e   :  { %v4535_v15 = vadd.f32 %v2022_v47, %v2021_v38 }
 0x660   :  { %2040 = vmatmul.f32.vlgmr.msra.gmra.mxu3 %v4535_v15  ;;  %2060 = vmatmul.f32.vlgmr.msra.gmra.mxu0 %v4535_v15 }
 0x661   :  { %2080 = vmatmul.f32.vlgmr.msra.gmra.mxu1 %v4535_v15  ;;  %2284 = vmatpush.msra.mxu3 %v4305_v34 }
 0x662   :  { %2354 = vmatpush.msra.mxu0 %v4175_v6  ;;  %2374 = vmatpush.msra.mxu1 %v4235_v17  ;;  %v5030_v6 = vld [vmem:[#allocation30_spill] sm:$0xff] }
 0x663   :  { %2285 = vmatpush.msra.mxu3 %v4356_v30 }
 0x664   :  { %2355 = vmatpush.msra.mxu0 %v4178_v2  ;;  %2375 = vmatpush.msra.mxu1 %v4241_v0  ;;  %v5031_v2 = vld [vmem:[#allocation31_spill] sm:$0xff] }
 0x665   :  { %2286 = vmatpush.msra.mxu3 %v4358_v63 }
 0x666   :  { %2356 = vmatpush.msra.mxu0 %v4181_v57  ;;  %2376 = vmatpush.msra.mxu1 %v4245_v39  ;;  %v5032_v57 = vld [vmem:[#allocation26_spill] sm:$0xff] }
 0x667   :  { %2287 = vmatpush.msra.mxu3 %v4368_v33 }
 0x668   :  { %2357 = vmatpush.msra.mxu0 %v4184_v14  ;;  %2377 = vmatpush.msra.mxu1 %v4250_v59  ;;  %v5033_v14 = vld [vmem:[#allocation25_spill] sm:$0xff] }
 0x669   :  { %2288 = vmatpush.msra.mxu3 %v4370_v32 }
 0x66a   :  { %2358 = vmatpush.msra.mxu0 %v4188_v49  ;;  %2378 = vmatpush.msra.mxu1 %v4255_v9  ;;  %v5034_v49 = vld [vmem:[#allocation21_spill] sm:$0xff] }
 0x66b   :  { %2289 = vmatpush.msra.mxu3 %v4374_v46 }
 0x66c   :  { %2359 = vmatpush.msra.mxu0 %v4191_v19  ;;  %2379 = vmatpush.msra.mxu1 %v4262_v4  ;;  %v5035_v19 = vld [vmem:[#allocation24_spill] sm:$0xff] }
 0x66d   :  { %2290 = vmatpush.msra.mxu3 %v4379_v28 }
 0x66e   :  { %2360 = vmatpush.msra.mxu0 %v4194_v26  ;;  %2380 = vmatpush.msra.mxu1 %v4266_v21  ;;  %v5036_v26 = vld [vmem:[#allocation23_spill] sm:$0xff] }
 0x66f   :  { %2291 = vmatpush.msra.mxu3 %v4385_v18 }
 0x670   :  { %2361 = vmatpush.msra.mxu0 %v4197_v24  ;;  %2381 = vmatpush.msra.mxu1 %v4271_v5  ;;  %v1815_v24 = vpop.f32.mrf.mxu0 }
 0x671   :  { %2292 = vmatpush.msra.mxu3 %v4390_v45 }
 0x672   :  { %2362 = vmatpush.msra.mxu0 %v4202_v37  ;;  %2382 = vmatpush.msra.mxu1 %v4276_v11  ;;  %v1774_v37 = vpop.f32.mrf.mxu3 }
 0x673   :  { %2293 = vmatpush.msra.mxu3 %v4402_v41  ;;  %v1775_v31 = vadd.f32 %v1774_v37, %v5044_v10 }
 0x674   :  { %2363 = vmatpush.msra.mxu0 %v4206_v29  ;;  %2383 = vmatpush.msra.mxu1 %v4282_v13 }
 0x675   :  { %2294 = vmatpush.msra.mxu3 %v4406_v20 }
 0x676   :  { %2364 = vmatpush.msra.mxu0 %v4209_v27  ;;  %2384 = vmatpush.msra.mxu1 %v4287_v60 }
 0x677   :  { %2295 = vmatpush.msra.mxu3 %v4411_v23 }
 0x678   :  { %2365 = vmatpush.msra.mxu0 %v4212_v44  ;;  %2385 = vmatpush.msra.mxu1 %v4292_v56  ;;  %v4588_v29 = vpop.f32.mrf.mxu0 }
 0x679   :  { %2296 = vmatpush.msra.mxu3 %v5030_v6 }
 0x67a   :  { %2366 = vmatpush.msra.mxu0 %v4215_v12  ;;  %2386 = vmatpush.msra.mxu1 %v4297_v7  ;;  %v4590_v27 = vpop.f32.mrf.mxu3 }
 0x67b   :  { %2297 = vmatpush.msra.mxu3 %v5031_v2 }
 0x67c   :  { %2367 = vmatpush.msra.mxu0 %v4218_v62  ;;  %2387 = vmatpush.msra.mxu1 %v4303_v1 }
 0x67d   :  { %2298 = vmatpush.msra.mxu3 %v5032_v57 }
 0x67e   :  { %2368 = vmatpush.msra.mxu0 %v4221_v51  ;;  %2388 = vmatpush.msra.mxu1 %v5033_v14 }
 0x67f   :  { %2299 = vmatpush.msra.mxu3 %v5034_v49 }
 0x680   :  { %2369 = vmatpush.msra.mxu0 %v5035_v19  ;;  %2389 = vmatpush.msra.mxu1 %v5036_v26  ;;  %v4592_v44 = vpop.f32.mrf.mxu0 }
 0x682   :  { %v4594_v12 = vpop.f32.mrf.mxu3 }
 0x688   :  { %v4596_v62 = vpop.f32.mrf.mxu0 }
 0x689   :  { %5037 = vst [vmem:[#allocation30_spill] sm:$0xff] %v4596_v62 }
 0x68a   :  { %v4598_v51 = vpop.f32.mrf.mxu3 }
 0x690   :  { %v4600_v54 = vpop.f32.mrf.mxu0 }
 0x691   :  { %5038 = vst [vmem:[#allocation31_spill] sm:$0xff] %v4600_v54 }
 0x692   :  { %v4602_v36 = vpop.f32.mrf.mxu3 }
 0x693   :  { %5039 = vst [vmem:[#allocation26_spill] sm:$0xff] %v4602_v36 }
 0x698   :  { %v4604_v58 = vpop.f32.mrf.mxu0 }
 0x699   :  { %5040 = vst [vmem:[#allocation25_spill] sm:$0xff] %v4604_v58 }
 0x69a   :  { %v4606_v61 = vpop.f32.mrf.mxu3 }
 0x69b   :  { %5041 = vst [vmem:[#allocation21_spill] sm:$0xff] %v4606_v61 }
 0x6a0   :  { %v4608_v53 = vpop.f32.mrf.mxu0 }
 0x6a1   :  { %5042 = vst [vmem:[#allocation24_spill] sm:$0xff] %v4608_v53 }
 0x6a2   :  { %v4610_v43 = vpop.f32.mrf.mxu3 }
 0x6a3   :  { %5043 = vst [vmem:[#allocation23_spill] sm:$0xff] %v4610_v43 }
 0x6dd   :  { %v2061_v55 = vpop.f32.mrf.mxu0 }
 0x6de   :  { %v2106_v48 = vadd.f32 %v2061_v55, %v1775_v31 }
 0x6e0   :  { %v2906_v42 = vmul.f32 -1.442695, %v2106_v48 }
 0x6e2   :  { %3032 = vpow2.f32 %v2906_v42 }
 0x6e3   :  { %v2041_v8 = vpop.f32.mrf.mxu3 }
 0x6e4   :  { %v2085_v16 = vadd.f32 %v2041_v8, %v1734_v22  ;;  %v2081_v22 = vpop.f32.mrf.mxu1 }
 0x6e6   :  { %v2905_v35 = vmul.f32 -1.442695, %v2085_v16 }
 0x6e8   :  { %v3033_v50 = vpop.eup %3032  ;;  %3034 = vpow2.f32 %v2905_v35  ;;  %v2082_v35 = vadd.f32 %v4529_v52, %v2081_v22 }
 0x6e9   :  { %v2110_v38 = vadd.f32 1.0, %v3033_v50 }
 0x6eb   :  { %3036 = vrcp.f32 %v2110_v38  ;;  %vm2116_vm14 = vweird.f32 %v2110_v38 }
 0x6ee   :  { %v3035_v47 = vpop.eup %3034 }
 0x6ef   :  { %v2089_v19 = vadd.f32 1.0, %v3035_v47 }
 0x6f1   :  { %3038 = vrcp.f32 %v2089_v19  ;;  %v3037_v53 = vpop.eup %3036  ;;  %v2101_v48 = vand.u32 2147483648, %v2089_v19  ;;  %v2099_v42 = vand.u32 2147483647, %v2089_v19  ;;  %vm2095_vm10 = vweird.f32 %v2089_v19 }
 0x6f2   :  { %v2112_v43 = vmul.f32 %v3037_v53, %v2110_v38  ;;  %vm2117_vm13 = vweird.f32 %v3037_v53 }
 0x6f3   :  { %v2102_v16 = vor.u32 1.1754944e-38, %v2101_v48  ;;  %vm2100_vm12 = vcmp.eq.f32.partialorder %v2099_v42, 8.507059e+37  ;;  %vm2118_vm15 = vmor %vm2116_vm14, %vm2117_vm13 }
 0x6f4   :  { %v2113_v31 = vsub.f32 1.0, %v2112_v43  ;;  %v1816_v43 = vadd.f32 %v1815_v24, %v4531_v3  ;;  %v4624_v24 = vld [vmem:[#allocation12 + $0x2e8] sm:$0xff] }
 0x6f6   :  { %v2114_v25 = vmul.f32 %v3037_v53, %v2113_v31 }
 0x6f7   :  { %v3039_v37 = vpop.eup %3038 }
 0x6f8   :  { %v2091_v58 = vmul.f32 %v3039_v37, %v2089_v19  ;;  %vm2096_vm9 = vweird.f32 %v3039_v37  ;;  %v2115_v54 = vadd.f32 %v3037_v53, %v2114_v25 }
 0x6f9   :  { %vm2097_vm11 = vmor %vm2095_vm10, %vm2096_vm9 }
 0x6fa   :  { %v2092_v55 = vsub.f32 1.0, %v2091_v58  ;;  %v2122_v58 = vand.u32 2147483648, %v2110_v38  ;;  %v2119_v62 = vsel %vm2118_vm15, %v3037_v53, %v2115_v54 }
 0x6fc   :  { %v2093_v61 = vmul.f32 %v3039_v37, %v2092_v55  ;;  %v2120_v55 = vand.u32 2147483647, %v2110_v38 }
 0x6fe   :  { %v2094_v8 = vadd.f32 %v3039_v37, %v2093_v61  ;;  %v2123_v61 = vor.u32 1.1754944e-38, %v2122_v58  ;;  %vm2121_vm0 = vcmp.eq.f32.partialorder %v2120_v55, 8.507059e+37 }
 0x700   :  { %v2098_v50 = vsel %vm2097_vm11, %v3039_v37, %v2094_v8  ;;  %v2124_v19 = vsel %vm2121_vm0, %v2123_v61, %v2119_v62  ;;  %v4629_v62 = vld [vmem:[#allocation12 + $0x2d0] sm:$0xff] }
 0x701   :  { %v2103_v47 = vsel %vm2100_vm12, %v2102_v16, %v2098_v50  ;;  %v2130_v48 = vsub.f32 1.0, %v2124_v19  ;;  %v2132_v42 = vmul.f32 %v2124_v19, %v4535_v15  ;;  %v4634_v15 = vld [vmem:[#allocation12 + $0x2b8] sm:$0xff] }
 0x702   :  { %v2127_v36 = vmul.f32 %v2103_v47, %v2082_v35 }
 0x704   :  { %v2128_v31 = vadd.f32 %v2127_v36, %v1816_v43 }
 0x706   :  { %3040 = vtanh.f32 %v2128_v31 }
 0x70c   :  { %v3041_v22 = vpop.eup %3040 }
 0x70d   :  { %v2131_v37 = vmul.f32 %v3041_v22, %v2130_v48 }
 0x70f   :  { %v4618_v25 = vadd.f32 %v2132_v42, %v2131_v37 }
 0x711   :  { %2150 = vmatmul.f32.vlgmr.msra.gmra.mxu2 %v4618_v25  ;;  %2170 = vmatmul.f32.vlgmr.msrb.gmra.mxu3 %v4618_v25 }
 0x712   :  { %2190 = vmatmul.f32.vlgmr.msrb.gmra.mxu0 %v4618_v25  ;;  %2394 = vmatpush.msra.mxu2 %v4305_v34  ;;  %v4639_v34 = vld [vmem:[#allocation12 + $0x2a0] sm:$0xff] }
 0x713   :  { %2464 = vmatpush.msrb.mxu3 %v4624_v24  ;;  %2484 = vmatpush.msrb.mxu0 %v4235_v17  ;;  %v4644_v17 = vld [vmem:[#allocation12 + $0x288] sm:$0xff] }
 0x714   :  { %2395 = vmatpush.msra.mxu2 %v4356_v30 }
 0x715   :  { %2465 = vmatpush.msrb.mxu3 %v4629_v62  ;;  %2485 = vmatpush.msrb.mxu0 %v4241_v0  ;;  %v4649_v0 = vld [vmem:[#allocation12 + $0x270] sm:$0xff] }
 0x716   :  { %2396 = vmatpush.msra.mxu2 %v4358_v63 }
 0x717   :  { %2466 = vmatpush.msrb.mxu3 %v4634_v15  ;;  %2486 = vmatpush.msrb.mxu0 %v4245_v39  ;;  %v4654_v39 = vld [vmem:[#allocation12 + $0x258] sm:$0xff] }
 0x718   :  { %2397 = vmatpush.msra.mxu2 %v4368_v33 }
 0x719   :  { %2467 = vmatpush.msrb.mxu3 %v4639_v34  ;;  %2487 = vmatpush.msrb.mxu0 %v4250_v59  ;;  %v4659_v59 = vld [vmem:[#allocation12 + $0x240] sm:$0xff] }
 0x71a   :  { %2398 = vmatpush.msra.mxu2 %v4370_v32 }
 0x71b   :  { %2468 = vmatpush.msrb.mxu3 %v4644_v17  ;;  %2488 = vmatpush.msrb.mxu0 %v4255_v9  ;;  %v4664_v9 = vld [vmem:[#allocation12 + $0x228] sm:$0xff] }
 0x71c   :  { %2399 = vmatpush.msra.mxu2 %v4374_v46 }
 0x71d   :  { %2469 = vmatpush.msrb.mxu3 %v4649_v0  ;;  %2489 = vmatpush.msrb.mxu0 %v4262_v4  ;;  %v4669_v4 = vld [vmem:[#allocation12 + $0x210] sm:$0xff] }
 0x71e   :  { %2400 = vmatpush.msra.mxu2 %v4379_v28 }
 0x71f   :  { %2470 = vmatpush.msrb.mxu3 %v4654_v39  ;;  %2490 = vmatpush.msrb.mxu0 %v4266_v21  ;;  %v4674_v21 = vld [vmem:[#allocation12 + $0x1f8] sm:$0xff] }
 0x720   :  { %2401 = vmatpush.msra.mxu2 %v4385_v18 }
 0x721   :  { %2471 = vmatpush.msrb.mxu3 %v4659_v59  ;;  %2491 = vmatpush.msrb.mxu0 %v4271_v5  ;;  %v4679_v5 = vld [vmem:[#allocation12 + $0x1e0] sm:$0xff] }
 0x722   :  { %2402 = vmatpush.msra.mxu2 %v4390_v45 }
 0x723   :  { %2472 = vmatpush.msrb.mxu3 %v4664_v9  ;;  %2492 = vmatpush.msrb.mxu0 %v4276_v11  ;;  %v4684_v11 = vld [vmem:[#allocation12 + $0x1c8] sm:$0xff] }
 0x724   :  { %2403 = vmatpush.msra.mxu2 %v4402_v41 }
 0x725   :  { %2473 = vmatpush.msrb.mxu3 %v4669_v4  ;;  %2493 = vmatpush.msrb.mxu0 %v4282_v13  ;;  %v4689_v13 = vld [vmem:[#allocation12 + $0x1b0] sm:$0xff] }
 0x726   :  { %2404 = vmatpush.msra.mxu2 %v4406_v20 }
 0x727   :  { %2474 = vmatpush.msrb.mxu3 %v4674_v21  ;;  %2494 = vmatpush.msrb.mxu0 %v4287_v60  ;;  %v4694_v60 = vld [vmem:[#allocation12 + $0x198] sm:$0xff] }
 0x728   :  { %2405 = vmatpush.msra.mxu2 %v4411_v23 }
 0x729   :  { %2475 = vmatpush.msrb.mxu3 %v4679_v5  ;;  %2495 = vmatpush.msrb.mxu0 %v4292_v56  ;;  %v4699_v56 = vld [vmem:[#allocation12 + $0x180] sm:$0xff] }
 0x72a   :  { %2406 = vmatpush.msra.mxu2 %v5030_v6 }
 0x72b   :  { %2476 = vmatpush.msrb.mxu3 %v4684_v11  ;;  %2496 = vmatpush.msrb.mxu0 %v4297_v7  ;;  %v5047_v7 = vld [vmem:[#allocation28_spill] sm:$0xff] }
 0x72c   :  { %2407 = vmatpush.msra.mxu2 %v5031_v2  ;;  %v1737_v54 = vadd.f32 %v5047_v7, %v5045_v40 }
 0x72d   :  { %2477 = vmatpush.msrb.mxu3 %v4689_v13  ;;  %2497 = vmatpush.msrb.mxu0 %v4303_v1  ;;  %v1778_v1 = vadd.f32 %v4590_v27, %v5044_v10 }
 0x72e   :  { %2408 = vmatpush.msra.mxu2 %v5032_v57 }
 0x72f   :  { %2478 = vmatpush.msrb.mxu3 %v4694_v60  ;;  %2498 = vmatpush.msrb.mxu0 %v5033_v14 }
 0x730   :  { %2409 = vmatpush.msra.mxu2 %v5034_v49 }
 0x731   :  { %2479 = vmatpush.msrb.mxu3 %v4699_v56  ;;  %2499 = vmatpush.msrb.mxu0 %v5036_v26 }
 0x78f   :  { %v2191_v37 = vpop.f32.mrf.mxu0 }
 0x794   :  { %v2151_v36 = vpop.f32.mrf.mxu2  ;;  %v2171_v53 = vpop.f32.mrf.mxu3 }
 0x795   :  { %v2195_v38 = vadd.f32 %v2151_v36, %v1737_v54  ;;  %v2216_v8 = vadd.f32 %v2171_v53, %v1778_v1  ;;  %v2192_v1 = vadd.f32 %v4529_v52, %v2191_v37 }
 0x797   :  { %v2907_v16 = vmul.f32 -1.442695, %v2195_v38  ;;  %v2908_v14 = vmul.f32 -1.442695, %v2216_v8  ;;  %v1819_v8 = vadd.f32 %v4588_v29, %v4531_v3  ;;  %v4716_v29 = vld [vmem:[#allocation12 + $0x2f8] sm:$0xff] }
 0x799   :  { %3042 = vpow2.f32 %v2907_v16 }
 0x79a   :  { %3044 = vpow2.f32 %v2908_v14 }
 0x79f   :  { %v3043_v35 = vpop.eup %3042 }
 0x7a0   :  { %v3045_v50 = vpop.eup %3044  ;;  %v2199_v47 = vadd.f32 1.0, %v3043_v35 }
 0x7a1   :  { %v2220_v43 = vadd.f32 1.0, %v3045_v50 }
 0x7a2   :  { %3046 = vrcp.f32 %v2199_v47  ;;  %v2211_v27 = vand.u32 2147483648, %v2199_v47  ;;  %v2209_v22 = vand.u32 2147483647, %v2199_v47  ;;  %vm2205_vm2 = vweird.f32 %v2199_v47 }
 0x7a3   :  { %3048 = vrcp.f32 %v2220_v43  ;;  %v2232_v16 = vand.u32 2147483648, %v2220_v43  ;;  %vm2226_vm6 = vweird.f32 %v2220_v43  ;;  %v2230_v35 = vand.u32 2147483647, %v2220_v43 }
 0x7a4   :  { %v2212_v54 = vor.u32 1.1754944e-38, %v2211_v27  ;;  %vm2210_vm4 = vcmp.eq.f32.partialorder %v2209_v22, 8.507059e+37  ;;  %v4735_v22 = vld [vmem:[#allocation12 + $0x2a8] sm:$0xff] }
 0x7a5   :  { %vm2231_vm8 = vcmp.eq.f32.partialorder %v2230_v35, 8.507059e+37 }
 0x7a8   :  { %v3047_v26 = vpop.eup %3046 }
 0x7a9   :  { %v3049_v58 = vpop.eup %3048  ;;  %v2201_v55 = vmul.f32 %v3047_v26, %v2199_v47  ;;  %vm2206_vm1 = vweird.f32 %v3047_v26  ;;  %v2233_v47 = vor.u32 1.1754944e-38, %v2232_v16 }
 0x7aa   :  { %v2222_v31 = vmul.f32 %v3049_v58, %v2220_v43  ;;  %vm2207_vm3 = vmor %vm2205_vm2, %vm2206_vm1  ;;  %vm2227_vm5 = vweird.f32 %v3049_v58  ;;  %v4720_v43 = vld [vmem:[#allocation12 + $0x2f0] sm:$0xff] }
 0x7ab   :  { %v2202_v61 = vsub.f32 1.0, %v2201_v55  ;;  %vm2228_vm7 = vmor %vm2226_vm6, %vm2227_vm5 }
 0x7ac   :  { %v2223_v19 = vsub.f32 1.0, %v2222_v31 }
 0x7ad   :  { %v2203_v48 = vmul.f32 %v3047_v26, %v2202_v61 }
 0x7ae   :  { %v2224_v42 = vmul.f32 %v3049_v58, %v2223_v19 }
 0x7af   :  { %v2204_v7 = vadd.f32 %v3047_v26, %v2203_v48 }
 0x7b0   :  { %v2225_v38 = vadd.f32 %v3049_v58, %v2224_v42 }
 0x7b1   :  { %v2208_v36 = vsel %vm2207_vm3, %v3047_v26, %v2204_v7 }
 0x7b2   :  { %v2213_v53 = vsel %vm2210_vm4, %v2212_v54, %v2208_v36  ;;  %v2229_v55 = vsel %vm2228_vm7, %v3049_v58, %v2225_v38  ;;  %v4730_v58 = vld [vmem:[#allocation12 + $0x2c0] sm:$0xff]  ;;  %v1781_v54 = vadd.f32 %v4594_v12, %v5044_v10 }
 0x7b3   :  { %v2237_v14 = vmul.f32 %v2213_v53, %v2192_v1  ;;  %v2234_v31 = vsel %vm2231_vm8, %v2233_v47, %v2229_v55 }
 0x7b4   :  { %v2240_v61 = vsub.f32 1.0, %v2234_v31  ;;  %v2242_v19 = vmul.f32 %v2234_v31, %v4618_v25  ;;  %v4725_v25 = vld [vmem:[#allocation12 + $0x2d8] sm:$0xff] }
 0x7b5   :  { %v2238_v50 = vadd.f32 %v2237_v14, %v1819_v8 }
 0x7b7   :  { %3050 = vtanh.f32 %v2238_v50 }
 0x7bd   :  { %v3051_v26 = vpop.eup %3050 }
 0x7be   :  { %v2241_v27 = vmul.f32 %v3051_v26, %v2240_v61 }
 0x7c0   :  { %v4711_v48 = vadd.f32 %v2242_v19, %v2241_v27 }
 0x7c2   :  { %2260 = vmatmul.f32.vlgmr.msrb.gmra.mxu1 %v4711_v48  ;;  %2280 = vmatmul.f32.vlgmr.msrb.gmra.mxu2 %v4711_v48 }
 0x7c3   :  { %2300 = vmatmul.f32.vlgmr.msra.gmra.mxu3 %v4711_v48  ;;  %2504 = vmatpush.msrb.mxu1 %v4716_v29 }
 0x7c4   :  { %2574 = vmatpush.msrb.mxu2 %v4624_v24  ;;  %2594 = vmatpush.msra.mxu3 %v4720_v43 }
 0x7c5   :  { %2505 = vmatpush.msrb.mxu1 %v4356_v30  ;;  %v4740_v30 = vld [vmem:[#allocation12 + $0x290] sm:$0xff] }
 0x7c6   :  { %2575 = vmatpush.msrb.mxu2 %v4629_v62  ;;  %2595 = vmatpush.msra.mxu3 %v4725_v25 }
 0x7c7   :  { %2506 = vmatpush.msrb.mxu1 %v4358_v63  ;;  %v4745_v63 = vld [vmem:[#allocation12 + $0x278] sm:$0xff] }
 0x7c8   :  { %2576 = vmatpush.msrb.mxu2 %v4634_v15  ;;  %2596 = vmatpush.msra.mxu3 %v4730_v58 }
 0x7c9   :  { %2507 = vmatpush.msrb.mxu1 %v4368_v33  ;;  %v4750_v33 = vld [vmem:[#allocation12 + $0x260] sm:$0xff] }
 0x7ca   :  { %2577 = vmatpush.msrb.mxu2 %v4639_v34  ;;  %2597 = vmatpush.msra.mxu3 %v4735_v22 }
 0x7cb   :  { %2508 = vmatpush.msrb.mxu1 %v4370_v32  ;;  %v4755_v32 = vld [vmem:[#allocation12 + $0x248] sm:$0xff] }
 0x7cc   :  { %2578 = vmatpush.msrb.mxu2 %v4644_v17  ;;  %2598 = vmatpush.msra.mxu3 %v4740_v30 }
 0x7cd   :  { %2509 = vmatpush.msrb.mxu1 %v4374_v46  ;;  %v4760_v46 = vld [vmem:[#allocation12 + $0x230] sm:$0xff] }
 0x7ce   :  { %2579 = vmatpush.msrb.mxu2 %v4649_v0  ;;  %2599 = vmatpush.msra.mxu3 %v4745_v63 }
 0x7cf   :  { %2510 = vmatpush.msrb.mxu1 %v4379_v28  ;;  %v4765_v28 = vld [vmem:[#allocation12 + $0x218] sm:$0xff] }
 0x7d0   :  { %2580 = vmatpush.msrb.mxu2 %v4654_v39  ;;  %2600 = vmatpush.msra.mxu3 %v4750_v33 }
 0x7d1   :  { %2511 = vmatpush.msrb.mxu1 %v4385_v18  ;;  %v4770_v18 = vld [vmem:[#allocation12 + $0x200] sm:$0xff] }
 0x7d2   :  { %2581 = vmatpush.msrb.mxu2 %v4659_v59  ;;  %2601 = vmatpush.msra.mxu3 %v4755_v32 }
 0x7d3   :  { %2512 = vmatpush.msrb.mxu1 %v4390_v45  ;;  %v4775_v45 = vld [vmem:[#allocation12 + $0x1e8] sm:$0xff] }
 0x7d4   :  { %2582 = vmatpush.msrb.mxu2 %v4664_v9  ;;  %2602 = vmatpush.msra.mxu3 %v4760_v46 }
 0x7d5   :  { %2513 = vmatpush.msrb.mxu1 %v4402_v41  ;;  %v4780_v41 = vld [vmem:[#allocation12 + $0x1d0] sm:$0xff] }
 0x7d6   :  { %2583 = vmatpush.msrb.mxu2 %v4669_v4  ;;  %2603 = vmatpush.msra.mxu3 %v4765_v28 }
 0x7d7   :  { %2514 = vmatpush.msrb.mxu1 %v4406_v20  ;;  %v4785_v20 = vld [vmem:[#allocation12 + $0x1b8] sm:$0xff] }
 0x7d8   :  { %2584 = vmatpush.msrb.mxu2 %v4674_v21  ;;  %2604 = vmatpush.msra.mxu3 %v4770_v18 }
 0x7d9   :  { %2515 = vmatpush.msrb.mxu1 %v4411_v23  ;;  %v4790_v23 = vld [vmem:[#allocation12 + $0x1a0] sm:$0xff] }
 0x7da   :  { %2585 = vmatpush.msrb.mxu2 %v4679_v5  ;;  %2605 = vmatpush.msra.mxu3 %v4775_v45 }
 0x7db   :  { %2516 = vmatpush.msrb.mxu1 %v5030_v6  ;;  %v4795_v6 = vld [vmem:[#allocation12 + $0x188] sm:$0xff] }
 0x7dc   :  { %2586 = vmatpush.msrb.mxu2 %v4684_v11  ;;  %2606 = vmatpush.msra.mxu3 %v4780_v41 }
 0x7dd   :  { %2517 = vmatpush.msrb.mxu1 %v5031_v2  ;;  %v5048_v2 = vld [vmem:[#allocation32_spill] sm:$0xff] }
 0x7de   :  { %2587 = vmatpush.msrb.mxu2 %v4689_v13  ;;  %2607 = vmatpush.msra.mxu3 %v4785_v20  ;;  %v1740_v37 = vadd.f32 %v5048_v2, %v5045_v40 }
 0x7df   :  { %2518 = vmatpush.msrb.mxu1 %v5032_v57 }
 0x7e0   :  { %2588 = vmatpush.msrb.mxu2 %v4694_v60  ;;  %2608 = vmatpush.msra.mxu3 %v4790_v23 }
 0x7e1   :  { %2519 = vmatpush.msrb.mxu1 %v5034_v49 }
 0x7e2   :  { %2589 = vmatpush.msrb.mxu2 %v4699_v56  ;;  %2609 = vmatpush.msra.mxu3 %v4795_v6 }
 0x83f   :  { %v2261_v42 = vpop.f32.mrf.mxu1 }
 0x840   :  { %v2305_v7 = vadd.f32 %v2261_v42, %v1740_v37 }
 0x842   :  { %v2909_v57 = vmul.f32 -1.442695, %v2305_v7  ;;  %v1822_v7 = vadd.f32 %v4592_v44, %v4531_v3 }
 0x844   :  { %3052 = vpow2.f32 %v2909_v57 }
 0x845   :  { %v2281_v1 = vpop.f32.mrf.mxu2 }
 0x846   :  { %v2326_v36 = vadd.f32 %v2281_v1, %v1781_v54  ;;  %v2301_v12 = vpop.f32.mrf.mxu3 }
 0x847   :  { %v2302_v37 = vadd.f32 %v4529_v52, %v2301_v12 }
 0x848   :  { %v2910_v53 = vmul.f32 -1.442695, %v2326_v36 }
 0x84a   :  { %v3053_v49 = vpop.eup %3052  ;;  %3054 = vpow2.f32 %v2910_v53 }
 0x84b   :  { %v2309_v38 = vadd.f32 1.0, %v3053_v49 }
 0x84d   :  { %3056 = vrcp.f32 %v2309_v38  ;;  %v2321_v55 = vand.u32 2147483648, %v2309_v38  ;;  %v2319_v31 = vand.u32 2147483647, %v2309_v38  ;;  %vm2315_vm10 = vweird.f32 %v2309_v38 }
 0x84f   :  { %v2322_v19 = vor.u32 1.1754944e-38, %v2321_v55  ;;  %vm2320_vm12 = vcmp.eq.f32.partialorder %v2319_v31, 8.507059e+37 }
 0x850   :  { %v3055_v8 = vpop.eup %3054 }
 0x851   :  { %v2330_v16 = vadd.f32 1.0, %v3055_v8 }
 0x853   :  { %v3057_v14 = vpop.eup %3056  ;;  %3058 = vrcp.f32 %v2330_v16  ;;  %v2342_v36 = vand.u32 2147483648, %v2330_v16  ;;  %v2340_v53 = vand.u32 2147483647, %v2330_v16  ;;  %vm2336_vm14 = vweird.f32 %v2330_v16 }
 0x854   :  { %v2311_v35 = vmul.f32 %v3057_v14, %v2309_v38  ;;  %vm2316_vm9 = vweird.f32 %v3057_v14 }
 0x855   :  { %vm2317_vm11 = vmor %vm2315_vm10, %vm2316_vm9  ;;  %vm2341_vm0 = vcmp.eq.f32.partialorder %v2340_v53, 8.507059e+37 }
 0x856   :  { %v2312_v50 = vsub.f32 1.0, %v2311_v35  ;;  %v2343_v35 = vor.u32 1.1754944e-38, %v2342_v36 }
 0x858   :  { %v2313_v47 = vmul.f32 %v3057_v14, %v2312_v50 }
 0x859   :  { %v3059_v61 = vpop.eup %3058 }
 0x85a   :  { %v2332_v26 = vmul.f32 %v3059_v61, %v2330_v16  ;;  %v2314_v27 = vadd.f32 %v3057_v14, %v2313_v47  ;;  %vm2337_vm13 = vweird.f32 %v3059_v61  ;;  %v4814_v16 = vld [vmem:[#allocation12 + $0x2e0] sm:$0xff] }
 0x85b   :  { %vm2338_vm15 = vmor %vm2336_vm14, %vm2337_vm13 }
 0x85c   :  { %v2333_v2 = vsub.f32 1.0, %v2332_v26  ;;  %v2318_v42 = vsel %vm2317_vm11, %v3057_v14, %v2314_v27 }
 0x85d   :  { %v2323_v57 = vsel %vm2320_vm12, %v2322_v19, %v2318_v42 }
 0x85e   :  { %v2334_v54 = vmul.f32 %v3059_v61, %v2333_v2  ;;  %v2347_v1 = vmul.f32 %v2323_v57, %v2302_v37 }
 0x860   :  { %v2348_v49 = vadd.f32 %v2347_v1, %v1822_v7  ;;  %v2335_v8 = vadd.f32 %v3059_v61, %v2334_v54  ;;  %v5050_v54 = vld [vmem:[#allocation30_spill] sm:$0xff] }
 0x861   :  { %v1825_v1 = vadd.f32 %v5050_v54, %v4531_v3 }
 0x862   :  { %3060 = vtanh.f32 %v2348_v49  ;;  %v2339_v38 = vsel %vm2338_vm15, %v3059_v61, %v2335_v8  ;;  %v4824_v61 = vld [vmem:[#allocation12 + $0x2b0] sm:$0xff] }
 0x863   :  { %v2344_v50 = vsel %vm2341_vm0, %v2343_v35, %v2339_v38 }
 0x864   :  { %v2350_v14 = vsub.f32 1.0, %v2344_v50  ;;  %v2352_v44 = vmul.f32 %v2344_v50, %v4711_v48  ;;  %v4819_v48 = vld [vmem:[#allocation12 + $0x2c8] sm:$0xff] }
 0x868   :  { %v3061_v55 = vpop.eup %3060 }
 0x869   :  { %v2351_v47 = vmul.f32 %v3061_v55, %v2350_v14 }
 0x86b   :  { %v4806_v31 = vadd.f32 %v2352_v44, %v2351_v47 }
 0x86d   :  { %2370 = vmatmul.f32.vlgmr.msra.gmra.mxu0 %v4806_v31  ;;  %2390 = vmatmul.f32.vlgmr.msra.gmra.mxu1 %v4806_v31 }
 0x86e   :  { %2410 = vmatmul.f32.vlgmr.msra.gmra.mxu2 %v4806_v31  ;;  %2614 = vmatpush.msra.mxu0 %v4716_v29 }
 0x86f   :  { %2684 = vmatpush.msra.mxu1 %v4624_v24  ;;  %2704 = vmatpush.msra.mxu2 %v4720_v43  ;;  %v4829_v24 = vld [vmem:[#allocation12 + $0x298] sm:$0xff]  ;;  %v1784_v43 = vadd.f32 %v4598_v51, %v5044_v10 }
 0x870   :  { %2615 = vmatpush.msra.mxu0 %v4814_v16 }
 0x871   :  { %2685 = vmatpush.msra.mxu1 %v4629_v62  ;;  %2705 = vmatpush.msra.mxu2 %v4725_v25  ;;  %v4834_v62 = vld [vmem:[#allocation12 + $0x280] sm:$0xff] }
 0x872   :  { %2616 = vmatpush.msra.mxu0 %v4819_v48 }
 0x873   :  { %2686 = vmatpush.msra.mxu1 %v4634_v15  ;;  %2706 = vmatpush.msra.mxu2 %v4730_v58  ;;  %v4839_v15 = vld [vmem:[#allocation12 + $0x268] sm:$0xff] }
 0x874   :  { %2617 = vmatpush.msra.mxu0 %v4824_v61 }
 0x875   :  { %2687 = vmatpush.msra.mxu1 %v4639_v34  ;;  %2707 = vmatpush.msra.mxu2 %v4735_v22  ;;  %v4844_v34 = vld [vmem:[#allocation12 + $0x250] sm:$0xff] }
 0x876   :  { %2618 = vmatpush.msra.mxu0 %v4829_v24 }
 0x877   :  { %2688 = vmatpush.msra.mxu1 %v4644_v17  ;;  %2708 = vmatpush.msra.mxu2 %v4740_v30  ;;  %v4849_v17 = vld [vmem:[#allocation12 + $0x238] sm:$0xff] }
 0x878   :  { %2619 = vmatpush.msra.mxu0 %v4834_v62 }
 0x879   :  { %2689 = vmatpush.msra.mxu1 %v4649_v0  ;;  %2709 = vmatpush.msra.mxu2 %v4745_v63  ;;  %v4854_v0 = vld [vmem:[#allocation12 + $0x220] sm:$0xff] }
 0x87a   :  { %2620 = vmatpush.msra.mxu0 %v4839_v15 }
 0x87b   :  { %2690 = vmatpush.msra.mxu1 %v4654_v39  ;;  %2710 = vmatpush.msra.mxu2 %v4750_v33  ;;  %v4859_v39 = vld [vmem:[#allocation12 + $0x208] sm:$0xff] }
 0x87c   :  { %2621 = vmatpush.msra.mxu0 %v4844_v34 }
 0x87d   :  { %2691 = vmatpush.msra.mxu1 %v4659_v59  ;;  %2711 = vmatpush.msra.mxu2 %v4755_v32  ;;  %v4864_v59 = vld [vmem:[#allocation12 + $0x1f0] sm:$0xff] }
 0x87e   :  { %2622 = vmatpush.msra.mxu0 %v4849_v17 }
 0x87f   :  { %2692 = vmatpush.msra.mxu1 %v4664_v9  ;;  %2712 = vmatpush.msra.mxu2 %v4760_v46  ;;  %v4869_v9 = vld [vmem:[#allocation12 + $0x1d8] sm:$0xff] }
 0x880   :  { %2623 = vmatpush.msra.mxu0 %v4854_v0 }
 0x881   :  { %2693 = vmatpush.msra.mxu1 %v4669_v4  ;;  %2713 = vmatpush.msra.mxu2 %v4765_v28  ;;  %v4874_v4 = vld [vmem:[#allocation12 + $0x1c0] sm:$0xff] }
 0x882   :  { %2624 = vmatpush.msra.mxu0 %v4859_v39 }
 0x883   :  { %2694 = vmatpush.msra.mxu1 %v4674_v21  ;;  %2714 = vmatpush.msra.mxu2 %v4770_v18  ;;  %v4879_v21 = vld [vmem:[#allocation12 + $0x1a8] sm:$0xff] }
 0x884   :  { %2625 = vmatpush.msra.mxu0 %v4864_v59 }
 0x885   :  { %2695 = vmatpush.msra.mxu1 %v4679_v5  ;;  %2715 = vmatpush.msra.mxu2 %v4775_v45  ;;  %v4884_v5 = vld [vmem:[#allocation12 + $0x190] sm:$0xff] }
 0x886   :  { %2626 = vmatpush.msra.mxu0 %v4869_v9 }
 0x887   :  { %2696 = vmatpush.msra.mxu1 %v4684_v11  ;;  %2716 = vmatpush.msra.mxu2 %v4780_v41  ;;  %v5049_v11 = vld [vmem:[#allocation33_spill] sm:$0xff] }
 0x888   :  { %2627 = vmatpush.msra.mxu0 %v4874_v4 }
 0x889   :  { %2697 = vmatpush.msra.mxu1 %v4689_v13  ;;  %2717 = vmatpush.msra.mxu2 %v4785_v20  ;;  %v1743_v13 = vadd.f32 %v5049_v11, %v5045_v40 }
 0x88a   :  { %2628 = vmatpush.msra.mxu0 %v4879_v21 }
 0x88b   :  { %2698 = vmatpush.msra.mxu1 %v4694_v60  ;;  %2718 = vmatpush.msra.mxu2 %v4790_v23 }
 0x88c   :  { %2629 = vmatpush.msra.mxu0 %v4884_v5 }
 0x88d   :  { %2699 = vmatpush.msra.mxu1 %v4699_v56  ;;  %2719 = vmatpush.msra.mxu2 %v4795_v6 }
 0x8ea   :  { %v2371_v25 = vpop.f32.mrf.mxu0  ;;  %v2391_v58 = vpop.f32.mrf.mxu1 }
 0x8eb   :  { %v2415_v22 = vadd.f32 %v2371_v25, %v1743_v13  ;;  %v2436_v60 = vadd.f32 %v2391_v58, %v1784_v43 }
 0x8ed   :  { %v2911_v30 = vmul.f32 -1.442695, %v2415_v22  ;;  %v2912_v63 = vmul.f32 -1.442695, %v2436_v60 }
 0x8ef   :  { %3062 = vpow2.f32 %v2911_v30 }
 0x8f0   :  { %3064 = vpow2.f32 %v2912_v63 }
 0x8f1   :  { %v2411_v27 = vpop.f32.mrf.mxu2 }
 0x8f2   :  { %v2412_v37 = vadd.f32 %v4529_v52, %v2411_v27 }
 0x8f5   :  { %v3063_v33 = vpop.eup %3062 }
 0x8f6   :  { %v3065_v32 = vpop.eup %3064  ;;  %v2419_v46 = vadd.f32 1.0, %v3063_v33 }
 0x8f7   :  { %v2440_v56 = vadd.f32 1.0, %v3065_v32  ;;  %v4925_v32 = vld [vmem:[%s4963_s6 + $0x1] ss:$0 sm:$0xff] }
 0x8f8   :  { %3066 = vrcp.f32 %v2419_v46  ;;  %v2431_v23 = vand.u32 2147483648, %v2419_v46  ;;  %v2429_v12 = vand.u32 2147483647, %v2419_v46  ;;  %vm2425_vm2 = vweird.f32 %v2419_v46 }
 0x8f9   :  { %3068 = vrcp.f32 %v2440_v56  ;;  %v2452_v53 = vand.u32 2147483648, %v2440_v56  ;;  %vm2446_vm6 = vweird.f32 %v2440_v56  ;;  %v2450_v49 = vand.u32 2147483647, %v2440_v56 }
 0x8fa   :  { %v2432_v2 = vor.u32 1.1754944e-38, %v2431_v23  ;;  %vm2430_vm4 = vcmp.eq.f32.partialorder %v2429_v12, 8.507059e+37 }
 0x8fb   :  { %v2453_v35 = vor.u32 1.1754944e-38, %v2452_v53  ;;  %vm2451_vm8 = vcmp.eq.f32.partialorder %v2450_v49, 8.507059e+37 }
 0x8fe   :  { %v3067_v28 = vpop.eup %3066 }
 0x8ff   :  { %v3069_v18 = vpop.eup %3068  ;;  %v2421_v45 = vmul.f32 %v3067_v28, %v2419_v46  ;;  %vm2426_vm1 = vweird.f32 %v3067_v28 }
 0x900   :  { %v2442_v41 = vmul.f32 %v3069_v18, %v2440_v56  ;;  %vm2427_vm3 = vmor %vm2425_vm2, %vm2426_vm1  ;;  %vm2447_vm5 = vweird.f32 %v3069_v18 }
 0x901   :  { %v2422_v20 = vsub.f32 1.0, %v2421_v45  ;;  %vm2448_vm7 = vmor %vm2446_vm6, %vm2447_vm5  ;;  %v5053_v45 = vld [vmem:[#allocation31_spill] sm:$0xff] }
 0x902   :  { %v2443_v51 = vsub.f32 1.0, %v2442_v41  ;;  %v1828_v41 = vadd.f32 %v5053_v45, %v4531_v3  ;;  %v2808_v45 = vld [vmem:[#allocation13 + $0x70] sm:$0xff] }
 0x903   :  { %v2423_v6 = vmul.f32 %v3067_v28, %v2422_v20 }
 0x904   :  { %v2444_v26 = vmul.f32 %v3069_v18, %v2443_v51 }
 0x905   :  { %v2424_v19 = vadd.f32 %v3067_v28, %v2423_v6 }
 0x906   :  { %v2445_v57 = vadd.f32 %v3069_v18, %v2444_v26 }
 0x907   :  { %v2428_v42 = vsel %vm2427_vm3, %v3067_v28, %v2424_v19 }
 0x908   :  { %v2433_v7 = vsel %vm2430_vm4, %v2432_v2, %v2428_v42  ;;  %v2449_v38 = vsel %vm2448_vm7, %v3069_v18, %v2445_v57  ;;  %v5054_v57 = vld [vmem:[#allocation35_spill] sm:$0xff] }
 0x909   :  { %v2457_v36 = vmul.f32 %v2433_v7, %v2412_v37  ;;  %v2454_v50 = vsel %vm2451_vm8, %v2453_v35, %v2449_v38  ;;  %v1749_v54 = vadd.f32 %v5054_v57, %v5045_v40  ;;  %v5058_v57 = vld [vmem:[#allocation23_spill] sm:$0xff] }
 0x90a   :  { %v2460_v52 = vsub.f32 1.0, %v2454_v50  ;;  %v2462_v47 = vmul.f32 %v2454_v50, %v4806_v31 }
 0x90b   :  { %v2458_v8 = vadd.f32 %v2457_v36, %v1825_v1  ;;  %v5055_v1 = vld [vmem:[#allocation21_spill] sm:$0xff] }
 0x90c   :  { %v1790_v36 = vadd.f32 %v5055_v1, %v5044_v10  ;;  %v2799_v1 = vld [vmem:[#allocation13 + $0x28] sm:$0xff] }
 0x90d   :  { %3070 = vtanh.f32 %v2458_v8 }
 0x913   :  { %v3071_v14 = vpop.eup %3070 }
 0x914   :  { %v2461_v55 = vmul.f32 %v3071_v14, %v2460_v52 }
 0x916   :  { %v4897_v44 = vadd.f32 %v2462_v47, %v2461_v55 }
 0x918   :  { %2480 = vmatmul.f32.vlgmr.msrb.gmra.mxu3 %v4897_v44  ;;  %2500 = vmatmul.f32.vlgmr.msrb.gmra.mxu0 %v4897_v44 }
 0x919   :  { %2520 = vmatmul.f32.vlgmr.msrb.gmra.mxu1 %v4897_v44  ;;  %2724 = vmatpush.msrb.mxu3 %v4716_v29  ;;  %v5051_v29 = vld [vmem:[#allocation26_spill] sm:$0xff] }
 0x91a   :  { %v1787_v31 = vadd.f32 %v5051_v29, %v5044_v10 }
 0x91b   :  { %2725 = vmatpush.msrb.mxu3 %v4814_v16 }
 0x91d   :  { %2726 = vmatpush.msrb.mxu3 %v4819_v48 }
 0x91f   :  { %2727 = vmatpush.msrb.mxu3 %v4824_v61 }
 0x921   :  { %2728 = vmatpush.msrb.mxu3 %v4829_v24  ;;  %v5052_v24 = vld [vmem:[#allocation34_spill] sm:$0xff] }
 0x923   :  { %2729 = vmatpush.msrb.mxu3 %v4834_v62  ;;  %v1746_v62 = vadd.f32 %v5052_v24, %v5045_v40 }
 0x925   :  { %2730 = vmatpush.msrb.mxu3 %v4839_v15 }
 0x927   :  { %2731 = vmatpush.msrb.mxu3 %v4844_v34 }
 0x929   :  { %2732 = vmatpush.msrb.mxu3 %v4849_v17 }
 0x92b   :  { %2733 = vmatpush.msrb.mxu3 %v4854_v0 }
 0x92d   :  { %2734 = vmatpush.msrb.mxu3 %v4859_v39 }
 0x92f   :  { %2735 = vmatpush.msrb.mxu3 %v4864_v59 }
 0x931   :  { %2736 = vmatpush.msrb.mxu3 %v4869_v9 }
 0x933   :  { %2737 = vmatpush.msrb.mxu3 %v4874_v4 }
 0x935   :  { %2738 = vmatpush.msrb.mxu3 %v4879_v21 }
 0x937   :  { %2739 = vmatpush.msrb.mxu3 %v4884_v5 }
 0x995   :  { %v2501_v16 = vpop.f32.mrf.mxu0 }
 0x996   :  { %v2546_v48 = vadd.f32 %v2501_v16, %v1787_v31  ;;  %v2521_v30 = vpop.f32.mrf.mxu1 }
 0x997   :  { %v2522_v46 = vadd.f32 %v4925_v32, %v2521_v30 }
 0x998   :  { %v2914_v61 = vmul.f32 -1.442695, %v2546_v48 }
 0x99a   :  { %3072 = vpow2.f32 %v2914_v61 }
 0x99b   :  { %v2481_v15 = vpop.f32.mrf.mxu3 }
 0x99c   :  { %v2525_v34 = vadd.f32 %v2481_v15, %v1746_v62 }
 0x99e   :  { %v2913_v17 = vmul.f32 -1.442695, %v2525_v34 }
 0x9a0   :  { %v3073_v0 = vpop.eup %3072  ;;  %3074 = vpow2.f32 %v2913_v17 }
 0x9a1   :  { %v2550_v39 = vadd.f32 1.0, %v3073_v0 }
 0x9a3   :  { %3076 = vrcp.f32 %v2550_v39  ;;  %v2562_v20 = vand.u32 2147483648, %v2550_v39  ;;  %vm2556_vm14 = vweird.f32 %v2550_v39  ;;  %v2560_v23 = vand.u32 2147483647, %v2550_v39 }
 0x9a5   :  { %v2563_v26 = vor.u32 1.1754944e-38, %v2562_v20  ;;  %vm2561_vm0 = vcmp.eq.f32.partialorder %v2560_v23, 8.507059e+37  ;;  %v2806_v20 = vld [vmem:[#allocation13 + $0x60] sm:$0xff]  ;;  %v2804_v23 = vld [vmem:[#allocation13 + $0x50] sm:$0xff] }
 0x9a6   :  { %v3075_v59 = vpop.eup %3074 }
 0x9a7   :  { %v2529_v9 = vadd.f32 1.0, %v3075_v59 }
 0x9a9   :  { %3078 = vrcp.f32 %v2529_v9  ;;  %v3077_v4 = vpop.eup %3076  ;;  %v2541_v25 = vand.u32 2147483648, %v2529_v9  ;;  %v2539_v22 = vand.u32 2147483647, %v2529_v9  ;;  %vm2535_vm10 = vweird.f32 %v2529_v9 }
 0x9aa   :  { %v2552_v21 = vmul.f32 %v3077_v4, %v2550_v39  ;;  %vm2557_vm13 = vweird.f32 %v3077_v4 }
 0x9ab   :  { %v2542_v33 = vor.u32 1.1754944e-38, %v2541_v25  ;;  %vm2540_vm12 = vcmp.eq.f32.partialorder %v2539_v22, 8.507059e+37  ;;  %vm2558_vm15 = vmor %vm2556_vm14, %vm2557_vm13 }
 0x9ac   :  { %v2553_v13 = vsub.f32 1.0, %v2552_v21 }
 0x9ae   :  { %v2554_v60 = vmul.f32 %v3077_v4, %v2553_v13 }
 0x9af   :  { %v3079_v5 = vpop.eup %3078 }
 0x9b0   :  { %v2531_v11 = vmul.f32 %v3079_v5, %v2529_v9  ;;  %vm2536_vm9 = vweird.f32 %v3079_v5  ;;  %v2555_v28 = vadd.f32 %v3077_v4, %v2554_v60 }
 0x9b1   :  { %vm2537_vm11 = vmor %vm2535_vm10, %vm2536_vm9 }
 0x9b2   :  { %v2532_v43 = vsub.f32 1.0, %v2531_v11  ;;  %v2559_v12 = vsel %vm2558_vm15, %v3077_v4, %v2555_v28 }
 0x9b3   :  { %v2564_v27 = vsel %vm2561_vm0, %v2563_v26, %v2559_v12  ;;  %v5057_v12 = vld [vmem:[#allocation36_spill] sm:$0xff] }
 0x9b4   :  { %v2533_v58 = vmul.f32 %v3079_v5, %v2532_v43  ;;  %v2570_v19 = vsub.f32 1.0, %v2564_v27  ;;  %v2572_v42 = vmul.f32 %v2564_v27, %v4897_v44  ;;  %v1752_v26 = vadd.f32 %v5057_v12, %v5045_v40  ;;  %v2802_v27 = vld [vmem:[#allocation13 + $0x40] sm:$0xff] }
 0x9b6   :  { %v2534_v63 = vadd.f32 %v3079_v5, %v2533_v58 }
 0x9b8   :  { %v2538_v56 = vsel %vm2537_vm11, %v3079_v5, %v2534_v63  ;;  %v5056_v5 = vld [vmem:[#allocation25_spill] sm:$0xff] }
 0x9b9   :  { %v2543_v18 = vsel %vm2540_vm12, %v2542_v33, %v2538_v56  ;;  %v1831_v11 = vadd.f32 %v5056_v5, %v4531_v3 }
 0x9ba   :  { %v2567_v51 = vmul.f32 %v2543_v18, %v2522_v46  ;;  %v2809_v18 = vld [vmem:[#allocation13 + $0x78] sm:$0xff] }
 0x9bb   :  { %2814 = vmatpush.msrb.mxu0 %v2809_v18 }
 0x9bc   :  { %v2568_v6 = vadd.f32 %v2567_v51, %v1828_v41  ;;  %v2807_v41 = vld [vmem:[#allocation13 + $0x68] sm:$0xff]  ;;  %v2805_v51 = vld [vmem:[#allocation13 + $0x58] sm:$0xff] }
 0x9bd   :  { %2815 = vmatpush.msrb.mxu0 %v2808_v45 }
 0x9be   :  { %3080 = vtanh.f32 %v2568_v6  ;;  %v2803_v6 = vld [vmem:[#allocation13 + $0x48] sm:$0xff] }
 0x9bf   :  { %2816 = vmatpush.msrb.mxu0 %v2807_v41 }
 0x9c1   :  { %2817 = vmatpush.msrb.mxu0 %v2806_v20 }
 0x9c3   :  { %2818 = vmatpush.msrb.mxu0 %v2805_v51 }
 0x9c4   :  { %v3081_v2 = vpop.eup %3080 }
 0x9c5   :  { %v2571_v37 = vmul.f32 %v3081_v2, %v2570_v19  ;;  %2819 = vmatpush.msrb.mxu0 %v2804_v23 }
 0x9c7   :  { %v2573_v7 = vadd.f32 %v2572_v42, %v2571_v37  ;;  %2820 = vmatpush.msrb.mxu0 %v2803_v6  ;;  %v2801_v37 = vld [vmem:[#allocation13 + $0x38] sm:$0xff] }
 0x9c9   :  { %2590 = vmatmul.f32.vlgmr.msrb.gmra.mxu2 %v2573_v7  ;;  %2610 = vmatmul.f32.vlgmr.msra.gmra.mxu3 %v2573_v7 }
 0x9ca   :  { %2630 = vmatmul.f32.vlgmr.msra.gmra.mxu0 %v2573_v7 }
 0x9cb   :  { %2821 = vmatpush.msrb.mxu0 %v2802_v27 }
 0x9cd   :  { %2822 = vmatpush.msrb.mxu0 %v2801_v37 }
 0xa47   :  { %v2631_v34 = vpop.f32.mrf.mxu0 }
 0xa48   :  { %v2632_v59 = vadd.f32 %v4925_v32, %v2631_v34 }
 0xa4c   :  { %v2591_v53 = vpop.f32.mrf.mxu2  ;;  %v2611_v49 = vpop.f32.mrf.mxu3 }
 0xa4d   :  { %v2635_v8 = vadd.f32 %v2591_v53, %v1749_v54  ;;  %v2656_v38 = vadd.f32 %v2611_v49, %v1790_v36  ;;  %v1793_v54 = vadd.f32 %v5058_v57, %v5044_v10  ;;  %v2798_v49 = vld [vmem:[#allocation13 + $0x20] sm:$0xff] }
 0xa4f   :  { %v2915_v35 = vmul.f32 -1.442695, %v2635_v8  ;;  %v2916_v50 = vmul.f32 -1.442695, %v2656_v38  ;;  %v2797_v8 = vld [vmem:[#allocation13 + $0x18] sm:$0xff]  ;;  %v2796_v38 = vld [vmem:[#allocation13 + $0x10] sm:$0xff] }
 0xa51   :  { %3082 = vpow2.f32 %v2915_v35 }
 0xa52   :  { %3084 = vpow2.f32 %v2916_v50  ;;  %v2795_v50 = vld [vmem:[#allocation13 + $0x8] sm:$0xff] }
 0xa57   :  { %v3083_v52 = vpop.eup %3082 }
 0xa58   :  { %v3085_v14 = vpop.eup %3084  ;;  %v2639_v55 = vadd.f32 1.0, %v3083_v52 }
 0xa59   :  { %v2660_v47 = vadd.f32 1.0, %v3085_v14  ;;  %v2794_v14 = vld [vmem:[#allocation13] sm:$0xff] }
 0xa5a   :  { %3086 = vrcp.f32 %v2639_v55  ;;  %v2651_v61 = vand.u32 2147483648, %v2639_v55  ;;  %v2649_v15 = vand.u32 2147483647, %v2639_v55  ;;  %vm2645_vm2 = vweird.f32 %v2639_v55 }
 0xa5b   :  { %3088 = vrcp.f32 %v2660_v47  ;;  %v2672_v13 = vand.u32 2147483648, %v2660_v47  ;;  %vm2666_vm6 = vweird.f32 %v2660_v47  ;;  %v2670_v25 = vand.u32 2147483647, %v2660_v47 }
 0xa5c   :  { %v2652_v39 = vor.u32 1.1754944e-38, %v2651_v61  ;;  %vm2650_vm4 = vcmp.eq.f32.partialorder %v2649_v15, 8.507059e+37 }
 0xa5d   :  { %v2673_v60 = vor.u32 1.1754944e-38, %v2672_v13  ;;  %vm2671_vm8 = vcmp.eq.f32.partialorder %v2670_v25, 8.507059e+37 }
 0xa60   :  { %v3087_v44 = vpop.eup %3086 }
 0xa61   :  { %v3089_v29 = vpop.eup %3088  ;;  %v2641_v31 = vmul.f32 %v3087_v44, %v2639_v55  ;;  %vm2646_vm1 = vweird.f32 %v3087_v44 }
 0xa62   :  { %v2662_v16 = vmul.f32 %v3089_v29, %v2660_v47  ;;  %vm2647_vm3 = vmor %vm2645_vm2, %vm2646_vm1  ;;  %vm2667_vm5 = vweird.f32 %v3089_v29 }
 0xa63   :  { %v2642_v48 = vsub.f32 1.0, %v2641_v31  ;;  %vm2668_vm7 = vmor %vm2666_vm6, %vm2667_vm5 }
 0xa64   :  { %v2663_v24 = vsub.f32 1.0, %v2662_v16 }
 0xa65   :  { %v2643_v62 = vmul.f32 %v3087_v44, %v2642_v48 }
 0xa66   :  { %v2664_v17 = vmul.f32 %v3089_v29, %v2663_v24 }
 0xa67   :  { %v2644_v0 = vadd.f32 %v3087_v44, %v2643_v62 }
 0xa68   :  { %v2665_v21 = vadd.f32 %v3089_v29, %v2664_v17 }
 0xa69   :  { %v2648_v9 = vsel %vm2647_vm3, %v3087_v44, %v2644_v0 }
 0xa6a   :  { %v2653_v4 = vsel %vm2650_vm4, %v2652_v39, %v2648_v9  ;;  %v2669_v22 = vsel %vm2668_vm7, %v3089_v29, %v2665_v21 }
 0xa6b   :  { %v2677_v43 = vmul.f32 %v2653_v4, %v2632_v59  ;;  %v2674_v30 = vsel %vm2671_vm8, %v2673_v60, %v2669_v22  ;;  %v5059_v59 = vld [vmem:[#allocation24_spill] sm:$0xff] }
 0xa6c   :  { %v2680_v63 = vsub.f32 1.0, %v2674_v30  ;;  %v2682_v56 = vmul.f32 %v2674_v30, %v2573_v7  ;;  %v2800_v7 = vld [vmem:[#allocation13 + $0x30] sm:$0xff]  ;;  %v1834_v9 = vadd.f32 %v5059_v59, %v4531_v3 }
 0xa6d   :  { %v2678_v58 = vadd.f32 %v2677_v43, %v1831_v11  ;;  %2823 = vmatpush.msrb.mxu0 %v2800_v7 }
 0xa6f   :  { %3090 = vtanh.f32 %v2678_v58  ;;  %2824 = vmatpush.msrb.mxu0 %v2799_v1 }
 0xa71   :  { %2825 = vmatpush.msrb.mxu0 %v2798_v49 }
 0xa73   :  { %2826 = vmatpush.msrb.mxu0 %v2797_v8 }
 0xa75   :  { %v3091_v33 = vpop.eup %3090  ;;  %2827 = vmatpush.msrb.mxu0 %v2796_v38 }
 0xa76   :  { %v2681_v46 = vmul.f32 %v3091_v33, %v2680_v63 }
 0xa77   :  { %2828 = vmatpush.msrb.mxu0 %v2795_v50 }
 0xa78   :  { %v4938_v28 = vadd.f32 %v2682_v56, %v2681_v46  ;;  %v2941_v46 = vld [vmem:[%s4965_s8] ss:$0 sm:$0xff] }
 0xa79   :  { %2829 = vmatpush.msrb.mxu0 %v2794_v14 }
 0xa7a   :  { %2700 = vmatmul.f32.vlgmr.msra.gmra.mxu1 %v4938_v28  ;;  %2720 = vmatmul.f32.vlgmr.msra.gmra.mxu2 %v4938_v28 }
 0xa7b   :  { %2740 = vmatmul.f32.vlgmr.msrb.gmra.mxu3 %v4938_v28 }
 0xaf7   :  { %v2701_v19 = vpop.f32.mrf.mxu1 }
 0xaf8   :  { %v2745_v2 = vadd.f32 %v2701_v19, %v1752_v26 }
 0xafa   :  { %v2917_v42 = vmul.f32 -1.442695, %v2745_v2 }
 0xafc   :  { %3092 = vpow2.f32 %v2917_v42 }
 0xafd   :  { %v2721_v36 = vpop.f32.mrf.mxu2 }
 0xafe   :  { %v2766_v53 = vadd.f32 %v2721_v36, %v1793_v54  ;;  %v2741_v24 = vpop.f32.mrf.mxu3 }
 0xaff   :  { %v2742_v0 = vadd.f32 %v4925_v32, %v2741_v24 }
 0xb00   :  { %v2918_v40 = vmul.f32 -1.442695, %v2766_v53 }
 0xb02   :  { %v3093_v35 = vpop.eup %3092  ;;  %3094 = vpow2.f32 %v2918_v40 }
 0xb03   :  { %v2749_v52 = vadd.f32 1.0, %v3093_v35 }
 0xb05   :  { %3096 = vrcp.f32 %v2749_v52  ;;  %v2761_v31 = vand.u32 2147483648, %v2749_v52  ;;  %v2759_v48 = vand.u32 2147483647, %v2749_v52  ;;  %vm2755_vm10 = vweird.f32 %v2749_v52 }
 0xb07   :  { %v2762_v34 = vor.u32 1.1754944e-38, %v2761_v31  ;;  %vm2760_vm12 = vcmp.eq.f32.partialorder %v2759_v48, 8.507059e+37 }
 0xb08   :  { %v3095_v10 = vpop.eup %3094 }
 0xb09   :  { %v2770_v55 = vadd.f32 1.0, %v3095_v10 }
 0xb0b   :  { %v3097_v47 = vpop.eup %3096  ;;  %3098 = vrcp.f32 %v2770_v55  ;;  %v2782_v5 = vand.u32 2147483648, %v2770_v55  ;;  %v2780_v13 = vand.u32 2147483647, %v2770_v55  ;;  %vm2776_vm14 = vweird.f32 %v2770_v55 }
 0xb0c   :  { %v2751_v44 = vmul.f32 %v3097_v47, %v2749_v52  ;;  %vm2756_vm9 = vweird.f32 %v3097_v47 }
 0xb0d   :  { %vm2757_vm11 = vmor %vm2755_vm10, %vm2756_vm9  ;;  %v2783_v58 = vor.u32 1.1754944e-38, %v2782_v5  ;;  %vm2781_vm0 = vcmp.eq.f32.partialorder %v2780_v13, 8.507059e+37 }
 0xb0e   :  { %v2752_v29 = vsub.f32 1.0, %v2751_v44 }
 0xb10   :  { %v2753_v16 = vmul.f32 %v3097_v47, %v2752_v29 }
 0xb11   :  { %v3099_v61 = vpop.eup %3098 }
 0xb12   :  { %v2772_v62 = vmul.f32 %v3099_v61, %v2770_v55  ;;  %v2754_v15 = vadd.f32 %v3097_v47, %v2753_v16  ;;  %vm2777_vm13 = vweird.f32 %v3099_v61 }
 0xb13   :  { %vm2778_vm15 = vmor %vm2776_vm14, %vm2777_vm13 }
 0xb14   :  { %v2773_v17 = vsub.f32 1.0, %v2772_v62  ;;  %v2758_v39 = vsel %vm2757_vm11, %v3097_v47, %v2754_v15 }
 0xb15   :  { %v2763_v4 = vsel %vm2760_vm12, %v2762_v34, %v2758_v39 }
 0xb16   :  { %v2774_v21 = vmul.f32 %v3099_v61, %v2773_v17  ;;  %v2787_v11 = vmul.f32 %v2763_v4, %v2742_v0 }
 0xb18   :  { %v2775_v43 = vadd.f32 %v3099_v61, %v2774_v21  ;;  %v2788_v25 = vadd.f32 %v2787_v11, %v1834_v9 }
 0xb1a   :  { %v2779_v22 = vsel %vm2778_vm15, %v3099_v61, %v2775_v43  ;;  %3100 = vtanh.f32 %v2788_v25 }
 0xb1b   :  { %v2784_v32 = vsel %vm2781_vm0, %v2783_v58, %v2779_v22 }
 0xb1c   :  { %v2790_v60 = vsub.f32 1.0, %v2784_v32  ;;  %v2792_v3 = vmul.f32 %v2784_v32, %v4938_v28 }
 0xb20   :  { %v3101_v30 = vpop.eup %3100 }
 0xb21   :  { %v2791_v63 = vmul.f32 %v3101_v30, %v2790_v60 }
 0xb23   :  { %v2793_v33 = vadd.f32 %v2792_v3, %v2791_v63 }
 0xb25   :  { %2830 = vmatmul.f32.vlgmr.msrb.gmra.mxu0 %v2793_v33 }
 0xba2   :  { %v2831_v56 = vpop.f32.mrf.mxu0 }
 0xba3   :  { %v2832_v18 = vadd.f32 %v2941_v46, %v2831_v56 }
 0xba5   :  { %2834 = vst [vmem:[#allocation15] sm:$0xff] %v2832_v18 }
 0xba6   :  { %2845 = dma.vmem_to_hbm [thread:$0]  %s2841_s15, 128, %s2843_s17, [#allocation6]  }
 0xba7   :  { %3327 = dma.done.wait [#allocation6], 128  }
 0xba8   :  { %3328 = vsyncadd [#allocation6], 4294967168 }
 0xba9   :  { %2850 = vsyncpa [#allocation5], 1 }
 0xbaa   :  { %2851 = vsyncpa [#allocation8], 1 }
 0xbab   :  { %2852 = vsyncpa [#allocation11], 1 }
 0xbac   :  { %2853 = vsyncpa [#allocation14], 1 }
 0xbad   :  { %2854 = vsyncpa [#allocation6], 1 }

</bundles_post_ra>
